<compile_context>
chip_gen: v7x
topology: tpu7x:2x2x1
jax: 0.10.0
libtpu: 0.0.40
codegen_flags: <defaults>
</compile_context>

<pallas_src>
import functools

import jax
import jax.numpy as jnp
from jax import lax
from jax.experimental import pallas as pl
from jax.experimental.pallas import tpu as pltpu

EPS = 1e-5  # torch.layer_norm default eps


def _convlstm_cell_kernel(comb_ref, c_ref, w_ref, h_out_ref, c_out_ref,
                          patch_scr, acc_scr, *,
                          H, W, KH, KW, CTOT, CPAD, CH, act):
    """Per-batch ConvLSTM cell, channel-major tail.

    comb_ref  : (1, H+2ph, W+2pw, CTOT)  zero-padded [x, h_cur] (NHWC, fused in wrapper)
    c_ref     : (1, CH, H*W)             current cell state (channel-major)
    w_ref     : (4*CH, KH*KW*CPAD)       im2col conv weight, gates [i,f,o,g], lane-padded taps
    h_out_ref : (1, CH, H*W)             next hidden state
    c_out_ref : (1, CH, H*W)             next cell state
    patch_scr : (H*W, KH*KW*CPAD)        im2col patches, 128-lane-aligned tap slots
    acc_scr   : (4*CH, H*W)              conv-result staging (keeps vreg pressure low)
    """
    HW = H * W

    # ---- im2col with 128-lane-aligned per-tap slots -----------------------
    # Pad lanes are re-zeroed every step: the scratch persists across grid
    # steps / cores and could otherwise hold NaN garbage (NaN * 0 = NaN even
    # though the matching weight lanes are zero).
    if CPAD > CTOT:
        pad_zeros = jnp.zeros((HW, CPAD - CTOT), jnp.float32)
    for ky in range(KH):
        for kx in range(KW):
            tap = ky * KW + kx
            blk = comb_ref[0, ky:ky + H, kx:kx + W, :].reshape(HW, CTOT)
            patch_scr[:, tap * CPAD:tap * CPAD + CTOT] = blk
            if CPAD > CTOT:
                patch_scr[:, tap * CPAD + CTOT:(tap + 1) * CPAD] = pad_zeros

    # ---- one MXU matmul, channel-major result directly --------------------
    # "NT" contraction (last dim of both operands) -> (4*CH, HW); no XLU
    # transpose of the result, and N = HW fills the MXU output width.
    acc_scr[...] = lax.dot_general(
        w_ref[...], patch_scr[...],
        dimension_numbers=(((1,), (1,)), ((), ())),
        preferred_element_type=jnp.float32)

    inv_hw = 1.0 / float(HW)

    def layer_norm_hw(v):  # (cb, HW): two-pass layer norm over HW (stable)
        mean = jnp.sum(v, axis=1, keepdims=True) * inv_hw
        d = v - mean
        var = jnp.sum(d * d, axis=1, keepdims=True) * inv_hw
        return d * lax.rsqrt(var + EPS)

    # ---- gate tail in small channel-row chunks -----------------------------
    # Layer norm is per channel row over HW, so chunking over channels is
    # exact; per-chunk live set is ~a dozen vregs (no spilling).
    CB = 8 if CH % 8 == 0 else CH
    for c0 in range(0, CH, CB):
        i_g = jax.nn.sigmoid(acc_scr[0 * CH + c0:0 * CH + c0 + CB, :])
        f_g = jax.nn.sigmoid(acc_scr[1 * CH + c0:1 * CH + c0 + CB, :])
        o_g = jax.nn.sigmoid(acc_scr[2 * CH + c0:2 * CH + c0 + CB, :])
        g = act(layer_norm_hw(acc_scr[3 * CH + c0:3 * CH + c0 + CB, :]))
        c_next = layer_norm_hw(f_g * c_ref[0, c0:c0 + CB, :] + i_g * g)
        h_out_ref[0, c0:c0 + CB, :] = o_g * act(c_next)
        c_out_ref[0, c0:c0 + CB, :] = c_next


def mvs_layernorm_convlstm_cell(x, h_cur, c_cur, weight, activation=jnp.tanh):
    """Forward of MVSLayernormConvLSTMCell with previous_pose=None.

    x      : (B, Cin, H, W)   NCHW, float32
    h_cur  : (B, CH,  H, W)
    c_cur  : (B, CH,  H, W)
    weight : (4*CH, Cin+CH, KH, KW)   torch OIHW conv weight (no bias)
    returns (h_next, c_next) each (B, CH, H, W)
    """
    B, Cin, H, W = x.shape
    CH = h_cur.shape[1]
    four_ch, CTOT, KH, KW = weight.shape
    assert four_ch == 4 * CH and CTOT == Cin + CH
    ph, pw = KH // 2, KW // 2
    Hp, Wp = H + 2 * ph, W + 2 * pw
    HW = H * W
    CPAD = ((CTOT + 127) // 128) * 128  # 128-lane-aligned per-tap stride

    # One fused transpose + concat + zero-pad in the wrapper (tiny HBM cost,
    # removes the in-kernel comb scratch / zero-fill / narrow masked copies).
    comb = jnp.concatenate([x, h_cur], axis=1)                   # (B, CTOT, H, W)
    comb = jnp.transpose(comb, (0, 2, 3, 1))                     # NHWC
    comb = jnp.pad(comb, ((0, 0), (ph, ph), (pw, pw), (0, 0)))   # (B, Hp, Wp, CTOT)

    # c is consumed channel-major (CH, H*W): free reshape of NCHW.
    c_cm = c_cur.reshape(B, CH, HW)

    # OIHW -> (4*CH, KH*KW*CPAD): im2col weight with zero-padded 128-lane tap slots.
    w_t = jnp.transpose(weight, (0, 2, 3, 1))                    # (4CH, KH, KW, CTOT)
    w_t = jnp.pad(w_t, ((0, 0), (0, 0), (0, 0), (0, CPAD - CTOT)))
    w2 = w_t.reshape(four_ch, KH * KW * CPAD)

    kernel = functools.partial(_convlstm_cell_kernel,
                               H=H, W=W, KH=KH, KW=KW,
                               CTOT=CTOT, CPAD=CPAD, CH=CH, act=activation)

    grid_spec = pltpu.PrefetchScalarGridSpec(
        num_scalar_prefetch=0,
        grid=(B,),
        in_specs=[
            pl.BlockSpec((1, Hp, Wp, CTOT), lambda b: (b, 0, 0, 0)),
            pl.BlockSpec((1, CH, HW), lambda b: (b, 0, 0)),
            pl.BlockSpec((four_ch, KH * KW * CPAD), lambda b: (0, 0)),
        ],
        out_specs=[
            pl.BlockSpec((1, CH, HW), lambda b: (b, 0, 0)),
            pl.BlockSpec((1, CH, HW), lambda b: (b, 0, 0)),
        ],
        scratch_shapes=[
            pltpu.VMEM((HW, KH * KW * CPAD), jnp.float32),   # im2col patches
            pltpu.VMEM((four_ch, HW), jnp.float32),          # conv result staging
        ],
    )

    h_cm, c_cm_out = pl.pallas_call(
        kernel,
        out_shape=(jax.ShapeDtypeStruct((B, CH, HW), jnp.float32),
                   jax.ShapeDtypeStruct((B, CH, HW), jnp.float32)),
        grid_spec=grid_spec,
        compiler_params=pltpu.CompilerParams(
            dimension_semantics=("parallel",)),
    )(comb, c_cm, w2)

    # Outputs are already flattened NCHW; reshape is free.
    return h_cm.reshape(B, CH, H, W), c_cm_out.reshape(B, CH, H, W)


# ------------------------ pure-JAX reference (NCHW) ------------------------
def _reference(x, h_cur, c_cur, weight, activation=jnp.tanh):
    comb = jnp.concatenate([x, h_cur], axis=1)
    conv = jax.lax.conv_general_dilated(
        comb, weight, window_strides=(1, 1), padding='SAME',
        dimension_numbers=('NCHW', 'OIHW', 'NCHW'),
        precision=jax.lax.Precision.HIGHEST)
    cc_i, cc_f, cc_o, cc_g = jnp.split(conv, 4, axis=1)

    def ln(v):  # layer_norm over [H, W]
        mean = jnp.mean(v, axis=(2, 3), keepdims=True)
        var = jnp.mean((v - mean) ** 2, axis=(2, 3), keepdims=True)
        return (v - mean) / jnp.sqrt(var + EPS)

    i = jax.nn.sigmoid(cc_i)
    f = jax.nn.sigmoid(cc_f)
    o = jax.nn.sigmoid(cc_o)
    g = activation(ln(cc_g))
    c_next = ln(f * c_cur + i * g)
    h_next = o * activation(c_next)
    return h_next, c_next


if __name__ == "__main__":
    B, Cin, CH, H, W = 2, 4, 32, 16, 16
    KH, KW = 3, 3

    key = jax.random.PRNGKey(0)
    kx_, kh_, kc_, kw_ = jax.random.split(key, 4)
    x = jax.random.normal(kx_, (B, Cin, H, W), jnp.float32)
    h_cur = jax.random.normal(kh_, (B, CH, H, W), jnp.float32)
    c_cur = jax.random.normal(kc_, (B, CH, H, W), jnp.float32)
    # deterministic synthetic conv weight, torch layout (out, in, kh, kw)
    weight = jax.random.normal(kw_, (4 * CH, Cin + CH, KH, KW), jnp.float32) * 0.1

    fwd = jax.jit(mvs_layernorm_convlstm_cell)
    h_next, c_next = fwd(x, h_cur, c_cur, weight)
    jax.block_until_ready((h_next, c_next))

    h_ref, c_ref = _reference(x, h_cur, c_cur, weight)
    assert h_next.shape == (B, CH, H, W) and c_next.shape == (B, CH, H, W)
    # MXU f32 passes vs XLA HIGHEST-precision conv: small tolerance margin.
    assert jnp.allclose(h_next, h_ref, rtol=3e-3, atol=3e-3), \
        f"h mismatch, max |diff| = {jnp.max(jnp.abs(h_next - h_ref))}"
    assert jnp.allclose(c_next, c_ref, rtol=3e-3, atol=3e-3), \
        f"c mismatch, max |diff| = {jnp.max(jnp.abs(c_next - c_ref))}"

    print("KERNEL_OK")
</pallas_src>

<mosaic_0001>
module attributes {stable_mosaic.version = 11 : i64} {
  func.func @_convlstm_cell_kernel(%arg0: i32, %arg1: memref<1x18x18x36xf32, #tpu.memory_space<vmem>>, %arg2: memref<1x32x256xf32, #tpu.memory_space<vmem>>, %arg3: memref<128x1152xf32, #tpu.memory_space<vmem>>, %arg4: memref<1x32x256xf32, #tpu.memory_space<vmem>>, %arg5: memref<1x32x256xf32, #tpu.memory_space<vmem>>, %arg6: memref<256x1152xf32, #tpu.memory_space<vmem>>, %arg7: memref<128x256xf32, #tpu.memory_space<vmem>>) attributes {dimension_semantics = [#tpu.dimension_semantics<parallel>], iteration_bounds = array<i64: 2>, scalar_prefetch = 0 : i64, scratch_operands = 2 : i64, tpu.core_type = #tpu.core_type<tc>, window_params = [{transform_indices = @transform_0, window_bounds = array<i64: 1, 18, 18, 36>}, {transform_indices = @transform_1, window_bounds = array<i64: 1, 32, 256>}, {pipeline_mode = #tpu.pipeline_mode<synchronous>, transform_indices = @transform_2, window_bounds = array<i64: 128, 1152>}, {transform_indices = @transform_3, window_bounds = array<i64: 1, 32, 256>}, {transform_indices = @transform_4, window_bounds = array<i64: 1, 32, 256>}]} {
    %cst = arith.constant 0.000000e+00 : f32
    %0 = vector.broadcast %cst : f32 to vector<256x92xf32>
    %c0 = arith.constant 0 : index
    %c0_0 = arith.constant 0 : index
    %c0_1 = arith.constant 0 : index
    %c0_2 = arith.constant 0 : index
    %1 = vector.load %arg1[%c0, %c0_0, %c0_1, %c0_2] : memref<1x18x18x36xf32, #tpu.memory_space<vmem>>, vector<1x16x16x36xf32>
    %2 = vector.shape_cast %1 : vector<1x16x16x36xf32> to vector<16x16x36xf32>
    %3 = vector.shape_cast %2 : vector<16x16x36xf32> to vector<256x36xf32>
    %c0_3 = arith.constant 0 : index
    %c0_4 = arith.constant 0 : index
    %4 = vector.load %arg6[%c0_3, %c0_4] : memref<256x1152xf32, #tpu.memory_space<vmem>>, vector<256x36xf32>
    tpu.vector_store %arg6[%c0_3, %c0_4], %3 {strides = array<i32>} : memref<256x1152xf32, #tpu.memory_space<vmem>>, vector<256x36xf32>,
    %c0_5 = arith.constant 0 : index
    %c36 = arith.constant 36 : index
    %5 = vector.load %arg6[%c0_5, %c36] : memref<256x1152xf32, #tpu.memory_space<vmem>>, vector<256x92xf32>
    tpu.vector_store %arg6[%c0_5, %c36], %0 {strides = array<i32>} : memref<256x1152xf32, #tpu.memory_space<vmem>>, vector<256x92xf32>,
    %c0_6 = arith.constant 0 : index
    %c0_7 = arith.constant 0 : index
    %c1 = arith.constant 1 : index
    %c0_8 = arith.constant 0 : index
    %6 = vector.load %arg1[%c0_6, %c0_7, %c1, %c0_8] : memref<1x18x18x36xf32, #tpu.memory_space<vmem>>, vector<1x16x16x36xf32>
    %7 = vector.shape_cast %6 : vector<1x16x16x36xf32> to vector<16x16x36xf32>
    %8 = vector.shape_cast %7 : vector<16x16x36xf32> to vector<256x36xf32>
    %c0_9 = arith.constant 0 : index
    %c128 = arith.constant 128 : index
    %9 = vector.load %arg6[%c0_9, %c128] : memref<256x1152xf32, #tpu.memory_space<vmem>>, vector<256x36xf32>
    tpu.vector_store %arg6[%c0_9, %c128], %8 {strides = array<i32>} : memref<256x1152xf32, #tpu.memory_space<vmem>>, vector<256x36xf32>,
    %c0_10 = arith.constant 0 : index
    %c164 = arith.constant 164 : index
    %10 = vector.load %arg6[%c0_10, %c164] : memref<256x1152xf32, #tpu.memory_space<vmem>>, vector<256x92xf32>
    tpu.vector_store %arg6[%c0_10, %c164], %0 {strides = array<i32>} : memref<256x1152xf32, #tpu.memory_space<vmem>>, vector<256x92xf32>,
    %c0_11 = arith.constant 0 : index
    %c0_12 = arith.constant 0 : index
    %c2 = arith.constant 2 : index
    %c0_13 = arith.constant 0 : index
    %11 = vector.load %arg1[%c0_11, %c0_12, %c2, %c0_13] : memref<1x18x18x36xf32, #tpu.memory_space<vmem>>, vector<1x16x16x36xf32>
    %12 = vector.shape_cast %11 : vector<1x16x16x36xf32> to vector<16x16x36xf32>
    %13 = vector.shape_cast %12 : vector<16x16x36xf32> to vector<256x36xf32>
    %c0_14 = arith.constant 0 : index
    %c256 = arith.constant 256 : index
    %14 = vector.load %arg6[%c0_14, %c256] : memref<256x1152xf32, #tpu.memory_space<vmem>>, vector<256x36xf32>
    tpu.vector_store %arg6[%c0_14, %c256], %13 {strides = array<i32>} : memref<256x1152xf32, #tpu.memory_space<vmem>>, vector<256x36xf32>,
    %c0_15 = arith.constant 0 : index
    %c292 = arith.constant 292 : index
    %15 = vector.load %arg6[%c0_15, %c292] : memref<256x1152xf32, #tpu.memory_space<vmem>>, vector<256x92xf32>
    tpu.vector_store %arg6[%c0_15, %c292], %0 {strides = array<i32>} : memref<256x1152xf32, #tpu.memory_space<vmem>>, vector<256x92xf32>,
    %c0_16 = arith.constant 0 : index
    %c1_17 = arith.constant 1 : index
    %c0_18 = arith.constant 0 : index
    %c0_19 = arith.constant 0 : index
    %16 = vector.load %arg1[%c0_16, %c1_17, %c0_18, %c0_19] : memref<1x18x18x36xf32, #tpu.memory_space<vmem>>, vector<1x16x16x36xf32>
    %17 = vector.shape_cast %16 : vector<1x16x16x36xf32> to vector<16x16x36xf32>
    %18 = vector.shape_cast %17 : vector<16x16x36xf32> to vector<256x36xf32>
    %c0_20 = arith.constant 0 : index
    %c384 = arith.constant 384 : index
    %19 = vector.load %arg6[%c0_20, %c384] : memref<256x1152xf32, #tpu.memory_space<vmem>>, vector<256x36xf32>
    tpu.vector_store %arg6[%c0_20, %c384], %18 {strides = array<i32>} : memref<256x1152xf32, #tpu.memory_space<vmem>>, vector<256x36xf32>,
    %c0_21 = arith.constant 0 : index
    %c420 = arith.constant 420 : index
    %20 = vector.load %arg6[%c0_21, %c420] : memref<256x1152xf32, #tpu.memory_space<vmem>>, vector<256x92xf32>
    tpu.vector_store %arg6[%c0_21, %c420], %0 {strides = array<i32>} : memref<256x1152xf32, #tpu.memory_space<vmem>>, vector<256x92xf32>,
    %c0_22 = arith.constant 0 : index
    %c1_23 = arith.constant 1 : index
    %c1_24 = arith.constant 1 : index
    %c0_25 = arith.constant 0 : index
    %21 = vector.load %arg1[%c0_22, %c1_23, %c1_24, %c0_25] : memref<1x18x18x36xf32, #tpu.memory_space<vmem>>, vector<1x16x16x36xf32>
    %22 = vector.shape_cast %21 : vector<1x16x16x36xf32> to vector<16x16x36xf32>
    %23 = vector.shape_cast %22 : vector<16x16x36xf32> to vector<256x36xf32>
    %c0_26 = arith.constant 0 : index
    %c512 = arith.constant 512 : index
    %24 = vector.load %arg6[%c0_26, %c512] : memref<256x1152xf32, #tpu.memory_space<vmem>>, vector<256x36xf32>
    tpu.vector_store %arg6[%c0_26, %c512], %23 {strides = array<i32>} : memref<256x1152xf32, #tpu.memory_space<vmem>>, vector<256x36xf32>,
    %c0_27 = arith.constant 0 : index
    %c548 = arith.constant 548 : index
    %25 = vector.load %arg6[%c0_27, %c548] : memref<256x1152xf32, #tpu.memory_space<vmem>>, vector<256x92xf32>
    tpu.vector_store %arg6[%c0_27, %c548], %0 {strides = array<i32>} : memref<256x1152xf32, #tpu.memory_space<vmem>>, vector<256x92xf32>,
    %c0_28 = arith.constant 0 : index
    %c1_29 = arith.constant 1 : index
    %c2_30 = arith.constant 2 : index
    %c0_31 = arith.constant 0 : index
    %26 = vector.load %arg1[%c0_28, %c1_29, %c2_30, %c0_31] : memref<1x18x18x36xf32, #tpu.memory_space<vmem>>, vector<1x16x16x36xf32>
    %27 = vector.shape_cast %26 : vector<1x16x16x36xf32> to vector<16x16x36xf32>
    %28 = vector.shape_cast %27 : vector<16x16x36xf32> to vector<256x36xf32>
    %c0_32 = arith.constant 0 : index
    %c640 = arith.constant 640 : index
    %29 = vector.load %arg6[%c0_32, %c640] : memref<256x1152xf32, #tpu.memory_space<vmem>>, vector<256x36xf32>
    tpu.vector_store %arg6[%c0_32, %c640], %28 {strides = array<i32>} : memref<256x1152xf32, #tpu.memory_space<vmem>>, vector<256x36xf32>,
    %c0_33 = arith.constant 0 : index
    %c676 = arith.constant 676 : index
    %30 = vector.load %arg6[%c0_33, %c676] : memref<256x1152xf32, #tpu.memory_space<vmem>>, vector<256x92xf32>
    tpu.vector_store %arg6[%c0_33, %c676], %0 {strides = array<i32>} : memref<256x1152xf32, #tpu.memory_space<vmem>>, vector<256x92xf32>,
    %c0_34 = arith.constant 0 : index
    %c2_35 = arith.constant 2 : index
    %c0_36 = arith.constant 0 : index
    %c0_37 = arith.constant 0 : index
    %31 = vector.load %arg1[%c0_34, %c2_35, %c0_36, %c0_37] : memref<1x18x18x36xf32, #tpu.memory_space<vmem>>, vector<1x16x16x36xf32>
    %32 = vector.shape_cast %31 : vector<1x16x16x36xf32> to vector<16x16x36xf32>
    %33 = vector.shape_cast %32 : vector<16x16x36xf32> to vector<256x36xf32>
    %c0_38 = arith.constant 0 : index
    %c768 = arith.constant 768 : index
    %34 = vector.load %arg6[%c0_38, %c768] : memref<256x1152xf32, #tpu.memory_space<vmem>>, vector<256x36xf32>
    tpu.vector_store %arg6[%c0_38, %c768], %33 {strides = array<i32>} : memref<256x1152xf32, #tpu.memory_space<vmem>>, vector<256x36xf32>,
    %c0_39 = arith.constant 0 : index
    %c804 = arith.constant 804 : index
    %35 = vector.load %arg6[%c0_39, %c804] : memref<256x1152xf32, #tpu.memory_space<vmem>>, vector<256x92xf32>
    tpu.vector_store %arg6[%c0_39, %c804], %0 {strides = array<i32>} : memref<256x1152xf32, #tpu.memory_space<vmem>>, vector<256x92xf32>,
    %c0_40 = arith.constant 0 : index
    %c2_41 = arith.constant 2 : index
    %c1_42 = arith.constant 1 : index
    %c0_43 = arith.constant 0 : index
    %36 = vector.load %arg1[%c0_40, %c2_41, %c1_42, %c0_43] : memref<1x18x18x36xf32, #tpu.memory_space<vmem>>, vector<1x16x16x36xf32>
    %37 = vector.shape_cast %36 : vector<1x16x16x36xf32> to vector<16x16x36xf32>
    %38 = vector.shape_cast %37 : vector<16x16x36xf32> to vector<256x36xf32>
    %c0_44 = arith.constant 0 : index
    %c896 = arith.constant 896 : index
    %39 = vector.load %arg6[%c0_44, %c896] : memref<256x1152xf32, #tpu.memory_space<vmem>>, vector<256x36xf32>
    tpu.vector_store %arg6[%c0_44, %c896], %38 {strides = array<i32>} : memref<256x1152xf32, #tpu.memory_space<vmem>>, vector<256x36xf32>,
    %c0_45 = arith.constant 0 : index
    %c932 = arith.constant 932 : index
    %40 = vector.load %arg6[%c0_45, %c932] : memref<256x1152xf32, #tpu.memory_space<vmem>>, vector<256x92xf32>
    tpu.vector_store %arg6[%c0_45, %c932], %0 {strides = array<i32>} : memref<256x1152xf32, #tpu.memory_space<vmem>>, vector<256x92xf32>,
    %c0_46 = arith.constant 0 : index
    %c2_47 = arith.constant 2 : index
    %c2_48 = arith.constant 2 : index
    %c0_49 = arith.constant 0 : index
    %41 = vector.load %arg1[%c0_46, %c2_47, %c2_48, %c0_49] : memref<1x18x18x36xf32, #tpu.memory_space<vmem>>, vector<1x16x16x36xf32>
    %42 = vector.shape_cast %41 : vector<1x16x16x36xf32> to vector<16x16x36xf32>
    %43 = vector.shape_cast %42 : vector<16x16x36xf32> to vector<256x36xf32>
    %c0_50 = arith.constant 0 : index
    %c1024 = arith.constant 1024 : index
    %44 = vector.load %arg6[%c0_50, %c1024] : memref<256x1152xf32, #tpu.memory_space<vmem>>, vector<256x36xf32>
    tpu.vector_store %arg6[%c0_50, %c1024], %43 {strides = array<i32>} : memref<256x1152xf32, #tpu.memory_space<vmem>>, vector<256x36xf32>,
    %c0_51 = arith.constant 0 : index
    %c1060 = arith.constant 1060 : index
    %45 = vector.load %arg6[%c0_51, %c1060] : memref<256x1152xf32, #tpu.memory_space<vmem>>, vector<256x92xf32>
    tpu.vector_store %arg6[%c0_51, %c1060], %0 {strides = array<i32>} : memref<256x1152xf32, #tpu.memory_space<vmem>>, vector<256x92xf32>,
    %c0_52 = arith.constant 0 : index
    %c0_53 = arith.constant 0 : index
    %46 = vector.load %arg3[%c0_52, %c0_53] : memref<128x1152xf32, #tpu.memory_space<vmem>>, vector<128x1152xf32>
    %c0_54 = arith.constant 0 : index
    %c0_55 = arith.constant 0 : index
    %47 = vector.load %arg6[%c0_54, %c0_55] : memref<256x1152xf32, #tpu.memory_space<vmem>>, vector<256x1152xf32>
    %cst_56 = arith.constant dense<0.000000e+00> : vector<128x256xf32>
    %48 = tpu.matmul %46, %47, %cst_56 {dimension_numbers = #tpu.dot_dimension_numbers<[1], [1], [0], [0], [0, 0, 1, 0], [], []>} : vector<128x1152xf32>, vector<256x1152xf32>, vector<128x256xf32> -> vector<128x256xf32>
    %c0_57 = arith.constant 0 : index
    %c0_58 = arith.constant 0 : index
    %49 = vector.load %arg7[%c0_57, %c0_58] : memref<128x256xf32, #tpu.memory_space<vmem>>, vector<128x256xf32>
    tpu.vector_store %arg7[%c0_57, %c0_58], %48 {strides = array<i32>} : memref<128x256xf32, #tpu.memory_space<vmem>>, vector<128x256xf32>,
    %c0_59 = arith.constant 0 : index
    %c0_60 = arith.constant 0 : index
    %50 = vector.load %arg7[%c0_59, %c0_60] : memref<128x256xf32, #tpu.memory_space<vmem>>, vector<8x256xf32>
    %51 = arith.negf %50 : vector<8x256xf32>
    %52 = math.exp %51 : vector<8x256xf32>
    %cst_61 = arith.constant 1.000000e+00 : f32
    %53 = vector.broadcast %cst_61 : f32 to vector<8x256xf32>
    %54 = arith.addf %53, %52 : vector<8x256xf32>
    %55 = arith.divf %53, %54 : vector<8x256xf32>
    %c32 = arith.constant 32 : index
    %c0_62 = arith.constant 0 : index
    %56 = vector.load %arg7[%c32, %c0_62] : memref<128x256xf32, #tpu.memory_space<vmem>>, vector<8x256xf32>
    %57 = arith.negf %56 : vector<8x256xf32>
    %58 = math.exp %57 : vector<8x256xf32>
    %cst_63 = arith.constant 1.000000e+00 : f32
    %59 = vector.broadcast %cst_63 : f32 to vector<8x256xf32>
    %60 = arith.addf %59, %58 : vector<8x256xf32>
    %61 = arith.divf %59, %60 : vector<8x256xf32>
    %c64 = arith.constant 64 : index
    %c0_64 = arith.constant 0 : index
    %62 = vector.load %arg7[%c64, %c0_64] : memref<128x256xf32, #tpu.memory_space<vmem>>, vector<8x256xf32>
    %63 = arith.negf %62 : vector<8x256xf32>
    %64 = math.exp %63 : vector<8x256xf32>
    %cst_65 = arith.constant 1.000000e+00 : f32
    %65 = vector.broadcast %cst_65 : f32 to vector<8x256xf32>
    %66 = arith.addf %65, %64 : vector<8x256xf32>
    %67 = arith.divf %65, %66 : vector<8x256xf32>
    %c96 = arith.constant 96 : index
    %c0_66 = arith.constant 0 : index
    %68 = vector.load %arg7[%c96, %c0_66] : memref<128x256xf32, #tpu.memory_space<vmem>>, vector<8x256xf32>
    %cst_67 = arith.constant dense<0.000000e+00> : vector<8xf32>
    %69 = vector.multi_reduction <add>, %68, %cst_67 [1] : vector<8x256xf32> to vector<8xf32>
    %70 = vector.shape_cast %69 : vector<8xf32> to vector<8x1xf32>
    %cst_68 = arith.constant 3.906250e-03 : f32
    %71 = vector.broadcast %cst_68 : f32 to vector<8x1xf32>
    %72 = arith.mulf %70, %71 : vector<8x1xf32>
    %73 = vector.broadcast %72 : vector<8x1xf32> to vector<8x256xf32>
    %74 = arith.subf %68, %73 : vector<8x256xf32>
    %75 = arith.mulf %74, %74 : vector<8x256xf32>
    %cst_69 = arith.constant dense<0.000000e+00> : vector<8xf32>
    %76 = vector.multi_reduction <add>, %75, %cst_69 [1] : vector<8x256xf32> to vector<8xf32>
    %77 = vector.shape_cast %76 : vector<8xf32> to vector<8x1xf32>
    %cst_70 = arith.constant 3.906250e-03 : f32
    %78 = vector.broadcast %cst_70 : f32 to vector<8x1xf32>
    %79 = arith.mulf %77, %78 : vector<8x1xf32>
    %cst_71 = arith.constant 9.99999974E-6 : f32
    %80 = vector.broadcast %cst_71 : f32 to vector<8x1xf32>
    %81 = arith.addf %79, %80 : vector<8x1xf32>
    %82 = math.rsqrt %81 : vector<8x1xf32>
    %83 = vector.broadcast %82 : vector<8x1xf32> to vector<8x256xf32>
    %84 = arith.mulf %74, %83 : vector<8x256xf32>
    %85 = math.tanh %84 : vector<8x256xf32>
    %c0_72 = arith.constant 0 : index
    %c0_73 = arith.constant 0 : index
    %c0_74 = arith.constant 0 : index
    %86 = vector.load %arg2[%c0_72, %c0_73, %c0_74] : memref<1x32x256xf32, #tpu.memory_space<vmem>>, vector<1x8x256xf32>
    %87 = vector.shape_cast %86 : vector<1x8x256xf32> to vector<8x256xf32>
    %88 = arith.mulf %61, %87 : vector<8x256xf32>
    %89 = arith.mulf %55, %85 : vector<8x256xf32>
    %90 = arith.addf %88, %89 : vector<8x256xf32>
    %cst_75 = arith.constant dense<0.000000e+00> : vector<8xf32>
    %91 = vector.multi_reduction <add>, %90, %cst_75 [1] : vector<8x256xf32> to vector<8xf32>
    %92 = vector.shape_cast %91 : vector<8xf32> to vector<8x1xf32>
    %cst_76 = arith.constant 3.906250e-03 : f32
    %93 = vector.broadcast %cst_76 : f32 to vector<8x1xf32>
    %94 = arith.mulf %92, %93 : vector<8x1xf32>
    %95 = vector.broadcast %94 : vector<8x1xf32> to vector<8x256xf32>
    %96 = arith.subf %90, %95 : vector<8x256xf32>
    %97 = arith.mulf %96, %96 : vector<8x256xf32>
    %cst_77 = arith.constant dense<0.000000e+00> : vector<8xf32>
    %98 = vector.multi_reduction <add>, %97, %cst_77 [1] : vector<8x256xf32> to vector<8xf32>
    %99 = vector.shape_cast %98 : vector<8xf32> to vector<8x1xf32>
    %cst_78 = arith.constant 3.906250e-03 : f32
    %100 = vector.broadcast %cst_78 : f32 to vector<8x1xf32>
    %101 = arith.mulf %99, %100 : vector<8x1xf32>
    %cst_79 = arith.constant 9.99999974E-6 : f32
    %102 = vector.broadcast %cst_79 : f32 to vector<8x1xf32>
    %103 = arith.addf %101, %102 : vector<8x1xf32>
    %104 = math.rsqrt %103 : vector<8x1xf32>
    %105 = vector.broadcast %104 : vector<8x1xf32> to vector<8x256xf32>
    %106 = arith.mulf %96, %105 : vector<8x256xf32>
    %107 = math.tanh %106 : vector<8x256xf32>
    %108 = arith.mulf %67, %107 : vector<8x256xf32>
    %c0_80 = arith.constant 0 : index
    %c0_81 = arith.constant 0 : index
    %c0_82 = arith.constant 0 : index
    %109 = vector.load %arg4[%c0_80, %c0_81, %c0_82] : memref<1x32x256xf32, #tpu.memory_space<vmem>>, vector<1x8x256xf32>
    %110 = vector.shape_cast %109 : vector<1x8x256xf32> to vector<8x256xf32>
    %111 = vector.shape_cast %108 : vector<8x256xf32> to vector<1x8x256xf32>
    tpu.vector_store %arg4[%c0_80, %c0_81, %c0_82], %111 {strides = array<i32>} : memref<1x32x256xf32, #tpu.memory_space<vmem>>, vector<1x8x256xf32>,
    %c0_83 = arith.constant 0 : index
    %c0_84 = arith.constant 0 : index
    %c0_85 = arith.constant 0 : index
    %112 = vector.load %arg5[%c0_83, %c0_84, %c0_85] : memref<1x32x256xf32, #tpu.memory_space<vmem>>, vector<1x8x256xf32>
    %113 = vector.shape_cast %112 : vector<1x8x256xf32> to vector<8x256xf32>
    %114 = vector.shape_cast %106 : vector<8x256xf32> to vector<1x8x256xf32>
    tpu.vector_store %arg5[%c0_83, %c0_84, %c0_85], %114 {strides = array<i32>} : memref<1x32x256xf32, #tpu.memory_space<vmem>>, vector<1x8x256xf32>,
    %c8 = arith.constant 8 : index
    %c0_86 = arith.constant 0 : index
    %115 = vector.load %arg7[%c8, %c0_86] : memref<128x256xf32, #tpu.memory_space<vmem>>, vector<8x256xf32>
    %116 = arith.negf %115 : vector<8x256xf32>
    %117 = math.exp %116 : vector<8x256xf32>
    %cst_87 = arith.constant 1.000000e+00 : f32
    %118 = vector.broadcast %cst_87 : f32 to vector<8x256xf32>
    %119 = arith.addf %118, %117 : vector<8x256xf32>
    %120 = arith.divf %118, %119 : vector<8x256xf32>
    %c40 = arith.constant 40 : index
    %c0_88 = arith.constant 0 : index
    %121 = vector.load %arg7[%c40, %c0_88] : memref<128x256xf32, #tpu.memory_space<vmem>>, vector<8x256xf32>
    %122 = arith.negf %121 : vector<8x256xf32>
    %123 = math.exp %122 : vector<8x256xf32>
    %cst_89 = arith.constant 1.000000e+00 : f32
    %124 = vector.broadcast %cst_89 : f32 to vector<8x256xf32>
    %125 = arith.addf %124, %123 : vector<8x256xf32>
    %126 = arith.divf %124, %125 : vector<8x256xf32>
    %c72 = arith.constant 72 : index
    %c0_90 = arith.constant 0 : index
    %127 = vector.load %arg7[%c72, %c0_90] : memref<128x256xf32, #tpu.memory_space<vmem>>, vector<8x256xf32>
    %128 = arith.negf %127 : vector<8x256xf32>
    %129 = math.exp %128 : vector<8x256xf32>
    %cst_91 = arith.constant 1.000000e+00 : f32
    %130 = vector.broadcast %cst_91 : f32 to vector<8x256xf32>
    %131 = arith.addf %130, %129 : vector<8x256xf32>
    %132 = arith.divf %130, %131 : vector<8x256xf32>
    %c104 = arith.constant 104 : index
    %c0_92 = arith.constant 0 : index
    %133 = vector.load %arg7[%c104, %c0_92] : memref<128x256xf32, #tpu.memory_space<vmem>>, vector<8x256xf32>
    %cst_93 = arith.constant dense<0.000000e+00> : vector<8xf32>
    %134 = vector.multi_reduction <add>, %133, %cst_93 [1] : vector<8x256xf32> to vector<8xf32>
    %135 = vector.shape_cast %134 : vector<8xf32> to vector<8x1xf32>
    %cst_94 = arith.constant 3.906250e-03 : f32
    %136 = vector.broadcast %cst_94 : f32 to vector<8x1xf32>
    %137 = arith.mulf %135, %136 : vector<8x1xf32>
    %138 = vector.broadcast %137 : vector<8x1xf32> to vector<8x256xf32>
    %139 = arith.subf %133, %138 : vector<8x256xf32>
    %140 = arith.mulf %139, %139 : vector<8x256xf32>
    %cst_95 = arith.constant dense<0.000000e+00> : vector<8xf32>
    %141 = vector.multi_reduction <add>, %140, %cst_95 [1] : vector<8x256xf32> to vector<8xf32>
    %142 = vector.shape_cast %141 : vector<8xf32> to vector<8x1xf32>
    %cst_96 = arith.constant 3.906250e-03 : f32
    %143 = vector.broadcast %cst_96 : f32 to vector<8x1xf32>
    %144 = arith.mulf %142, %143 : vector<8x1xf32>
    %cst_97 = arith.constant 9.99999974E-6 : f32
    %145 = vector.broadcast %cst_97 : f32 to vector<8x1xf32>
    %146 = arith.addf %144, %145 : vector<8x1xf32>
    %147 = math.rsqrt %146 : vector<8x1xf32>
    %148 = vector.broadcast %147 : vector<8x1xf32> to vector<8x256xf32>
    %149 = arith.mulf %139, %148 : vector<8x256xf32>
    %150 = math.tanh %149 : vector<8x256xf32>
    %c0_98 = arith.constant 0 : index
    %c8_99 = arith.constant 8 : index
    %c0_100 = arith.constant 0 : index
    %151 = vector.load %arg2[%c0_98, %c8_99, %c0_100] : memref<1x32x256xf32, #tpu.memory_space<vmem>>, vector<1x8x256xf32>
    %152 = vector.shape_cast %151 : vector<1x8x256xf32> to vector<8x256xf32>
    %153 = arith.mulf %126, %152 : vector<8x256xf32>
    %154 = arith.mulf %120, %150 : vector<8x256xf32>
    %155 = arith.addf %153, %154 : vector<8x256xf32>
    %cst_101 = arith.constant dense<0.000000e+00> : vector<8xf32>
    %156 = vector.multi_reduction <add>, %155, %cst_101 [1] : vector<8x256xf32> to vector<8xf32>
    %157 = vector.shape_cast %156 : vector<8xf32> to vector<8x1xf32>
    %cst_102 = arith.constant 3.906250e-03 : f32
    %158 = vector.broadcast %cst_102 : f32 to vector<8x1xf32>
    %159 = arith.mulf %157, %158 : vector<8x1xf32>
    %160 = vector.broadcast %159 : vector<8x1xf32> to vector<8x256xf32>
    %161 = arith.subf %155, %160 : vector<8x256xf32>
    %162 = arith.mulf %161, %161 : vector<8x256xf32>
    %cst_103 = arith.constant dense<0.000000e+00> : vector<8xf32>
    %163 = vector.multi_reduction <add>, %162, %cst_103 [1] : vector<8x256xf32> to vector<8xf32>
    %164 = vector.shape_cast %163 : vector<8xf32> to vector<8x1xf32>
    %cst_104 = arith.constant 3.906250e-03 : f32
    %165 = vector.broadcast %cst_104 : f32 to vector<8x1xf32>
    %166 = arith.mulf %164, %165 : vector<8x1xf32>
    %cst_105 = arith.constant 9.99999974E-6 : f32
    %167 = vector.broadcast %cst_105 : f32 to vector<8x1xf32>
    %168 = arith.addf %166, %167 : vector<8x1xf32>
    %169 = math.rsqrt %168 : vector<8x1xf32>
    %170 = vector.broadcast %169 : vector<8x1xf32> to vector<8x256xf32>
    %171 = arith.mulf %161, %170 : vector<8x256xf32>
    %172 = math.tanh %171 : vector<8x256xf32>
    %173 = arith.mulf %132, %172 : vector<8x256xf32>
    %c0_106 = arith.constant 0 : index
    %c8_107 = arith.constant 8 : index
    %c0_108 = arith.constant 0 : index
    %174 = vector.load %arg4[%c0_106, %c8_107, %c0_108] : memref<1x32x256xf32, #tpu.memory_space<vmem>>, vector<1x8x256xf32>
    %175 = vector.shape_cast %174 : vector<1x8x256xf32> to vector<8x256xf32>
    %176 = vector.shape_cast %173 : vector<8x256xf32> to vector<1x8x256xf32>
    tpu.vector_store %arg4[%c0_106, %c8_107, %c0_108], %176 {strides = array<i32>} : memref<1x32x256xf32, #tpu.memory_space<vmem>>, vector<1x8x256xf32>,
    %c0_109 = arith.constant 0 : index
    %c8_110 = arith.constant 8 : index
    %c0_111 = arith.constant 0 : index
    %177 = vector.load %arg5[%c0_109, %c8_110, %c0_111] : memref<1x32x256xf32, #tpu.memory_space<vmem>>, vector<1x8x256xf32>
    %178 = vector.shape_cast %177 : vector<1x8x256xf32> to vector<8x256xf32>
    %179 = vector.shape_cast %171 : vector<8x256xf32> to vector<1x8x256xf32>
    tpu.vector_store %arg5[%c0_109, %c8_110, %c0_111], %179 {strides = array<i32>} : memref<1x32x256xf32, #tpu.memory_space<vmem>>, vector<1x8x256xf32>,
    %c16 = arith.constant 16 : index
    %c0_112 = arith.constant 0 : index
    %180 = vector.load %arg7[%c16, %c0_112] : memref<128x256xf32, #tpu.memory_space<vmem>>, vector<8x256xf32>
    %181 = arith.negf %180 : vector<8x256xf32>
    %182 = math.exp %181 : vector<8x256xf32>
    %cst_113 = arith.constant 1.000000e+00 : f32
    %183 = vector.broadcast %cst_113 : f32 to vector<8x256xf32>
    %184 = arith.addf %183, %182 : vector<8x256xf32>
    %185 = arith.divf %183, %184 : vector<8x256xf32>
    %c48 = arith.constant 48 : index
    %c0_114 = arith.constant 0 : index
    %186 = vector.load %arg7[%c48, %c0_114] : memref<128x256xf32, #tpu.memory_space<vmem>>, vector<8x256xf32>
    %187 = arith.negf %186 : vector<8x256xf32>
    %188 = math.exp %187 : vector<8x256xf32>
    %cst_115 = arith.constant 1.000000e+00 : f32
    %189 = vector.broadcast %cst_115 : f32 to vector<8x256xf32>
    %190 = arith.addf %189, %188 : vector<8x256xf32>
    %191 = arith.divf %189, %190 : vector<8x256xf32>
    %c80 = arith.constant 80 : index
    %c0_116 = arith.constant 0 : index
    %192 = vector.load %arg7[%c80, %c0_116] : memref<128x256xf32, #tpu.memory_space<vmem>>, vector<8x256xf32>
    %193 = arith.negf %192 : vector<8x256xf32>
    %194 = math.exp %193 : vector<8x256xf32>
    %cst_117 = arith.constant 1.000000e+00 : f32
    %195 = vector.broadcast %cst_117 : f32 to vector<8x256xf32>
    %196 = arith.addf %195, %194 : vector<8x256xf32>
    %197 = arith.divf %195, %196 : vector<8x256xf32>
    %c112 = arith.constant 112 : index
    %c0_118 = arith.constant 0 : index
    %198 = vector.load %arg7[%c112, %c0_118] : memref<128x256xf32, #tpu.memory_space<vmem>>, vector<8x256xf32>
    %cst_119 = arith.constant dense<0.000000e+00> : vector<8xf32>
    %199 = vector.multi_reduction <add>, %198, %cst_119 [1] : vector<8x256xf32> to vector<8xf32>
    %200 = vector.shape_cast %199 : vector<8xf32> to vector<8x1xf32>
    %cst_120 = arith.constant 3.906250e-03 : f32
    %201 = vector.broadcast %cst_120 : f32 to vector<8x1xf32>
    %202 = arith.mulf %200, %201 : vector<8x1xf32>
    %203 = vector.broadcast %202 : vector<8x1xf32> to vector<8x256xf32>
    %204 = arith.subf %198, %203 : vector<8x256xf32>
    %205 = arith.mulf %204, %204 : vector<8x256xf32>
    %cst_121 = arith.constant dense<0.000000e+00> : vector<8xf32>
    %206 = vector.multi_reduction <add>, %205, %cst_121 [1] : vector<8x256xf32> to vector<8xf32>
    %207 = vector.shape_cast %206 : vector<8xf32> to vector<8x1xf32>
    %cst_122 = arith.constant 3.906250e-03 : f32
    %208 = vector.broadcast %cst_122 : f32 to vector<8x1xf32>
    %209 = arith.mulf %207, %208 : vector<8x1xf32>
    %cst_123 = arith.constant 9.99999974E-6 : f32
    %210 = vector.broadcast %cst_123 : f32 to vector<8x1xf32>
    %211 = arith.addf %209, %210 : vector<8x1xf32>
    %212 = math.rsqrt %211 : vector<8x1xf32>
    %213 = vector.broadcast %212 : vector<8x1xf32> to vector<8x256xf32>
    %214 = arith.mulf %204, %213 : vector<8x256xf32>
    %215 = math.tanh %214 : vector<8x256xf32>
    %c0_124 = arith.constant 0 : index
    %c16_125 = arith.constant 16 : index
    %c0_126 = arith.constant 0 : index
    %216 = vector.load %arg2[%c0_124, %c16_125, %c0_126] : memref<1x32x256xf32, #tpu.memory_space<vmem>>, vector<1x8x256xf32>
    %217 = vector.shape_cast %216 : vector<1x8x256xf32> to vector<8x256xf32>
    %218 = arith.mulf %191, %217 : vector<8x256xf32>
    %219 = arith.mulf %185, %215 : vector<8x256xf32>
    %220 = arith.addf %218, %219 : vector<8x256xf32>
    %cst_127 = arith.constant dense<0.000000e+00> : vector<8xf32>
    %221 = vector.multi_reduction <add>, %220, %cst_127 [1] : vector<8x256xf32> to vector<8xf32>
    %222 = vector.shape_cast %221 : vector<8xf32> to vector<8x1xf32>
    %cst_128 = arith.constant 3.906250e-03 : f32
    %223 = vector.broadcast %cst_128 : f32 to vector<8x1xf32>
    %224 = arith.mulf %222, %223 : vector<8x1xf32>
    %225 = vector.broadcast %224 : vector<8x1xf32> to vector<8x256xf32>
    %226 = arith.subf %220, %225 : vector<8x256xf32>
    %227 = arith.mulf %226, %226 : vector<8x256xf32>
    %cst_129 = arith.constant dense<0.000000e+00> : vector<8xf32>
    %228 = vector.multi_reduction <add>, %227, %cst_129 [1] : vector<8x256xf32> to vector<8xf32>
    %229 = vector.shape_cast %228 : vector<8xf32> to vector<8x1xf32>
    %cst_130 = arith.constant 3.906250e-03 : f32
    %230 = vector.broadcast %cst_130 : f32 to vector<8x1xf32>
    %231 = arith.mulf %229, %230 : vector<8x1xf32>
    %cst_131 = arith.constant 9.99999974E-6 : f32
    %232 = vector.broadcast %cst_131 : f32 to vector<8x1xf32>
    %233 = arith.addf %231, %232 : vector<8x1xf32>
    %234 = math.rsqrt %233 : vector<8x1xf32>
    %235 = vector.broadcast %234 : vector<8x1xf32> to vector<8x256xf32>
    %236 = arith.mulf %226, %235 : vector<8x256xf32>
    %237 = math.tanh %236 : vector<8x256xf32>
    %238 = arith.mulf %197, %237 : vector<8x256xf32>
    %c0_132 = arith.constant 0 : index
    %c16_133 = arith.constant 16 : index
    %c0_134 = arith.constant 0 : index
    %239 = vector.load %arg4[%c0_132, %c16_133, %c0_134] : memref<1x32x256xf32, #tpu.memory_space<vmem>>, vector<1x8x256xf32>
    %240 = vector.shape_cast %239 : vector<1x8x256xf32> to vector<8x256xf32>
    %241 = vector.shape_cast %238 : vector<8x256xf32> to vector<1x8x256xf32>
    tpu.vector_store %arg4[%c0_132, %c16_133, %c0_134], %241 {strides = array<i32>} : memref<1x32x256xf32, #tpu.memory_space<vmem>>, vector<1x8x256xf32>,
    %c0_135 = arith.constant 0 : index
    %c16_136 = arith.constant 16 : index
    %c0_137 = arith.constant 0 : index
    %242 = vector.load %arg5[%c0_135, %c16_136, %c0_137] : memref<1x32x256xf32, #tpu.memory_space<vmem>>, vector<1x8x256xf32>
    %243 = vector.shape_cast %242 : vector<1x8x256xf32> to vector<8x256xf32>
    %244 = vector.shape_cast %236 : vector<8x256xf32> to vector<1x8x256xf32>
    tpu.vector_store %arg5[%c0_135, %c16_136, %c0_137], %244 {strides = array<i32>} : memref<1x32x256xf32, #tpu.memory_space<vmem>>, vector<1x8x256xf32>,
    %c24 = arith.constant 24 : index
    %c0_138 = arith.constant 0 : index
    %245 = vector.load %arg7[%c24, %c0_138] : memref<128x256xf32, #tpu.memory_space<vmem>>, vector<8x256xf32>
    %246 = arith.negf %245 : vector<8x256xf32>
    %247 = math.exp %246 : vector<8x256xf32>
    %cst_139 = arith.constant 1.000000e+00 : f32
    %248 = vector.broadcast %cst_139 : f32 to vector<8x256xf32>
    %249 = arith.addf %248, %247 : vector<8x256xf32>
    %250 = arith.divf %248, %249 : vector<8x256xf32>
    %c56 = arith.constant 56 : index
    %c0_140 = arith.constant 0 : index
    %251 = vector.load %arg7[%c56, %c0_140] : memref<128x256xf32, #tpu.memory_space<vmem>>, vector<8x256xf32>
    %252 = arith.negf %251 : vector<8x256xf32>
    %253 = math.exp %252 : vector<8x256xf32>
    %cst_141 = arith.constant 1.000000e+00 : f32
    %254 = vector.broadcast %cst_141 : f32 to vector<8x256xf32>
    %255 = arith.addf %254, %253 : vector<8x256xf32>
    %256 = arith.divf %254, %255 : vector<8x256xf32>
    %c88 = arith.constant 88 : index
    %c0_142 = arith.constant 0 : index
    %257 = vector.load %arg7[%c88, %c0_142] : memref<128x256xf32, #tpu.memory_space<vmem>>, vector<8x256xf32>
    %258 = arith.negf %257 : vector<8x256xf32>
    %259 = math.exp %258 : vector<8x256xf32>
    %cst_143 = arith.constant 1.000000e+00 : f32
    %260 = vector.broadcast %cst_143 : f32 to vector<8x256xf32>
    %261 = arith.addf %260, %259 : vector<8x256xf32>
    %262 = arith.divf %260, %261 : vector<8x256xf32>
    %c120 = arith.constant 120 : index
    %c0_144 = arith.constant 0 : index
    %263 = vector.load %arg7[%c120, %c0_144] : memref<128x256xf32, #tpu.memory_space<vmem>>, vector<8x256xf32>
    %cst_145 = arith.constant dense<0.000000e+00> : vector<8xf32>
    %264 = vector.multi_reduction <add>, %263, %cst_145 [1] : vector<8x256xf32> to vector<8xf32>
    %265 = vector.shape_cast %264 : vector<8xf32> to vector<8x1xf32>
    %cst_146 = arith.constant 3.906250e-03 : f32
    %266 = vector.broadcast %cst_146 : f32 to vector<8x1xf32>
    %267 = arith.mulf %265, %266 : vector<8x1xf32>
    %268 = vector.broadcast %267 : vector<8x1xf32> to vector<8x256xf32>
    %269 = arith.subf %263, %268 : vector<8x256xf32>
    %270 = arith.mulf %269, %269 : vector<8x256xf32>
    %cst_147 = arith.constant dense<0.000000e+00> : vector<8xf32>
    %271 = vector.multi_reduction <add>, %270, %cst_147 [1] : vector<8x256xf32> to vector<8xf32>
    %272 = vector.shape_cast %271 : vector<8xf32> to vector<8x1xf32>
    %cst_148 = arith.constant 3.906250e-03 : f32
    %273 = vector.broadcast %cst_148 : f32 to vector<8x1xf32>
    %274 = arith.mulf %272, %273 : vector<8x1xf32>
    %cst_149 = arith.constant 9.99999974E-6 : f32
    %275 = vector.broadcast %cst_149 : f32 to vector<8x1xf32>
    %276 = arith.addf %274, %275 : vector<8x1xf32>
    %277 = math.rsqrt %276 : vector<8x1xf32>
    %278 = vector.broadcast %277 : vector<8x1xf32> to vector<8x256xf32>
    %279 = arith.mulf %269, %278 : vector<8x256xf32>
    %280 = math.tanh %279 : vector<8x256xf32>
    %c0_150 = arith.constant 0 : index
    %c24_151 = arith.constant 24 : index
    %c0_152 = arith.constant 0 : index
    %281 = vector.load %arg2[%c0_150, %c24_151, %c0_152] : memref<1x32x256xf32, #tpu.memory_space<vmem>>, vector<1x8x256xf32>
    %282 = vector.shape_cast %281 : vector<1x8x256xf32> to vector<8x256xf32>
    %283 = arith.mulf %256, %282 : vector<8x256xf32>
    %284 = arith.mulf %250, %280 : vector<8x256xf32>
    %285 = arith.addf %283, %284 : vector<8x256xf32>
    %cst_153 = arith.constant dense<0.000000e+00> : vector<8xf32>
    %286 = vector.multi_reduction <add>, %285, %cst_153 [1] : vector<8x256xf32> to vector<8xf32>
    %287 = vector.shape_cast %286 : vector<8xf32> to vector<8x1xf32>
    %cst_154 = arith.constant 3.906250e-03 : f32
    %288 = vector.broadcast %cst_154 : f32 to vector<8x1xf32>
    %289 = arith.mulf %287, %288 : vector<8x1xf32>
    %290 = vector.broadcast %289 : vector<8x1xf32> to vector<8x256xf32>
    %291 = arith.subf %285, %290 : vector<8x256xf32>
    %292 = arith.mulf %291, %291 : vector<8x256xf32>
    %cst_155 = arith.constant dense<0.000000e+00> : vector<8xf32>
    %293 = vector.multi_reduction <add>, %292, %cst_155 [1] : vector<8x256xf32> to vector<8xf32>
    %294 = vector.shape_cast %293 : vector<8xf32> to vector<8x1xf32>
    %cst_156 = arith.constant 3.906250e-03 : f32
    %295 = vector.broadcast %cst_156 : f32 to vector<8x1xf32>
    %296 = arith.mulf %294, %295 : vector<8x1xf32>
    %cst_157 = arith.constant 9.99999974E-6 : f32
    %297 = vector.broadcast %cst_157 : f32 to vector<8x1xf32>
    %298 = arith.addf %296, %297 : vector<8x1xf32>
    %299 = math.rsqrt %298 : vector<8x1xf32>
    %300 = vector.broadcast %299 : vector<8x1xf32> to vector<8x256xf32>
    %301 = arith.mulf %291, %300 : vector<8x256xf32>
    %302 = math.tanh %301 : vector<8x256xf32>
    %303 = arith.mulf %262, %302 : vector<8x256xf32>
    %c0_158 = arith.constant 0 : index
    %c24_159 = arith.constant 24 : index
    %c0_160 = arith.constant 0 : index
    %304 = vector.load %arg4[%c0_158, %c24_159, %c0_160] : memref<1x32x256xf32, #tpu.memory_space<vmem>>, vector<1x8x256xf32>
    %305 = vector.shape_cast %304 : vector<1x8x256xf32> to vector<8x256xf32>
    %306 = vector.shape_cast %303 : vector<8x256xf32> to vector<1x8x256xf32>
    tpu.vector_store %arg4[%c0_158, %c24_159, %c0_160], %306 {strides = array<i32>} : memref<1x32x256xf32, #tpu.memory_space<vmem>>, vector<1x8x256xf32>,
    %c0_161 = arith.constant 0 : index
    %c24_162 = arith.constant 24 : index
    %c0_163 = arith.constant 0 : index
    %307 = vector.load %arg5[%c0_161, %c24_162, %c0_163] : memref<1x32x256xf32, #tpu.memory_space<vmem>>, vector<1x8x256xf32>
    %308 = vector.shape_cast %307 : vector<1x8x256xf32> to vector<8x256xf32>
    %309 = vector.shape_cast %301 : vector<8x256xf32> to vector<1x8x256xf32>
    tpu.vector_store %arg5[%c0_161, %c24_162, %c0_163], %309 {strides = array<i32>} : memref<1x32x256xf32, #tpu.memory_space<vmem>>, vector<1x8x256xf32>,
    return
  }
  func.func @transform_0(%arg0: i32) -> (i32, i32, i32, i32) {
    %c0_i32 = arith.constant 0 : i32
    %c0_i32_0 = arith.constant 0 : i32
    %c0_i32_1 = arith.constant 0 : i32
    %c0_i32_2 = arith.constant 0 : i32
    return %arg0, %c0_i32, %c0_i32_0, %c0_i32_1 : i32, i32, i32, i32
  }
  func.func @transform_1(%arg0: i32) -> (i32, i32, i32) {
    %c0_i32 = arith.constant 0 : i32
    %c0_i32_0 = arith.constant 0 : i32
    %c0_i32_1 = arith.constant 0 : i32
    return %arg0, %c0_i32, %c0_i32_0 : i32, i32, i32
  }
  func.func @transform_2(%arg0: i32) -> (i32, i32) {
    %c0_i32 = arith.constant 0 : i32
    %c0_i32_0 = arith.constant 0 : i32
    %c0_i32_1 = arith.constant 0 : i32
    return %c0_i32, %c0_i32_0 : i32, i32
  }
  func.func @transform_3(%arg0: i32) -> (i32, i32, i32) {
    %c0_i32 = arith.constant 0 : i32
    %c0_i32_0 = arith.constant 0 : i32
    %c0_i32_1 = arith.constant 0 : i32
    return %arg0, %c0_i32, %c0_i32_0 : i32, i32, i32
  }
  func.func @transform_4(%arg0: i32) -> (i32, i32, i32) {
    %c0_i32 = arith.constant 0 : i32
    %c0_i32_0 = arith.constant 0 : i32
    %c0_i32_1 = arith.constant 0 : i32
    return %arg0, %c0_i32, %c0_i32_0 : i32, i32, i32
  }
}

</mosaic_0001>

<bundles_post_ra>
// kernel: mvs_layernorm_convlstm_cell.1
= control target key start
LH: loop header
LB: loop body
LE: loop exit
PB: predicated region body
PF: predicated region fallthrough
CT: control target
= control target key end

     0   :  { %s3761_s15 = smov 0   ;;  %s5753_s0 = inlined_call_operand.vmem [shape: f32[2,18,18,36], index: 0, kind: input, shape index: {}]   ;;  %s5754_s1 = inlined_call_operand.vmem [shape: f32[2,32,256], index: 1, kind: input, shape index: {}]   ;;  %s5755_s2 = inlined_call_operand.vmem [shape: f32[128,1152], index: 2, kind: input, shape index: {}]   ;;  %s5756_s3 = inlined_call_operand.vmem [shape: f32[2,32,256], index: 3, kind: output, shape index: {0}]   ;;  %s5757_s4 = inlined_call_operand.vmem [shape: f32[2,32,256], index: 4, kind: output, shape index: {1}]  }
   0x1 LB: > { %s2844_s16 = sadd.s32 4294967295, %s3733_s15   ;;  %p2848_p0 = scmp.ge.s32.totalorder %s3733_s15, 1  ;;  %s3733_s15 = sphi %s3761_s15, %s15_s15  }
   0x2   : > { %p175_p1 = scmp.lt.s32.totalorder %s3733_s15, 3 }
   0x4   : > { %p176_p2 = pnand %p2848_p0, %p175_p1 }
   0x5   : > { %p211_p3 = scmp.lt.s32.totalorder (!%p176_p2), %s2844_s16, 1  ;;  %vm263_vm0 = vcmask (!%p176_p2), 293888   ;;  %vm296_vm1 = vcmask (!%p176_p2), 1047840   ;;  %v3735_v6 = vmov (!%p176_p2), 0.0  }
   0x6   : > { %179 = sbr.rel (%p176_p2) target bundleno = 1318 (0x526), region = 32 }
   0xd   : > { %s5759_s16 = smov (!%p211_p3, %s2844_s16), 1 }
   0xe   : > { %s3573_s17 = smul.u32 432, %s5759_s16  ;;  %s5642_s26 = sshll.u32 %s5759_s16, 6 }
   0xf   : > { %s5650_s29 = scalar_lea.vmem %s5754_s1, %s5642_s26  ;;  %s5718_s5 = scalar_lea.vmem %s5757_s4, %s5642_s26 }
  0x10   : > { %s3775_s20 = scalar_lea.vmem %s5753_s0, %s3573_s17  ;;  %s5736_s8 = scalar_lea.vmem %s5756_s3, %s5642_s26 }
  0x11   : > { %v329_v0 = vld [vmem:[%s3775_s20 + $0x1] sm:$0xff]  ;;  %v330_v1 = vld [vmem:[%s3775_s20 + $0x9] sm:$0xff]  ;;  %v2888_v7 = vld [vmem:[%s3775_s20 + $0x19] sm:$0xff] }
  0x12   : > { %v2920_v2 = vld [vmem:[%s3775_s20 + $0x1a] sm:$0xff]  ;;  %361 = vst.msk [vmem:[#allocation2 + $0x8] sm:$0xff] %vm263_vm0, %v329_v0  ;;  %362 = vst.msk [vmem:[#allocation2 + $0x50] sm:$0xff] %vm263_vm0, %v330_v1  ;;  %v2921_v3 = vld [vmem:[%s3775_s20 + $0x22] sm:$0xff] }
  0x13   : > { %746 = vst.msk [vmem:[#allocation2 + $0x28] sm:$0xff] %vm263_vm0, %v2920_v2  ;;  %v231_v4 = vld [vmem:[%s3775_s20] sm:$0xff]  ;;  %v232_v5 = vld [vmem:[%s3775_s20 + $0x8] sm:$0xff]  ;;  %747 = vst.msk [vmem:[#allocation2 + $0x70] sm:$0xff] %vm263_vm0, %v2921_v3 }
  0x14   : > { %393 = vst.msk [vmem:[#allocation2 + $0x8] sm:$0xff] %vm296_vm1, %v3735_v6  ;;  %394 = vst.msk [vmem:[#allocation2 + $0x50] sm:$0xff] %vm296_vm1, %v3735_v6  ;;  %v2889_v8 = vld [vmem:[%s3775_s20 + $0x21] sm:$0xff]  ;;  %v2922_v9 = vld [vmem:[%s3775_s20 + $0x32] sm:$0xff] }
  0x15   : > { %778 = vst.msk [vmem:[#allocation2 + $0x28] sm:$0xff] %vm296_vm1, %v3735_v6  ;;  %779 = vst.msk [vmem:[#allocation2 + $0x70] sm:$0xff] %vm296_vm1, %v3735_v6  ;;  %v2923_v10 = vld [vmem:[%s3775_s20 + $0x3a] sm:$0xff]  ;;  %v2890_v13 = vld [vmem:[%s3775_s20 + $0x31] sm:$0xff] }
  0x16   : > { %264 = vst.msk [vmem:[#allocation2] sm:$0xff] %vm263_vm0, %v231_v4  ;;  %265 = vst.msk [vmem:[#allocation2 + $0x48] sm:$0xff] %vm263_vm0, %v232_v5  ;;  %v233_v11 = vld [vmem:[%s3775_s20 + $0x18] sm:$0xff]  ;;  %v234_v12 = vld [vmem:[%s3775_s20 + $0x20] sm:$0xff] }
  0x17   : > { %297 = vst.msk [vmem:[#allocation2] sm:$0xff] %vm296_vm1, %v3735_v6  ;;  %298 = vst.msk [vmem:[#allocation2 + $0x48] sm:$0xff] %vm296_vm1, %v3735_v6  ;;  %v2891_v14 = vld [vmem:[%s3775_s20 + $0x39] sm:$0xff]  ;;  %v2924_v15 = vld [vmem:[%s3775_s20 + $0x4a] sm:$0xff] }
  0x18   : > { %650 = vst.msk [vmem:[#allocation2 + $0x20] sm:$0xff] %vm263_vm0, %v2888_v7  ;;  %651 = vst.msk [vmem:[#allocation2 + $0x68] sm:$0xff] %vm263_vm0, %v2889_v8  ;;  %v2925_v16 = vld [vmem:[%s3775_s20 + $0x52] sm:$0xff]  ;;  %v2892_v19 = vld [vmem:[%s3775_s20 + $0x49] sm:$0xff] }
  0x19   : > { %363 = vst.msk [vmem:[#allocation2 + $0x98] sm:$0xff] %vm263_vm0, %v2888_v7  ;;  %364 = vst.msk [vmem:[#allocation2 + $0xe0] sm:$0xff] %vm263_vm0, %v2889_v8  ;;  %v235_v17 = vld [vmem:[%s3775_s20 + $0x30] sm:$0xff]  ;;  %v236_v18 = vld [vmem:[%s3775_s20 + $0x38] sm:$0xff] }
  0x1a   : > { %748 = vst.msk [vmem:[#allocation2 + $0xb8] sm:$0xff] %vm263_vm0, %v2922_v9  ;;  %749 = vst.msk [vmem:[#allocation2 + $0x100] sm:$0xff] %vm263_vm0, %v2923_v10  ;;  %v2893_v20 = vld [vmem:[%s3775_s20 + $0x51] sm:$0xff]  ;;  %v2926_v21 = vld [vmem:[%s3775_s20 + $0x62] sm:$0xff] }
  0x1b   : > { %682 = vst.msk [vmem:[#allocation2 + $0x20] sm:$0xff] %vm296_vm1, %v3735_v6  ;;  %683 = vst.msk [vmem:[#allocation2 + $0x68] sm:$0xff] %vm296_vm1, %v3735_v6  ;;  %v2927_v22 = vld [vmem:[%s3775_s20 + $0x6a] sm:$0xff]  ;;  %v2894_v25 = vld [vmem:[%s3775_s20 + $0x61] sm:$0xff] }
  0x1c   : > { %395 = vst.msk [vmem:[#allocation2 + $0x98] sm:$0xff] %vm296_vm1, %v3735_v6  ;;  %396 = vst.msk [vmem:[#allocation2 + $0xe0] sm:$0xff] %vm296_vm1, %v3735_v6  ;;  %v237_v23 = vld [vmem:[%s3775_s20 + $0x48] sm:$0xff]  ;;  %v238_v24 = vld [vmem:[%s3775_s20 + $0x50] sm:$0xff] }
  0x1d   : > { %780 = vst.msk [vmem:[#allocation2 + $0xb8] sm:$0xff] %vm296_vm1, %v3735_v6  ;;  %781 = vst.msk [vmem:[#allocation2 + $0x100] sm:$0xff] %vm296_vm1, %v3735_v6  ;;  %v2895_v26 = vld [vmem:[%s3775_s20 + $0x69] sm:$0xff]  ;;  %v2928_v27 = vld [vmem:[%s3775_s20 + $0x7a] sm:$0xff] }
  0x1e   : > { %266 = vst.msk [vmem:[#allocation2 + $0x90] sm:$0xff] %vm263_vm0, %v233_v11  ;;  %267 = vst.msk [vmem:[#allocation2 + $0xd8] sm:$0xff] %vm263_vm0, %v234_v12  ;;  %v1244_v28 = vld [vmem:[#allocation2 + $0x8] sm:$0xff]  ;;  %v1253_v29 = vld [vmem:[#allocation2 + $0x50] sm:$0xff] }
  0x1f   : > { %299 = vst.msk [vmem:[#allocation2 + $0x90] sm:$0xff] %vm296_vm1, %v3735_v6  ;;  %300 = vst.msk [vmem:[#allocation2 + $0xd8] sm:$0xff] %vm296_vm1, %v3735_v6  ;;  %v1248_v30 = vld [vmem:[#allocation2 + $0x28] sm:$0xff]  ;;  %v3141_v31 = vpack.c.bf16 %v1253_v29, %v1244_v28  ;;  %v1257_v32 = vld [vmem:[#allocation2 + $0x70] sm:$0xff] }
  0x20   : > { %652 = vst.msk [vmem:[#allocation2 + $0xb0] sm:$0xff] %vm263_vm0, %v2890_v13  ;;  %653 = vst.msk [vmem:[#allocation2 + $0xf8] sm:$0xff] %vm263_vm0, %v2891_v14  ;;  %v1243_v33 = vld [vmem:[#allocation2] sm:$0xff]  ;;  %v1252_v34 = vld [vmem:[#allocation2 + $0x48] sm:$0xff]  ;;  %v3269_v35 = vpack.c.bf16 %v1257_v32, %v1248_v30 }
  0x21   : > { %365 = vst.msk [vmem:[#allocation2 + $0x128] sm:$0xff] %vm263_vm0, %v2890_v13  ;;  %366 = vst.msk [vmem:[#allocation2 + $0x170] sm:$0xff] %vm263_vm0, %v2891_v14  ;;  %v3143_v36 = vpack.c.bf16 %v1252_v34, %v1243_v33  ;;  %3142 = vmatprep.subr.bf16.mxu1 %v3141_v31  ;;  %v2929_v60 = vld [vmem:[%s3775_s20 + $0x82] sm:$0xff]  ;;  %v2896_v3 = vld [vmem:[%s3775_s20 + $0x79] sm:$0xff] }
  0x22   : > { %750 = vst.msk [vmem:[#allocation2 + $0x148] sm:$0xff] %vm263_vm0, %v2924_v15  ;;  %751 = vst.msk [vmem:[#allocation2 + $0x190] sm:$0xff] %vm263_vm0, %v2925_v16  ;;  %v1247_v37 = vld [vmem:[#allocation2 + $0x20] sm:$0xff]  ;;  %v1256_v38 = vld [vmem:[#allocation2 + $0x68] sm:$0xff]  ;;  %3270 = vmatprep.subr.bf16.mxu0 %v3269_v35 }
  0x23   : > { %684 = vst.msk [vmem:[#allocation2 + $0xb0] sm:$0xff] %vm296_vm1, %v3735_v6  ;;  %685 = vst.msk [vmem:[#allocation2 + $0xf8] sm:$0xff] %vm296_vm1, %v3735_v6  ;;  %v1262_v39 = vld [vmem:[#allocation2 + $0x98] sm:$0xff]  ;;  %v3271_v40 = vpack.c.bf16 %v1256_v38, %v1247_v37  ;;  %v1271_v41 = vld [vmem:[#allocation2 + $0xe0] sm:$0xff]  ;;  %3144 = vmatpush1.bf16.xpose.msra.mxu1 %v3143_v36 }
  0x24   : > { %397 = vst.msk [vmem:[#allocation2 + $0x128] sm:$0xff] %vm296_vm1, %v3735_v6  ;;  %398 = vst.msk [vmem:[#allocation2 + $0x170] sm:$0xff] %vm296_vm1, %v3735_v6  ;;  %v1266_v42 = vld [vmem:[#allocation2 + $0xb8] sm:$0xff]  ;;  %v1275_v43 = vld [vmem:[#allocation2 + $0x100] sm:$0xff]  ;;  %v3145_v44 = vpack.c.bf16 %v1271_v41, %v1262_v39 }
  0x25   : > { %782 = vst.msk [vmem:[#allocation2 + $0x148] sm:$0xff] %vm296_vm1, %v3735_v6  ;;  %783 = vst.msk [vmem:[#allocation2 + $0x190] sm:$0xff] %vm296_vm1, %v3735_v6  ;;  %v3273_v45 = vpack.c.bf16 %v1275_v43, %v1266_v42  ;;  %3272 = vmatpush1.bf16.xpose.msra.mxu0 %v3271_v40  ;;  %v239_v1 = vld [vmem:[%s3775_s20 + $0x60] sm:$0xff]  ;;  %v240_v2 = vld [vmem:[%s3775_s20 + $0x68] sm:$0xff] }
  0x26   : > { %268 = vst.msk [vmem:[#allocation2 + $0x120] sm:$0xff] %vm263_vm0, %v235_v17  ;;  %269 = vst.msk [vmem:[#allocation2 + $0x168] sm:$0xff] %vm263_vm0, %v236_v18  ;;  %v1261_v46 = vld [vmem:[#allocation2 + $0x90] sm:$0xff]  ;;  %v1270_v47 = vld [vmem:[#allocation2 + $0xd8] sm:$0xff]  ;;  %3146 = vmatprep.subr.bf16.mxu1 %v3145_v44 }
  0x27   : > { %301 = vst.msk [vmem:[#allocation2 + $0x120] sm:$0xff] %vm296_vm1, %v3735_v6  ;;  %302 = vst.msk [vmem:[#allocation2 + $0x168] sm:$0xff] %vm296_vm1, %v3735_v6  ;;  %3274 = vmatprep.subr.bf16.mxu0 %v3273_v45  ;;  %v3147_v54 = vpack.c.bf16 %v1270_v47, %v1261_v46  ;;  %v2897_v7 = vld [vmem:[%s3775_s20 + $0x81] sm:$0xff]  ;;  %v2930_v8 = vld [vmem:[%s3775_s20 + $0x92] sm:$0xff] }
  0x28   : > { %654 = vst.msk [vmem:[#allocation2 + $0x140] sm:$0xff] %vm263_vm0, %v2892_v19  ;;  %655 = vst.msk [vmem:[#allocation2 + $0x188] sm:$0xff] %vm263_vm0, %v2893_v20  ;;  %v2931_v9 = vld [vmem:[%s3775_s20 + $0x9a] sm:$0xff]  ;;  %v2898_v12 = vld [vmem:[%s3775_s20 + $0x91] sm:$0xff] }
  0x29   : > { %367 = vst.msk [vmem:[#allocation2 + $0x1b8] sm:$0xff] %vm263_vm0, %v2892_v19  ;;  %368 = vst.msk [vmem:[#allocation2 + $0x200] sm:$0xff] %vm263_vm0, %v2893_v20  ;;  %v241_v10 = vld [vmem:[%s3775_s20 + $0x78] sm:$0xff]  ;;  %v242_v11 = vld [vmem:[%s3775_s20 + $0x80] sm:$0xff] }
  0x2a   : > { %752 = vst.msk [vmem:[#allocation2 + $0x1d8] sm:$0xff] %vm263_vm0, %v2926_v21  ;;  %753 = vst.msk [vmem:[#allocation2 + $0x220] sm:$0xff] %vm263_vm0, %v2927_v22  ;;  %v1265_v48 = vld [vmem:[#allocation2 + $0xb0] sm:$0xff]  ;;  %v1274_v49 = vld [vmem:[#allocation2 + $0xf8] sm:$0xff] }
  0x2b   : > { %686 = vst.msk [vmem:[#allocation2 + $0x140] sm:$0xff] %vm296_vm1, %v3735_v6  ;;  %687 = vst.msk [vmem:[#allocation2 + $0x188] sm:$0xff] %vm296_vm1, %v3735_v6  ;;  %v1280_v50 = vld [vmem:[#allocation2 + $0x128] sm:$0xff]  ;;  %v1289_v51 = vld [vmem:[#allocation2 + $0x170] sm:$0xff]  ;;  %v3275_v55 = vpack.c.bf16 %v1274_v49, %v1265_v48  ;;  %3148 = vmatpush1.bf16.xpose.msra.mxu1 %v3147_v54 }
  0x2c   : > { %399 = vst.msk [vmem:[#allocation2 + $0x1b8] sm:$0xff] %vm296_vm1, %v3735_v6  ;;  %400 = vst.msk [vmem:[#allocation2 + $0x200] sm:$0xff] %vm296_vm1, %v3735_v6  ;;  %v1284_v52 = vld [vmem:[#allocation2 + $0x148] sm:$0xff]  ;;  %v1293_v53 = vld [vmem:[#allocation2 + $0x190] sm:$0xff]  ;;  %v3149_v56 = vpack.c.bf16 %v1289_v51, %v1280_v50 }
  0x2d   : > { %784 = vst.msk [vmem:[#allocation2 + $0x1d8] sm:$0xff] %vm296_vm1, %v3735_v6  ;;  %785 = vst.msk [vmem:[#allocation2 + $0x220] sm:$0xff] %vm296_vm1, %v3735_v6  ;;  %v3277_v57 = vpack.c.bf16 %v1293_v53, %v1284_v52  ;;  %3276 = vmatpush1.bf16.xpose.msra.mxu0 %v3275_v55  ;;  %v2899_v13 = vld [vmem:[%s3775_s20 + $0x99] sm:$0xff]  ;;  %v2932_v14 = vld [vmem:[%s3775_s20 + $0xaa] sm:$0xff] }
  0x2e   : > { %270 = vst.msk [vmem:[#allocation2 + $0x1b0] sm:$0xff] %vm263_vm0, %v237_v23  ;;  %271 = vst.msk [vmem:[#allocation2 + $0x1f8] sm:$0xff] %vm263_vm0, %v238_v24  ;;  %v3909_v58 = vld [vmem:[#allocation2 + $0x120] sm:$0xff]  ;;  %v3911_v59 = vld [vmem:[#allocation2 + $0x168] sm:$0xff]  ;;  %3150 = vmatprep.subr.bf16.mxu1 %v3149_v56 }
  0x2f   : > { %303 = vst.msk [vmem:[#allocation2 + $0x1b0] sm:$0xff] %vm296_vm1, %v3735_v6  ;;  %304 = vst.msk [vmem:[#allocation2 + $0x1f8] sm:$0xff] %vm296_vm1, %v3735_v6  ;;  %3278 = vmatprep.subr.bf16.mxu0 %v3277_v57  ;;  %v2933_v15 = vld [vmem:[%s3775_s20 + $0xb2] sm:$0xff]  ;;  %v3151_v16 = vpack.c.bf16 %v3911_v59, %v3909_v58  ;;  %v2900_v19 = vld [vmem:[%s3775_s20 + $0xa9] sm:$0xff] }
  0x30   : > { %656 = vst.msk [vmem:[#allocation2 + $0x1d0] sm:$0xff] %vm263_vm0, %v2894_v25  ;;  %657 = vst.msk [vmem:[#allocation2 + $0x218] sm:$0xff] %vm263_vm0, %v2895_v26  ;;  %v243_v17 = vld [vmem:[%s3775_s20 + $0x90] sm:$0xff]  ;;  %v244_v18 = vld [vmem:[%s3775_s20 + $0x98] sm:$0xff] }
  0x31   : > { %369 = vst.msk [vmem:[#allocation2 + $0x248] sm:$0xff] %vm263_vm0, %v2894_v25  ;;  %370 = vst.msk [vmem:[#allocation2 + $0x290] sm:$0xff] %vm263_vm0, %v2895_v26  ;;  %v2901_v22 = vld [vmem:[%s3775_s20 + $0xb1] sm:$0xff]  ;;  %v2934_v23 = vld [vmem:[%s3775_s20 + $0xc2] sm:$0xff] }
  0x32   : > { %754 = vst.msk [vmem:[#allocation2 + $0x268] sm:$0xff] %vm263_vm0, %v2928_v27  ;;  %v3914_v61 = vld [vmem:[#allocation2 + $0x140] sm:$0xff]  ;;  %v3916_v62 = vld [vmem:[#allocation2 + $0x188] sm:$0xff]  ;;  %755 = vst.msk [vmem:[#allocation2 + $0x2b0] sm:$0xff] %vm263_vm0, %v2929_v60 }
  0x33   : > { %688 = vst.msk [vmem:[#allocation2 + $0x1d0] sm:$0xff] %vm296_vm1, %v3735_v6  ;;  %689 = vst.msk [vmem:[#allocation2 + $0x218] sm:$0xff] %vm296_vm1, %v3735_v6  ;;  %v3918_v63 = vld [vmem:[#allocation2 + $0x1b8] sm:$0xff]  ;;  %v3920_v0 = vld [vmem:[#allocation2 + $0x200] sm:$0xff]  ;;  %v3279_v20 = vpack.c.bf16 %v3916_v62, %v3914_v61  ;;  %3152 = vmatpush1.bf16.xpose.msra.mxu1 %v3151_v16 }
  0x34   : > { %401 = vst.msk [vmem:[#allocation2 + $0x248] sm:$0xff] %vm296_vm1, %v3735_v6  ;;  %402 = vst.msk [vmem:[#allocation2 + $0x290] sm:$0xff] %vm296_vm1, %v3735_v6  ;;  %v3926_v4 = vld [vmem:[#allocation2 + $0x1d8] sm:$0xff]  ;;  %v3928_v5 = vld [vmem:[#allocation2 + $0x220] sm:$0xff]  ;;  %v3153_v21 = vpack.c.bf16 %v3920_v0, %v3918_v63 }
  0x35   : > { %786 = vst.msk [vmem:[#allocation2 + $0x268] sm:$0xff] %vm296_vm1, %v3735_v6  ;;  %787 = vst.msk [vmem:[#allocation2 + $0x2b0] sm:$0xff] %vm296_vm1, %v3735_v6  ;;  %v2935_v24 = vld [vmem:[%s3775_s20 + $0xca] sm:$0xff]  ;;  %v3281_v25 = vpack.c.bf16 %v3928_v5, %v3926_v4  ;;  %v2902_v28 = vld [vmem:[%s3775_s20 + $0xc1] sm:$0xff]  ;;  %3280 = vmatpush1.bf16.xpose.msra.mxu0 %v3279_v20 }
  0x36   : > { %272 = vst.msk [vmem:[#allocation2 + $0x240] sm:$0xff] %vm263_vm0, %v239_v1  ;;  %273 = vst.msk [vmem:[#allocation2 + $0x288] sm:$0xff] %vm263_vm0, %v240_v2  ;;  %v245_v26 = vld [vmem:[%s3775_s20 + $0xa8] sm:$0xff]  ;;  %v246_v27 = vld [vmem:[%s3775_s20 + $0xb0] sm:$0xff]  ;;  %3154 = vmatprep.subr.bf16.mxu1 %v3153_v21 }
  0x37   : > { %658 = vst.msk [vmem:[#allocation2 + $0x260] sm:$0xff] %vm263_vm0, %v2896_v3  ;;  %371 = vst.msk [vmem:[#allocation2 + $0x2d8] sm:$0xff] %vm263_vm0, %v2896_v3  ;;  %v2903_v29 = vld [vmem:[%s3775_s20 + $0xc9] sm:$0xff]  ;;  %v2936_v30 = vld [vmem:[%s3775_s20 + $0xda] sm:$0xff]  ;;  %3282 = vmatprep.subr.bf16.mxu0 %v3281_v25 }
  0x38   : > { %305 = vst.msk [vmem:[#allocation2 + $0x240] sm:$0xff] %vm296_vm1, %v3735_v6  ;;  %306 = vst.msk [vmem:[#allocation2 + $0x288] sm:$0xff] %vm296_vm1, %v3735_v6  ;;  %v2937_v31 = vld [vmem:[%s3775_s20 + $0xe2] sm:$0xff]  ;;  %v1297_v34 = vld [vmem:[#allocation2 + $0x1b0] sm:$0xff] }
  0x39   : > { %659 = vst.msk [vmem:[#allocation2 + $0x2a8] sm:$0xff] %vm263_vm0, %v2897_v7  ;;  %372 = vst.msk [vmem:[#allocation2 + $0x320] sm:$0xff] %vm263_vm0, %v2897_v7  ;;  %v247_v32 = vld [vmem:[%s3775_s20 + $0xc0] sm:$0xff]  ;;  %v248_v33 = vld [vmem:[%s3775_s20 + $0xc8] sm:$0xff] }
  0x3a   : > { %690 = vst.msk [vmem:[#allocation2 + $0x260] sm:$0xff] %vm296_vm1, %v3735_v6  ;;  %403 = vst.msk [vmem:[#allocation2 + $0x2d8] sm:$0xff] %vm296_vm1, %v3735_v6  ;;  %v1306_v35 = vld [vmem:[#allocation2 + $0x1f8] sm:$0xff]  ;;  %v1301_v36 = vld [vmem:[#allocation2 + $0x1d0] sm:$0xff] }
  0x3b   : > { %756 = vst.msk [vmem:[#allocation2 + $0x2f8] sm:$0xff] %vm263_vm0, %v2930_v8  ;;  %757 = vst.msk [vmem:[#allocation2 + $0x340] sm:$0xff] %vm263_vm0, %v2931_v9  ;;  %v1310_v37 = vld [vmem:[#allocation2 + $0x218] sm:$0xff]  ;;  %v1316_v38 = vld [vmem:[#allocation2 + $0x248] sm:$0xff]  ;;  %v3155_v42 = vpack.c.bf16 %v1306_v35, %v1297_v34 }
  0x3c   : > { %691 = vst.msk [vmem:[#allocation2 + $0x2a8] sm:$0xff] %vm296_vm1, %v3735_v6  ;;  %404 = vst.msk [vmem:[#allocation2 + $0x320] sm:$0xff] %vm296_vm1, %v3735_v6  ;;  %v1325_v39 = vld [vmem:[#allocation2 + $0x290] sm:$0xff]  ;;  %v1320_v40 = vld [vmem:[#allocation2 + $0x268] sm:$0xff]  ;;  %v3283_v43 = vpack.c.bf16 %v1310_v37, %v1301_v36 }
  0x3d   : > { %788 = vst.msk [vmem:[#allocation2 + $0x2f8] sm:$0xff] %vm296_vm1, %v3735_v6  ;;  %789 = vst.msk [vmem:[#allocation2 + $0x340] sm:$0xff] %vm296_vm1, %v3735_v6  ;;  %v1329_v41 = vld [vmem:[#allocation2 + $0x2b0] sm:$0xff]  ;;  %v3157_v44 = vpack.c.bf16 %v1325_v39, %v1316_v38  ;;  %3156 = vmatpush1.bf16.xpose.msra.mxu1 %v3155_v42  ;;  %v2904_v55 = vld [vmem:[%s3775_s20 + $0xd9] sm:$0xff] }
  0x3e   : > { %274 = vst.msk [vmem:[#allocation2 + $0x2d0] sm:$0xff] %vm263_vm0, %v241_v10  ;;  %275 = vst.msk [vmem:[#allocation2 + $0x318] sm:$0xff] %vm263_vm0, %v242_v11  ;;  %v3285_v45 = vpack.c.bf16 %v1329_v41, %v1320_v40  ;;  %3284 = vmatpush1.bf16.xpose.msra.mxu0 %v3283_v43  ;;  %v2905_v56 = vld [vmem:[%s3775_s20 + $0xe1] sm:$0xff]  ;;  %v2938_v59 = vld [vmem:[%s3775_s20 + $0xf2] sm:$0xff] }
  0x3f   : > { %660 = vst.msk [vmem:[#allocation2 + $0x2f0] sm:$0xff] %vm263_vm0, %v2898_v12  ;;  %373 = vst.msk [vmem:[#allocation2 + $0x368] sm:$0xff] %vm263_vm0, %v2898_v12  ;;  %3158 = vmatprep.subr.bf16.mxu1 %v3157_v44  ;;  %v1315_v46 = vld [vmem:[#allocation2 + $0x240] sm:$0xff]  ;;  %v1324_v47 = vld [vmem:[#allocation2 + $0x288] sm:$0xff] }
  0x40   : > { %307 = vst.msk [vmem:[#allocation2 + $0x2d0] sm:$0xff] %vm296_vm1, %v3735_v6  ;;  %308 = vst.msk [vmem:[#allocation2 + $0x318] sm:$0xff] %vm296_vm1, %v3735_v6  ;;  %3286 = vmatprep.subr.bf16.mxu0 %v3285_v45  ;;  %v3159_v54 = vpack.c.bf16 %v1324_v47, %v1315_v46  ;;  %v2939_v60 = vld [vmem:[%s3775_s20 + $0xfa] sm:$0xff]  ;;  %v2906_v0 = vld [vmem:[%s3775_s20 + $0xf1] sm:$0xff] }
  0x41   : > { %661 = vst.msk [vmem:[#allocation2 + $0x338] sm:$0xff] %vm263_vm0, %v2899_v13  ;;  %374 = vst.msk [vmem:[#allocation2 + $0x3b0] sm:$0xff] %vm263_vm0, %v2899_v13  ;;  %v1319_v48 = vld [vmem:[#allocation2 + $0x260] sm:$0xff]  ;;  %v1334_v50 = vld [vmem:[#allocation2 + $0x2d8] sm:$0xff] }
  0x42   : > { %692 = vst.msk [vmem:[#allocation2 + $0x2f0] sm:$0xff] %vm296_vm1, %v3735_v6  ;;  %405 = vst.msk [vmem:[#allocation2 + $0x368] sm:$0xff] %vm296_vm1, %v3735_v6  ;;  %v249_v61 = vld [vmem:[%s3775_s20 + $0xd8] sm:$0xff]  ;;  %v250_v63 = vld [vmem:[%s3775_s20 + $0xe0] sm:$0xff] }
  0x43   : > { %758 = vst.msk [vmem:[#allocation2 + $0x388] sm:$0xff] %vm263_vm0, %v2932_v14  ;;  %759 = vst.msk [vmem:[#allocation2 + $0x3d0] sm:$0xff] %vm263_vm0, %v2933_v15  ;;  %v1328_v49 = vld [vmem:[#allocation2 + $0x2a8] sm:$0xff]  ;;  %v1343_v51 = vld [vmem:[#allocation2 + $0x320] sm:$0xff] }
  0x44   : > { %693 = vst.msk [vmem:[#allocation2 + $0x338] sm:$0xff] %vm296_vm1, %v3735_v6  ;;  %406 = vst.msk [vmem:[#allocation2 + $0x3b0] sm:$0xff] %vm296_vm1, %v3735_v6  ;;  %v4065_v52 = vld [vmem:[#allocation2 + $0x2f8] sm:$0xff]  ;;  %v4067_v53 = vld [vmem:[#allocation2 + $0x340] sm:$0xff]  ;;  %v3287_v57 = vpack.c.bf16 %v1328_v49, %v1319_v48  ;;  %v3161_v58 = vpack.c.bf16 %v1343_v51, %v1334_v50 }
  0x45   : > { %790 = vst.msk [vmem:[#allocation2 + $0x388] sm:$0xff] %vm296_vm1, %v3735_v6  ;;  %791 = vst.msk [vmem:[#allocation2 + $0x3d0] sm:$0xff] %vm296_vm1, %v3735_v6  ;;  %v3289_v62 = vpack.c.bf16 %v4067_v53, %v4065_v52  ;;  %v2907_v1 = vld [vmem:[%s3775_s20 + $0xf9] sm:$0xff]  ;;  %v2940_v4 = vld [vmem:[%s3775_s20 + $0x10a] sm:$0xff]  ;;  %3160 = vmatpush1.bf16.xpose.msra.mxu1 %v3159_v54 }
  0x46   : > { %276 = vst.msk [vmem:[#allocation2 + $0x360] sm:$0xff] %vm263_vm0, %v243_v17  ;;  %277 = vst.msk [vmem:[#allocation2 + $0x3a8] sm:$0xff] %vm263_vm0, %v244_v18  ;;  %v2941_v5 = vld [vmem:[%s3775_s20 + $0x112] sm:$0xff]  ;;  %v2908_v13 = vld [vmem:[%s3775_s20 + $0x109] sm:$0xff]  ;;  %3288 = vmatpush1.bf16.xpose.msra.mxu0 %v3287_v57  ;;  %3162 = vmatprep.subr.bf16.mxu1 %v3161_v58 }
  0x47   : > { %662 = vst.msk [vmem:[#allocation2 + $0x380] sm:$0xff] %vm263_vm0, %v2900_v19  ;;  %375 = vst.msk [vmem:[#allocation2 + $0x3f8] sm:$0xff] %vm263_vm0, %v2900_v19  ;;  %v4094_v2 = vld [vmem:[#allocation2 + $0x2d0] sm:$0xff]  ;;  %v4096_v3 = vld [vmem:[#allocation2 + $0x318] sm:$0xff]  ;;  %3290 = vmatprep.subr.bf16.mxu0 %v3289_v62 }
  0x48   : > { %309 = vst.msk [vmem:[#allocation2 + $0x360] sm:$0xff] %vm296_vm1, %v3735_v6  ;;  %310 = vst.msk [vmem:[#allocation2 + $0x3a8] sm:$0xff] %vm296_vm1, %v3735_v6  ;;  %v251_v7 = vld [vmem:[%s3775_s20 + $0xf0] sm:$0xff]  ;;  %v252_v12 = vld [vmem:[%s3775_s20 + $0xf8] sm:$0xff] }
  0x49   : > { %663 = vst.msk [vmem:[#allocation2 + $0x3c8] sm:$0xff] %vm263_vm0, %v2901_v22  ;;  %376 = vst.msk [vmem:[#allocation2 + $0x440] sm:$0xff] %vm263_vm0, %v2901_v22  ;;  %v4112_v8 = vld [vmem:[#allocation2 + $0x2f0] sm:$0xff]  ;;  %v4116_v10 = vld [vmem:[#allocation2 + $0x368] sm:$0xff] }
  0x4a   : > { %694 = vst.msk [vmem:[#allocation2 + $0x380] sm:$0xff] %vm296_vm1, %v3735_v6  ;;  %407 = vst.msk [vmem:[#allocation2 + $0x3f8] sm:$0xff] %vm296_vm1, %v3735_v6  ;;  %v2909_v14 = vld [vmem:[%s3775_s20 + $0x111] sm:$0xff]  ;;  %v2942_v17 = vld [vmem:[%s3775_s20 + $0x122] sm:$0xff] }
  0x4b   : > { %760 = vst.msk [vmem:[#allocation2 + $0x418] sm:$0xff] %vm263_vm0, %v2934_v23  ;;  %761 = vst.msk [vmem:[#allocation2 + $0x460] sm:$0xff] %vm263_vm0, %v2935_v24  ;;  %v4114_v9 = vld [vmem:[#allocation2 + $0x338] sm:$0xff]  ;;  %v4118_v11 = vld [vmem:[#allocation2 + $0x3b0] sm:$0xff] }
  0x4c   : > { %695 = vst.msk [vmem:[#allocation2 + $0x3c8] sm:$0xff] %vm296_vm1, %v3735_v6  ;;  %408 = vst.msk [vmem:[#allocation2 + $0x440] sm:$0xff] %vm296_vm1, %v3735_v6  ;;  %v4136_v15 = vld [vmem:[#allocation2 + $0x388] sm:$0xff]  ;;  %v4138_v16 = vld [vmem:[#allocation2 + $0x3d0] sm:$0xff] }
  0x4d   : > { %792 = vst.msk [vmem:[#allocation2 + $0x418] sm:$0xff] %vm296_vm1, %v3735_v6  ;;  %793 = vst.msk [vmem:[#allocation2 + $0x460] sm:$0xff] %vm296_vm1, %v3735_v6  ;;  %v2943_v18 = vld [vmem:[%s3775_s20 + $0x12a] sm:$0xff]  ;;  %v2910_v21 = vld [vmem:[%s3775_s20 + $0x121] sm:$0xff] }
  0x4e   : > { %278 = vst.msk [vmem:[#allocation2 + $0x3f0] sm:$0xff] %vm263_vm0, %v245_v26  ;;  %279 = vst.msk [vmem:[#allocation2 + $0x438] sm:$0xff] %vm263_vm0, %v246_v27  ;;  %v253_v19 = vld [vmem:[%s3775_s20 + $0x108] sm:$0xff]  ;;  %v254_v20 = vld [vmem:[%s3775_s20 + $0x110] sm:$0xff]  ;;  %v3163_v26 = vpack.c.bf16 %v4096_v3, %v4094_v2 }
  0x4f   : > { %664 = vst.msk [vmem:[#allocation2 + $0x410] sm:$0xff] %vm263_vm0, %v2902_v28  ;;  %377 = vst.msk [vmem:[#allocation2 + $0x488] sm:$0xff] %vm263_vm0, %v2902_v28  ;;  %v2911_v22 = vld [vmem:[%s3775_s20 + $0x129] sm:$0xff]  ;;  %v2944_v23 = vld [vmem:[%s3775_s20 + $0x13a] sm:$0xff] }
  0x50   : > { %311 = vst.msk [vmem:[#allocation2 + $0x3f0] sm:$0xff] %vm296_vm1, %v3735_v6  ;;  %312 = vst.msk [vmem:[#allocation2 + $0x438] sm:$0xff] %vm296_vm1, %v3735_v6  ;;  %v2945_v24 = vld [vmem:[%s3775_s20 + $0x142] sm:$0xff]  ;;  %v2912_v28 = vld [vmem:[%s3775_s20 + $0x139] sm:$0xff]  ;;  %3164 = vmatpush1.bf16.xpose.msra.mxu1 %v3163_v26 }
  0x51   : > { %665 = vst.msk [vmem:[#allocation2 + $0x458] sm:$0xff] %vm263_vm0, %v2903_v29  ;;  %378 = vst.msk [vmem:[#allocation2 + $0x4d0] sm:$0xff] %vm263_vm0, %v2903_v29  ;;  %v255_v25 = vld [vmem:[%s3775_s20 + $0x120] sm:$0xff]  ;;  %v256_v27 = vld [vmem:[%s3775_s20 + $0x128] sm:$0xff] }
  0x52   : > { %696 = vst.msk [vmem:[#allocation2 + $0x410] sm:$0xff] %vm296_vm1, %v3735_v6  ;;  %409 = vst.msk [vmem:[#allocation2 + $0x488] sm:$0xff] %vm296_vm1, %v3735_v6  ;;  %v2913_v29 = vld [vmem:[%s3775_s20 + $0x141] sm:$0xff]  ;;  %v1370_v37 = vld [vmem:[#allocation2 + $0x3f8] sm:$0xff] }
  0x53   : > { %762 = vst.msk [vmem:[#allocation2 + $0x4a8] sm:$0xff] %vm263_vm0, %v2936_v30  ;;  %763 = vst.msk [vmem:[#allocation2 + $0x4f0] sm:$0xff] %vm263_vm0, %v2937_v31  ;;  %v3291_v30 = vpack.c.bf16 %v4114_v9, %v4112_v8  ;;  %v3165_v31 = vpack.c.bf16 %v4118_v11, %v4116_v10  ;;  %v1360_v34 = vld [vmem:[#allocation2 + $0x3a8] sm:$0xff]  ;;  %v1355_v35 = vld [vmem:[#allocation2 + $0x380] sm:$0xff] }
  0x54   : > { %697 = vst.msk [vmem:[#allocation2 + $0x458] sm:$0xff] %vm296_vm1, %v3735_v6  ;;  %410 = vst.msk [vmem:[#allocation2 + $0x4d0] sm:$0xff] %vm296_vm1, %v3735_v6  ;;  %v1364_v36 = vld [vmem:[#allocation2 + $0x3c8] sm:$0xff]  ;;  %v1379_v38 = vld [vmem:[#allocation2 + $0x440] sm:$0xff] }
  0x55   : > { %794 = vst.msk [vmem:[#allocation2 + $0x4a8] sm:$0xff] %vm296_vm1, %v3735_v6  ;;  %795 = vst.msk [vmem:[#allocation2 + $0x4f0] sm:$0xff] %vm296_vm1, %v3735_v6  ;;  %3292 = vmatpush1.bf16.xpose.msra.mxu0 %v3291_v30  ;;  %3166 = vmatprep.subr.bf16.mxu1 %v3165_v31  ;;  %v1374_v39 = vld [vmem:[#allocation2 + $0x418] sm:$0xff]  ;;  %v1383_v40 = vld [vmem:[#allocation2 + $0x460] sm:$0xff]  ;;  %v3295_v42 = vpack.c.bf16 %v1364_v36, %v1355_v35  ;;  %v3169_v43 = vpack.c.bf16 %v1379_v38, %v1370_v37 }
  0x56   : > { %280 = vst.msk [vmem:[#allocation2 + $0x480] sm:$0xff] %vm263_vm0, %v247_v32  ;;  %281 = vst.msk [vmem:[#allocation2 + $0x4c8] sm:$0xff] %vm263_vm0, %v248_v33  ;;  %v3293_v32 = vpack.c.bf16 %v4138_v16, %v4136_v15  ;;  %v1351_v33 = vld [vmem:[#allocation2 + $0x360] sm:$0xff]  ;;  %v3297_v44 = vpack.c.bf16 %v1383_v40, %v1374_v39  ;;  %v2946_v53 = vld [vmem:[%s3775_s20 + $0x152] sm:$0xff] }
  0x57   : > { %313 = vst.msk [vmem:[#allocation2 + $0x480] sm:$0xff] %vm296_vm1, %v3735_v6  ;;  %314 = vst.msk [vmem:[#allocation2 + $0x4c8] sm:$0xff] %vm296_vm1, %v3735_v6  ;;  %v3167_v41 = vpack.c.bf16 %v1360_v34, %v1351_v33  ;;  %v4229_v45 = vld [vmem:[#allocation2 + $0x3f0] sm:$0xff]  ;;  %v4231_v46 = vld [vmem:[#allocation2 + $0x438] sm:$0xff] }
  0x58   : > { %666 = vst.msk [vmem:[#allocation2 + $0x4a0] sm:$0xff] %vm263_vm0, %v2904_v55  ;;  %667 = vst.msk [vmem:[#allocation2 + $0x4e8] sm:$0xff] %vm263_vm0, %v2905_v56  ;;  %3294 = vmatprep.subr.bf16.mxu0 %v3293_v32  ;;  %v2947_v54 = vld [vmem:[%s3775_s20 + $0x15a] sm:$0xff]  ;;  %v2914_v57 = vld [vmem:[%s3775_s20 + $0x151] sm:$0xff]  ;;  %v3171_v62 = vpack.c.bf16 %v4231_v46, %v4229_v45 }
  0x59   : > { %379 = vst.msk [vmem:[#allocation2 + $0x518] sm:$0xff] %vm263_vm0, %v2904_v55  ;;  %380 = vst.msk [vmem:[#allocation2 + $0x560] sm:$0xff] %vm263_vm0, %v2905_v56  ;;  %3168 = vmatpush1.bf16.xpose.msra.mxu1 %v3167_v41  ;;  %v4233_v47 = vld [vmem:[#allocation2 + $0x410] sm:$0xff]  ;;  %v4237_v49 = vld [vmem:[#allocation2 + $0x488] sm:$0xff] }
  0x5a   : > { %698 = vst.msk [vmem:[#allocation2 + $0x4a0] sm:$0xff] %vm296_vm1, %v3735_v6  ;;  %699 = vst.msk [vmem:[#allocation2 + $0x4e8] sm:$0xff] %vm296_vm1, %v3735_v6  ;;  %3170 = vmatprep.subr.bf16.mxu1 %v3169_v43  ;;  %v257_v55 = vld [vmem:[%s3775_s20 + $0x138] sm:$0xff]  ;;  %v258_v56 = vld [vmem:[%s3775_s20 + $0x140] sm:$0xff] }
  0x5b   : > { %411 = vst.msk [vmem:[#allocation2 + $0x518] sm:$0xff] %vm296_vm1, %v3735_v6  ;;  %412 = vst.msk [vmem:[#allocation2 + $0x560] sm:$0xff] %vm296_vm1, %v3735_v6  ;;  %v4235_v48 = vld [vmem:[#allocation2 + $0x458] sm:$0xff]  ;;  %v4239_v50 = vld [vmem:[#allocation2 + $0x4d0] sm:$0xff] }
  0x5c   : > { %764 = vst.msk [vmem:[#allocation2 + $0x538] sm:$0xff] %vm263_vm0, %v2938_v59  ;;  %765 = vst.msk [vmem:[#allocation2 + $0x580] sm:$0xff] %vm263_vm0, %v2939_v60  ;;  %v4241_v51 = vld [vmem:[#allocation2 + $0x4a8] sm:$0xff]  ;;  %v4243_v52 = vld [vmem:[#allocation2 + $0x4f0] sm:$0xff]  ;;  %v3299_v2 = vpack.c.bf16 %v4235_v48, %v4233_v47  ;;  %v3173_v3 = vpack.c.bf16 %v4239_v50, %v4237_v49 }
  0x5d   : > { %282 = vst.msk [vmem:[#allocation2 + $0x510] sm:$0xff] %vm263_vm0, %v249_v61  ;;  %283 = vst.msk [vmem:[#allocation2 + $0x558] sm:$0xff] %vm263_vm0, %v250_v63  ;;  %3296 = vmatpush1.bf16.xpose.msra.mxu0 %v3295_v42  ;;  %v2915_v58 = vld [vmem:[%s3775_s20 + $0x159] sm:$0xff]  ;;  %v2948_v59 = vld [vmem:[%s3775_s20 + $0x16a] sm:$0xff]  ;;  %v3301_v8 = vpack.c.bf16 %v4243_v52, %v4241_v51 }
  0x5e   : > { %796 = vst.msk [vmem:[#allocation2 + $0x538] sm:$0xff] %vm296_vm1, %v3735_v6  ;;  %797 = vst.msk [vmem:[#allocation2 + $0x580] sm:$0xff] %vm296_vm1, %v3735_v6  ;;  %3298 = vmatprep.subr.bf16.mxu0 %v3297_v44  ;;  %v2949_v60 = vld [vmem:[%s3775_s20 + $0x172] sm:$0xff]  ;;  %v2918_v10 = vld [vmem:[%s3775_s20 + $0x181] sm:$0xff] }
  0x5f   : > { %315 = vst.msk [vmem:[#allocation2 + $0x510] sm:$0xff] %vm296_vm1, %v3735_v6  ;;  %316 = vst.msk [vmem:[#allocation2 + $0x558] sm:$0xff] %vm296_vm1, %v3735_v6  ;;  %v259_v61 = vld [vmem:[%s3775_s20 + $0x150] sm:$0xff]  ;;  %v260_v63 = vld [vmem:[%s3775_s20 + $0x158] sm:$0xff] }
  0x60   : > { %668 = vst.msk [vmem:[#allocation2 + $0x530] sm:$0xff] %vm263_vm0, %v2906_v0  ;;  %669 = vst.msk [vmem:[#allocation2 + $0x578] sm:$0xff] %vm263_vm0, %v2907_v1  ;;  %v262_v9 = vld [vmem:[%s3775_s20 + $0x170] sm:$0xff]  ;;  %v2856_v15 = vld [vmem:[%s3775_s20 + $0x18] sm:$0xff] }
  0x61   : > { %381 = vst.msk [vmem:[#allocation2 + $0x5a8] sm:$0xff] %vm263_vm0, %v2906_v0  ;;  %382 = vst.msk [vmem:[#allocation2 + $0x5f0] sm:$0xff] %vm263_vm0, %v2907_v1  ;;  %v2916_v0 = vld [vmem:[%s3775_s20 + $0x169] sm:$0xff]  ;;  %v2917_v1 = vld [vmem:[%s3775_s20 + $0x171] sm:$0xff]  ;;  %3172 = vmatpush1.bf16.xpose.msra.mxu1 %v3171_v62 }
  0x62   : > { %700 = vst.msk [vmem:[#allocation2 + $0x530] sm:$0xff] %vm296_vm1, %v3735_v6  ;;  %701 = vst.msk [vmem:[#allocation2 + $0x578] sm:$0xff] %vm296_vm1, %v3735_v6  ;;  %v2919_v11 = vld [vmem:[%s3775_s20 + $0x189] sm:$0xff]  ;;  %v2857_v16 = vld [vmem:[%s3775_s20 + $0x20] sm:$0xff]  ;;  %3174 = vmatprep.subr.bf16.mxu1 %v3173_v3 }
  0x63   : > { %413 = vst.msk [vmem:[#allocation2 + $0x5a8] sm:$0xff] %vm296_vm1, %v3735_v6  ;;  %414 = vst.msk [vmem:[#allocation2 + $0x5f0] sm:$0xff] %vm296_vm1, %v3735_v6  ;;  %v2952_v40 = vld [vmem:[%s3775_s20 + $0x30] sm:$0xff]  ;;  %v2953_v42 = vld [vmem:[%s3775_s20 + $0x38] sm:$0xff] }
  0x64   : > { %766 = vst.msk [vmem:[#allocation2 + $0x5c8] sm:$0xff] %vm263_vm0, %v2940_v4  ;;  %767 = vst.msk [vmem:[#allocation2 + $0x610] sm:$0xff] %vm263_vm0, %v2941_v5  ;;  %v2950_v4 = vld [vmem:[%s3775_s20 + $0x182] sm:$0xff]  ;;  %v2951_v5 = vld [vmem:[%s3775_s20 + $0x18a] sm:$0xff] }
  0x65   : > { %284 = vst.msk [vmem:[#allocation2 + $0x5a0] sm:$0xff] %vm263_vm0, %v251_v7  ;;  %285 = vst.msk [vmem:[#allocation2 + $0x5e8] sm:$0xff] %vm263_vm0, %v252_v12  ;;  %v261_v7 = vld [vmem:[%s3775_s20 + $0x168] sm:$0xff]  ;;  %v1387_v12 = vld [vmem:[#allocation2 + $0x480] sm:$0xff]  ;;  %3300 = vmatpush1.bf16.xpose.msra.mxu0 %v3299_v2 }
  0x66   : > { %798 = vst.msk [vmem:[#allocation2 + $0x5c8] sm:$0xff] %vm296_vm1, %v3735_v6  ;;  %799 = vst.msk [vmem:[#allocation2 + $0x610] sm:$0xff] %vm296_vm1, %v3735_v6  ;;  %3302 = vmatprep.subr.bf16.mxu0 %v3301_v8  ;;  %v1410_v26 = vld [vmem:[#allocation2 + $0x538] sm:$0xff]  ;;  %v1405_v32 = vld [vmem:[#allocation2 + $0x510] sm:$0xff] }
  0x67   : > { %317 = vst.msk [vmem:[#allocation2 + $0x5a0] sm:$0xff] %vm296_vm1, %v3735_v6  ;;  %318 = vst.msk [vmem:[#allocation2 + $0x5e8] sm:$0xff] %vm296_vm1, %v3735_v6  ;;  %v1414_v33 = vld [vmem:[#allocation2 + $0x558] sm:$0xff]  ;;  %v2986_v43 = vld [vmem:[%s3775_s20 + $0x49] sm:$0xff] }
  0x68   : > { %670 = vst.msk [vmem:[#allocation2 + $0x5c0] sm:$0xff] %vm263_vm0, %v2908_v13  ;;  %671 = vst.msk [vmem:[#allocation2 + $0x608] sm:$0xff] %vm263_vm0, %v2909_v14  ;;  %v3179_v41 = vpack.c.bf16 %v1414_v33, %v1405_v32  ;;  %v2987_v44 = vld [vmem:[%s3775_s20 + $0x51] sm:$0xff]  ;;  %v427_v47 = vld [vmem:[%s3775_s20 + $0x1a] sm:$0xff] }
  0x69   : > { %383 = vst.msk [vmem:[#allocation2 + $0x638] sm:$0xff] %vm263_vm0, %v2908_v13  ;;  %384 = vst.msk [vmem:[#allocation2 + $0x680] sm:$0xff] %vm263_vm0, %v2909_v14  ;;  %v1396_v13 = vld [vmem:[#allocation2 + $0x4c8] sm:$0xff]  ;;  %v4367_v34 = vld [vmem:[#allocation2 + $0x530] sm:$0xff] }
  0x6a   : > { %702 = vst.msk [vmem:[#allocation2 + $0x5c0] sm:$0xff] %vm296_vm1, %v3735_v6  ;;  %703 = vst.msk [vmem:[#allocation2 + $0x608] sm:$0xff] %vm296_vm1, %v3735_v6  ;;  %v1100_v14 = vld [vmem:[%s5755_s2 + $0x8] sm:$0xff]  ;;  %v4369_v35 = vld [vmem:[#allocation2 + $0x578] sm:$0xff] }
  0x6b   : > { %415 = vst.msk [vmem:[#allocation2 + $0x638] sm:$0xff] %vm296_vm1, %v3735_v6  ;;  %416 = vst.msk [vmem:[#allocation2 + $0x680] sm:$0xff] %vm296_vm1, %v3735_v6  ;;  %1595 = vmatprep.mubr.f32.mxu1 %v1100_v14  ;;  %v4371_v36 = vld [vmem:[#allocation2 + $0x5a8] sm:$0xff]  ;;  %v4373_v37 = vld [vmem:[#allocation2 + $0x5f0] sm:$0xff]  ;;  %v3307_v45 = vpack.c.bf16 %v4369_v35, %v4367_v34 }
  0x6c   : > { %768 = vst.msk [vmem:[#allocation2 + $0x658] sm:$0xff] %vm263_vm0, %v2942_v17  ;;  %769 = vst.msk [vmem:[#allocation2 + $0x6a0] sm:$0xff] %vm263_vm0, %v2943_v18  ;;  %v1104_v17 = vld [vmem:[%s5755_s2 + $0x28] sm:$0xff]  ;;  %v2984_v18 = vld [vmem:[%s3775_s20 + $0x31] sm:$0xff]  ;;  %v3181_v46 = vpack.c.bf16 %v4373_v37, %v4371_v36 }
  0x6d   : > { %286 = vst.msk [vmem:[#allocation2 + $0x630] sm:$0xff] %vm263_vm0, %v253_v19  ;;  %287 = vst.msk [vmem:[#allocation2 + $0x678] sm:$0xff] %vm263_vm0, %v254_v20  ;;  %v2985_v19 = vld [vmem:[%s3775_s20 + $0x39] sm:$0xff]  ;;  %1917 = vmatprep.mubr.f32.mxu0 %v1104_v17  ;;  %v4375_v38 = vld [vmem:[#allocation2 + $0x5c8] sm:$0xff] }
  0x6e   : > { %800 = vst.msk [vmem:[#allocation2 + $0x658] sm:$0xff] %vm296_vm1, %v3735_v6  ;;  %801 = vst.msk [vmem:[#allocation2 + $0x6a0] sm:$0xff] %vm296_vm1, %v3735_v6  ;;  %v1391_v20 = vld [vmem:[#allocation2 + $0x4a0] sm:$0xff]  ;;  %v4377_v39 = vld [vmem:[#allocation2 + $0x610] sm:$0xff] }
  0x6f   : > { %319 = vst.msk [vmem:[#allocation2 + $0x630] sm:$0xff] %vm296_vm1, %v3735_v6  ;;  %320 = vst.msk [vmem:[#allocation2 + $0x678] sm:$0xff] %vm296_vm1, %v3735_v6  ;;  %v428_v48 = vld [vmem:[%s3775_s20 + $0x22] sm:$0xff]  ;;  %v3309_v50 = vpack.c.bf16 %v4377_v39, %v4375_v38  ;;  %v2955_v51 = vld [vmem:[%s3775_s20 + $0x50] sm:$0xff] }
  0x70   : > { %672 = vst.msk [vmem:[#allocation2 + $0x650] sm:$0xff] %vm263_vm0, %v2910_v21  ;;  %673 = vst.msk [vmem:[#allocation2 + $0x698] sm:$0xff] %vm263_vm0, %v2911_v22  ;;  %v2954_v49 = vld [vmem:[%s3775_s20 + $0x48] sm:$0xff]  ;;  %v2959_v8 = vld [vmem:[%s3775_s20 + $0x80] sm:$0xff] }
  0x71   : > { %385 = vst.msk [vmem:[#allocation2 + $0x6c8] sm:$0xff] %vm263_vm0, %v2910_v21  ;;  %386 = vst.msk [vmem:[#allocation2 + $0x710] sm:$0xff] %vm263_vm0, %v2911_v22  ;;  %v425_v21 = vld [vmem:[%s3775_s20 + $0x2] sm:$0xff]  ;;  %v426_v22 = vld [vmem:[%s3775_s20 + $0xa] sm:$0xff] }
  0x72   : > { %704 = vst.msk [vmem:[#allocation2 + $0x650] sm:$0xff] %vm296_vm1, %v3735_v6  ;;  %705 = vst.msk [vmem:[#allocation2 + $0x698] sm:$0xff] %vm296_vm1, %v3735_v6  ;;  %v2988_v52 = vld [vmem:[%s3775_s20 + $0x61] sm:$0xff]  ;;  %v2994_v37 = vld [vmem:[%s3775_s20 + $0xa9] sm:$0xff] }
  0x73   : > { %417 = vst.msk [vmem:[#allocation2 + $0x6c8] sm:$0xff] %vm296_vm1, %v3735_v6  ;;  %418 = vst.msk [vmem:[#allocation2 + $0x710] sm:$0xff] %vm296_vm1, %v3735_v6  ;;  %v4442_v62 = vld [vmem:[#allocation2 + $0x680] sm:$0xff]  ;;  %v2995_v38 = vld [vmem:[%s3775_s20 + $0xb1] sm:$0xff] }
  0x74   : > { %770 = vst.msk [vmem:[#allocation2 + $0x6e8] sm:$0xff] %vm263_vm0, %v2944_v23  ;;  %771 = vst.msk [vmem:[#allocation2 + $0x730] sm:$0xff] %vm263_vm0, %v2945_v24  ;;  %v1400_v23 = vld [vmem:[#allocation2 + $0x4e8] sm:$0xff]  ;;  %v1406_v24 = vld [vmem:[#allocation2 + $0x518] sm:$0xff] }
  0x75   : > { %288 = vst.msk [vmem:[#allocation2 + $0x6c0] sm:$0xff] %vm263_vm0, %v255_v25  ;;  %289 = vst.msk [vmem:[#allocation2 + $0x708] sm:$0xff] %vm263_vm0, %v256_v27  ;;  %v1415_v25 = vld [vmem:[#allocation2 + $0x560] sm:$0xff]  ;;  %v4459_v2 = vld [vmem:[#allocation2 + $0x658] sm:$0xff] }
  0x76   : > { %802 = vst.msk [vmem:[#allocation2 + $0x6e8] sm:$0xff] %vm296_vm1, %v3735_v6  ;;  %803 = vst.msk [vmem:[#allocation2 + $0x730] sm:$0xff] %vm296_vm1, %v3735_v6  ;;  %v1419_v27 = vld [vmem:[#allocation2 + $0x580] sm:$0xff]  ;;  %v3177_v30 = vpack.c.bf16 %v1415_v25, %v1406_v24 }
  0x77   : > { %321 = vst.msk [vmem:[#allocation2 + $0x6c0] sm:$0xff] %vm296_vm1, %v3735_v6  ;;  %322 = vst.msk [vmem:[#allocation2 + $0x708] sm:$0xff] %vm296_vm1, %v3735_v6  ;;  %v3305_v31 = vpack.c.bf16 %v1419_v27, %v1410_v26  ;;  %v1455_v3 = vld [vmem:[#allocation2 + $0x6a0] sm:$0xff] }
  0x78   : > { %674 = vst.msk [vmem:[#allocation2 + $0x6e0] sm:$0xff] %vm263_vm0, %v2912_v28  ;;  %675 = vst.msk [vmem:[#allocation2 + $0x728] sm:$0xff] %vm263_vm0, %v2913_v29 }
  0x79   : > { %387 = vst.msk [vmem:[#allocation2 + $0x758] sm:$0xff] %vm263_vm0, %v2912_v28  ;;  %388 = vst.msk [vmem:[#allocation2 + $0x7a0] sm:$0xff] %vm263_vm0, %v2913_v29  ;;  %v3175_v28 = vpack.c.bf16 %v1396_v13, %v1387_v12  ;;  %v3303_v29 = vpack.c.bf16 %v1400_v23, %v1391_v20  ;;  %v434_v12 = vld [vmem:[%s3775_s20 + $0x6a] sm:$0xff]  ;;  %v1450_v20 = vld [vmem:[#allocation2 + $0x678] sm:$0xff] }
  0x7a   : > { %706 = vst.msk [vmem:[#allocation2 + $0x6e0] sm:$0xff] %vm296_vm1, %v3735_v6  ;;  %707 = vst.msk [vmem:[#allocation2 + $0x728] sm:$0xff] %vm296_vm1, %v3735_v6  ;;  %v2960_v13 = vld [vmem:[%s3775_s20 + $0x90] sm:$0xff]  ;;  %v1460_v23 = vld [vmem:[#allocation2 + $0x6c8] sm:$0xff] }
  0x7b   : > { %419 = vst.msk [vmem:[#allocation2 + $0x758] sm:$0xff] %vm296_vm1, %v3735_v6  ;;  %420 = vst.msk [vmem:[#allocation2 + $0x7a0] sm:$0xff] %vm296_vm1, %v3735_v6  ;;  %3176 = vmatpush1.bf16.xpose.msra.mxu1 %v3175_v28  ;;  %3304 = vmatpush1.bf16.xpose.msra.mxu0 %v3303_v29  ;;  %v1469_v24 = vld [vmem:[#allocation2 + $0x710] sm:$0xff] }
  0x7c   : > { %772 = vst.msk [vmem:[#allocation2 + $0x778] sm:$0xff] %vm263_vm0, %v2946_v53  ;;  %773 = vst.msk [vmem:[#allocation2 + $0x7c0] sm:$0xff] %vm263_vm0, %v2947_v54  ;;  %3178 = vmatprep.subr.bf16.mxu1 %v3177_v30  ;;  %3306 = vmatprep.subr.bf16.mxu0 %v3305_v31  ;;  %v2989_v53 = vld [vmem:[%s3775_s20 + $0x69] sm:$0xff]  ;;  %v4417_v54 = vld [vmem:[#allocation2 + $0x5a0] sm:$0xff]  ;;  %v3189_v29 = vpack.c.bf16 %v1469_v24, %v1460_v23 }
  0x7d   : > { %290 = vst.msk [vmem:[#allocation2 + $0x750] sm:$0xff] %vm263_vm0, %v257_v55  ;;  %291 = vst.msk [vmem:[#allocation2 + $0x798] sm:$0xff] %vm263_vm0, %v258_v56  ;;  %v4419_v55 = vld [vmem:[#allocation2 + $0x5e8] sm:$0xff]  ;;  %v429_v56 = vld [vmem:[%s3775_s20 + $0x32] sm:$0xff] }
  0x7e   : > { %804 = vst.msk [vmem:[#allocation2 + $0x778] sm:$0xff] %vm296_vm1, %v3735_v6  ;;  %805 = vst.msk [vmem:[#allocation2 + $0x7c0] sm:$0xff] %vm296_vm1, %v3735_v6  ;;  %v3183_v14 = vpack.c.bf16 %v4419_v55, %v4417_v54  ;;  %v1464_v25 = vld [vmem:[#allocation2 + $0x6e8] sm:$0xff]  ;;  %v1473_v26 = vld [vmem:[#allocation2 + $0x730] sm:$0xff] }
  0x7f   : > { %323 = vst.msk [vmem:[#allocation2 + $0x750] sm:$0xff] %vm296_vm1, %v3735_v6  ;;  %324 = vst.msk [vmem:[#allocation2 + $0x798] sm:$0xff] %vm296_vm1, %v3735_v6  ;;  %v3317_v30 = vpack.c.bf16 %v1473_v26, %v1464_v25  ;;  %v4540_v31 = vld [vmem:[#allocation2 + $0x6c0] sm:$0xff]  ;;  %v4542_v32 = vld [vmem:[#allocation2 + $0x708] sm:$0xff] }
  0x80   : > { %676 = vst.msk [vmem:[#allocation2 + $0x770] sm:$0xff] %vm263_vm0, %v2914_v57  ;;  %677 = vst.msk [vmem:[#allocation2 + $0x7b8] sm:$0xff] %vm263_vm0, %v2915_v58 }
  0x81   : > { %389 = vst.msk [vmem:[#allocation2 + $0x7e8] sm:$0xff] %vm263_vm0, %v2914_v57  ;;  %390 = vst.msk [vmem:[#allocation2 + $0x830] sm:$0xff] %vm263_vm0, %v2915_v58  ;;  %v430_v57 = vld [vmem:[%s3775_s20 + $0x3a] sm:$0xff]  ;;  %v4546_v34 = vld [vmem:[#allocation2 + $0x728] sm:$0xff] }
  0x82   : > { %708 = vst.msk [vmem:[#allocation2 + $0x770] sm:$0xff] %vm296_vm1, %v3735_v6  ;;  %709 = vst.msk [vmem:[#allocation2 + $0x7b8] sm:$0xff] %vm296_vm1, %v3735_v6  ;;  %v2956_v58 = vld [vmem:[%s3775_s20 + $0x60] sm:$0xff]  ;;  %v4548_v35 = vld [vmem:[#allocation2 + $0x758] sm:$0xff] }
  0x83   : > { %421 = vst.msk [vmem:[#allocation2 + $0x7e8] sm:$0xff] %vm296_vm1, %v3735_v6  ;;  %422 = vst.msk [vmem:[#allocation2 + $0x830] sm:$0xff] %vm296_vm1, %v3735_v6  ;;  %3180 = vmatpush1.bf16.xpose.msra.mxu1 %v3179_v41  ;;  %3308 = vmatpush1.bf16.xpose.msra.mxu0 %v3307_v45  ;;  %v4544_v33 = vld [vmem:[#allocation2 + $0x6e0] sm:$0xff] }
  0x84   : > { %774 = vst.msk [vmem:[#allocation2 + $0x808] sm:$0xff] %vm263_vm0, %v2948_v59  ;;  %775 = vst.msk [vmem:[#allocation2 + $0x850] sm:$0xff] %vm263_vm0, %v2949_v60  ;;  %v4436_v59 = vld [vmem:[#allocation2 + $0x5c0] sm:$0xff]  ;;  %v4438_v60 = vld [vmem:[#allocation2 + $0x608] sm:$0xff]  ;;  %3182 = vmatprep.subr.bf16.mxu1 %v3181_v46  ;;  %3310 = vmatprep.subr.bf16.mxu0 %v3309_v50  ;;  %v3191_v50 = vpack.c.bf16 %v4542_v32, %v4540_v31  ;;  %v3319_v54 = vpack.c.bf16 %v4546_v34, %v4544_v33 }
  0x85   : > { %292 = vst.msk [vmem:[#allocation2 + $0x7e0] sm:$0xff] %vm263_vm0, %v259_v61  ;;  %293 = vst.msk [vmem:[#allocation2 + $0x828] sm:$0xff] %vm263_vm0, %v260_v63  ;;  %v4440_v61 = vld [vmem:[#allocation2 + $0x638] sm:$0xff]  ;;  %v2957_v63 = vld [vmem:[%s3775_s20 + $0x68] sm:$0xff] }
  0x86   : > { %806 = vst.msk [vmem:[#allocation2 + $0x808] sm:$0xff] %vm296_vm1, %v3735_v6  ;;  %807 = vst.msk [vmem:[#allocation2 + $0x850] sm:$0xff] %vm296_vm1, %v3735_v6  ;;  %v3185_v17 = vpack.c.bf16 %v4442_v62, %v4440_v61  ;;  %v4550_v36 = vld [vmem:[#allocation2 + $0x7a0] sm:$0xff]  ;;  %v4554_v39 = vld [vmem:[#allocation2 + $0x778] sm:$0xff] }
  0x87   : > { %325 = vst.msk [vmem:[#allocation2 + $0x7e0] sm:$0xff] %vm296_vm1, %v3735_v6  ;;  %326 = vst.msk [vmem:[#allocation2 + $0x828] sm:$0xff] %vm296_vm1, %v3735_v6  ;;  %v435_v41 = vld [vmem:[%s3775_s20 + $0x7a] sm:$0xff]  ;;  %v2997_v46 = vld [vmem:[%s3775_s20 + $0xc9] sm:$0xff]  ;;  %v3193_v55 = vpack.c.bf16 %v4550_v36, %v4548_v35 }
  0x88   : > { %678 = vst.msk [vmem:[#allocation2 + $0x800] sm:$0xff] %vm263_vm0, %v2916_v0  ;;  %679 = vst.msk [vmem:[#allocation2 + $0x848] sm:$0xff] %vm263_vm0, %v2917_v1  ;;  %v2996_v45 = vld [vmem:[%s3775_s20 + $0xc1] sm:$0xff]  ;;  %v3000_v61 = vld [vmem:[%s3775_s20 + $0xf1] sm:$0xff] }
  0x89   : > { %391 = vst.msk [vmem:[#allocation2 + $0x878] sm:$0xff] %vm263_vm0, %v2916_v0  ;;  %392 = vst.msk [vmem:[#allocation2 + $0x8c0] sm:$0xff] %vm263_vm0, %v2917_v1  ;;  %v2990_v0 = vld [vmem:[%s3775_s20 + $0x79] sm:$0xff]  ;;  %v2991_v1 = vld [vmem:[%s3775_s20 + $0x81] sm:$0xff] }
  0x8a   : > { %710 = vst.msk [vmem:[#allocation2 + $0x800] sm:$0xff] %vm296_vm1, %v3735_v6  ;;  %711 = vst.msk [vmem:[#allocation2 + $0x848] sm:$0xff] %vm296_vm1, %v3735_v6  ;;  %v3001_v62 = vld [vmem:[%s3775_s20 + $0xf9] sm:$0xff]  ;;  %v444_v31 = vld [vmem:[%s3775_s20 + $0xe2] sm:$0xff] }
  0x8b   : > { %423 = vst.msk [vmem:[#allocation2 + $0x878] sm:$0xff] %vm296_vm1, %v3735_v6  ;;  %424 = vst.msk [vmem:[#allocation2 + $0x8c0] sm:$0xff] %vm296_vm1, %v3735_v6  ;;  %3184 = vmatpush1.bf16.xpose.msra.mxu1 %v3183_v14  ;;  %v2970_v33 = vld [vmem:[%s3775_s20 + $0x108] sm:$0xff]  ;;  %v2971_v34 = vld [vmem:[%s3775_s20 + $0x110] sm:$0xff] }
  0x8c   : > { %776 = vst.msk [vmem:[#allocation2 + $0x898] sm:$0xff] %vm263_vm0, %v2950_v4  ;;  %777 = vst.msk [vmem:[#allocation2 + $0x8e0] sm:$0xff] %vm263_vm0, %v2951_v5  ;;  %v431_v4 = vld [vmem:[%s3775_s20 + $0x4a] sm:$0xff]  ;;  %v432_v5 = vld [vmem:[%s3775_s20 + $0x52] sm:$0xff]  ;;  %3186 = vmatprep.subr.bf16.mxu1 %v3185_v17 }
  0x8d   : > { %294 = vst.msk [vmem:[#allocation2 + $0x870] sm:$0xff] %vm263_vm0, %v261_v7  ;;  %295 = vst.msk [vmem:[#allocation2 + $0x8b8] sm:$0xff] %vm263_vm0, %v262_v9  ;;  %v2958_v7 = vld [vmem:[%s3775_s20 + $0x78] sm:$0xff] }
  0x8e   : > { %808 = vst.msk [vmem:[#allocation2 + $0x898] sm:$0xff] %vm296_vm1, %v3735_v6  ;;  %809 = vst.msk [vmem:[#allocation2 + $0x8e0] sm:$0xff] %vm296_vm1, %v3735_v6  ;;  %v2992_v9 = vld [vmem:[%s3775_s20 + $0x91] sm:$0xff]  ;;  %v1504_v17 = vld [vmem:[#allocation2 + $0x828] sm:$0xff] }
  0x8f   : > { %327 = vst.msk [vmem:[#allocation2 + $0x870] sm:$0xff] %vm296_vm1, %v3735_v6  ;;  %328 = vst.msk [vmem:[#allocation2 + $0x8b8] sm:$0xff] %vm296_vm1, %v3735_v6 }
  0x90   : > { %680 = vst.msk [vmem:[#allocation2 + $0x890] sm:$0xff] %vm263_vm0, %v2918_v10  ;;  %681 = vst.msk [vmem:[#allocation2 + $0x8d8] sm:$0xff] %vm263_vm0, %v2919_v11  ;;  %v2993_v10 = vld [vmem:[%s3775_s20 + $0x99] sm:$0xff]  ;;  %v433_v11 = vld [vmem:[%s3775_s20 + $0x62] sm:$0xff] }
  0x91   : > { %712 = vst.msk [vmem:[#allocation2 + $0x890] sm:$0xff] %vm296_vm1, %v3735_v6  ;;  %713 = vst.msk [vmem:[#allocation2 + $0x8d8] sm:$0xff] %vm296_vm1, %v3735_v6 }
  0x92   : > { %554 = vst.msk [vmem:[#allocation2 + $0x18] sm:$0xff] %vm263_vm0, %v2856_v15  ;;  %555 = vst.msk [vmem:[#allocation2 + $0x60] sm:$0xff] %vm263_vm0, %v2857_v16  ;;  %v2961_v15 = vld [vmem:[%s3775_s20 + $0x98] sm:$0xff]  ;;  %v3311_v16 = vpack.c.bf16 %v4438_v60, %v4436_v59  ;;  %v2967_v60 = vld [vmem:[%s3775_s20 + $0xe0] sm:$0xff] }
  0x93   : > { %586 = vst.msk [vmem:[#allocation2 + $0x18] sm:$0xff] %vm296_vm1, %v3735_v6  ;;  %587 = vst.msk [vmem:[#allocation2 + $0x60] sm:$0xff] %vm296_vm1, %v3735_v6 }
  0x94   : > { %939 = vst.msk [vmem:[#allocation2 + $0x38] sm:$0xff] %vm263_vm0, %v2984_v18  ;;  %940 = vst.msk [vmem:[#allocation2 + $0x80] sm:$0xff] %vm263_vm0, %v2985_v19  ;;  %v3313_v18 = vpack.c.bf16 %v1455_v3, %v4459_v2  ;;  %3312 = vmatpush1.bf16.xpose.msra.mxu0 %v3311_v16  ;;  %v1441_v19 = vld [vmem:[#allocation2 + $0x630] sm:$0xff]  ;;  %v2969_v2 = vld [vmem:[%s3775_s20 + $0xf8] sm:$0xff] }
  0x95   : > { %971 = vst.msk [vmem:[#allocation2 + $0x38] sm:$0xff] %vm296_vm1, %v3735_v6  ;;  %972 = vst.msk [vmem:[#allocation2 + $0x80] sm:$0xff] %vm296_vm1, %v3735_v6  ;;  %v3187_v27 = vpack.c.bf16 %v1450_v20, %v1441_v19  ;;  %v1477_v3 = vld [vmem:[#allocation2 + $0x750] sm:$0xff]  ;;  %v1495_v16 = vld [vmem:[#allocation2 + $0x7e0] sm:$0xff] }
  0x96   : > { %457 = vst.msk [vmem:[#allocation2 + $0x10] sm:$0xff] %vm263_vm0, %v425_v21  ;;  %458 = vst.msk [vmem:[#allocation2 + $0x58] sm:$0xff] %vm263_vm0, %v426_v22  ;;  %v1445_v21 = vld [vmem:[#allocation2 + $0x650] sm:$0xff]  ;;  %3314 = vmatprep.subr.bf16.mxu0 %v3313_v18  ;;  %v1454_v22 = vld [vmem:[#allocation2 + $0x698] sm:$0xff]  ;;  %v3199_v24 = vpack.c.bf16 %v1504_v17, %v1495_v16 }
  0x97   : > { %489 = vst.msk [vmem:[#allocation2 + $0x10] sm:$0xff] %vm296_vm1, %v3735_v6  ;;  %490 = vst.msk [vmem:[#allocation2 + $0x58] sm:$0xff] %vm296_vm1, %v3735_v6  ;;  %v3315_v28 = vpack.c.bf16 %v1454_v22, %v1445_v21  ;;  %3188 = vmatpush1.bf16.xpose.msra.mxu1 %v3187_v27  ;;  %v1499_v18 = vld [vmem:[#allocation2 + $0x800] sm:$0xff]  ;;  %v1508_v19 = vld [vmem:[#allocation2 + $0x848] sm:$0xff] }
  0x98   : > { %843 = vst.msk [vmem:[#allocation2 + $0x30] sm:$0xff] %vm263_vm0, %v2952_v40  ;;  %556 = vst.msk [vmem:[#allocation2 + $0xa8] sm:$0xff] %vm263_vm0, %v2952_v40  ;;  %3190 = vmatprep.subr.bf16.mxu1 %v3189_v29  ;;  %v4556_v40 = vld [vmem:[#allocation2 + $0x7c0] sm:$0xff]  ;;  %v1514_v20 = vld [vmem:[#allocation2 + $0x878] sm:$0xff]  ;;  %v3327_v25 = vpack.c.bf16 %v1508_v19, %v1499_v18 }
  0x99   : > { %844 = vst.msk [vmem:[#allocation2 + $0x78] sm:$0xff] %vm263_vm0, %v2953_v42  ;;  %557 = vst.msk [vmem:[#allocation2 + $0xf0] sm:$0xff] %vm263_vm0, %v2953_v42  ;;  %v436_v42 = vld [vmem:[%s3775_s20 + $0x82] sm:$0xff]  ;;  %v3321_v59 = vpack.c.bf16 %v4556_v40, %v4554_v39  ;;  %v1518_v22 = vld [vmem:[#allocation2 + $0x898] sm:$0xff] }
  0x9a   : > { %875 = vst.msk [vmem:[#allocation2 + $0x30] sm:$0xff] %vm296_vm1, %v3735_v6  ;;  %588 = vst.msk [vmem:[#allocation2 + $0xa8] sm:$0xff] %vm296_vm1, %v3735_v6  ;;  %v1523_v21 = vld [vmem:[#allocation2 + $0x8c0] sm:$0xff]  ;;  %v3002_v27 = vld [vmem:[%s3775_s20 + $0x109] sm:$0xff] }
  0x9b   : > { %941 = vst.msk [vmem:[#allocation2 + $0xc8] sm:$0xff] %vm263_vm0, %v2986_v43  ;;  %942 = vst.msk [vmem:[#allocation2 + $0x110] sm:$0xff] %vm263_vm0, %v2987_v44  ;;  %v2962_v43 = vld [vmem:[%s3775_s20 + $0xa8] sm:$0xff]  ;;  %v2963_v44 = vld [vmem:[%s3775_s20 + $0xb0] sm:$0xff]  ;;  %v3201_v26 = vpack.c.bf16 %v1523_v21, %v1514_v20 }
  0x9c   : > { %876 = vst.msk [vmem:[#allocation2 + $0x78] sm:$0xff] %vm296_vm1, %v3735_v6  ;;  %589 = vst.msk [vmem:[#allocation2 + $0xf0] sm:$0xff] %vm296_vm1, %v3735_v6  ;;  %3316 = vmatpush1.bf16.xpose.msra.mxu0 %v3315_v28  ;;  %v1527_v23 = vld [vmem:[#allocation2 + $0x8e0] sm:$0xff]  ;;  %v3003_v29 = vld [vmem:[%s3775_s20 + $0x111] sm:$0xff] }
  0x9d   : > { %973 = vst.msk [vmem:[#allocation2 + $0xc8] sm:$0xff] %vm296_vm1, %v3735_v6  ;;  %974 = vst.msk [vmem:[#allocation2 + $0x110] sm:$0xff] %vm296_vm1, %v3735_v6  ;;  %3318 = vmatprep.subr.bf16.mxu0 %v3317_v30  ;;  %v3329_v28 = vpack.c.bf16 %v1527_v23, %v1518_v22  ;;  %v443_v30 = vld [vmem:[%s3775_s20 + $0xda] sm:$0xff]  ;;  %v1513_v32 = vld [vmem:[#allocation2 + $0x870] sm:$0xff] }
  0x9e   : > { %459 = vst.msk [vmem:[#allocation2 + $0xa0] sm:$0xff] %vm263_vm0, %v427_v47  ;;  %460 = vst.msk [vmem:[#allocation2 + $0xe8] sm:$0xff] %vm263_vm0, %v428_v48  ;;  %v437_v47 = vld [vmem:[%s3775_s20 + $0x92] sm:$0xff]  ;;  %v438_v48 = vld [vmem:[%s3775_s20 + $0x9a] sm:$0xff] }
  0x9f   : > { %845 = vst.msk [vmem:[#allocation2 + $0xc0] sm:$0xff] %vm263_vm0, %v2954_v49  ;;  %558 = vst.msk [vmem:[#allocation2 + $0x138] sm:$0xff] %vm263_vm0, %v2954_v49  ;;  %v2964_v49 = vld [vmem:[%s3775_s20 + $0xc0] sm:$0xff]  ;;  %3192 = vmatpush1.bf16.xpose.msra.mxu1 %v3191_v50  ;;  %v1522_v35 = vld [vmem:[#allocation2 + $0x8b8] sm:$0xff] }
  0xa0   : > { %491 = vst.msk [vmem:[#allocation2 + $0xa0] sm:$0xff] %vm296_vm1, %v3735_v6  ;;  %492 = vst.msk [vmem:[#allocation2 + $0xe8] sm:$0xff] %vm296_vm1, %v3735_v6  ;;  %3194 = vmatprep.subr.bf16.mxu1 %v3193_v55  ;;  %v1517_v36 = vld [vmem:[#allocation2 + $0x890] sm:$0xff]  ;;  %v1255_v39 = vld [vmem:[#allocation2 + $0x60] sm:$0xff] }
  0xa1   : > { %846 = vst.msk [vmem:[#allocation2 + $0x108] sm:$0xff] %vm263_vm0, %v2955_v51  ;;  %559 = vst.msk [vmem:[#allocation2 + $0x180] sm:$0xff] %vm263_vm0, %v2955_v51  ;;  %v2965_v51 = vld [vmem:[%s3775_s20 + $0xc8] sm:$0xff]  ;;  %v1250_v40 = vld [vmem:[#allocation2 + $0x38] sm:$0xff] }
  0xa2   : > { %877 = vst.msk [vmem:[#allocation2 + $0xc0] sm:$0xff] %vm296_vm1, %v3735_v6  ;;  %590 = vst.msk [vmem:[#allocation2 + $0x138] sm:$0xff] %vm296_vm1, %v3735_v6  ;;  %v1264_v55 = vld [vmem:[#allocation2 + $0xa8] sm:$0xff]  ;;  %v1118_v19 = vld [vmem:[%s5755_s2 + $0x98] sm:$0xff] }
  0xa3   : > { %943 = vst.msk [vmem:[#allocation2 + $0x158] sm:$0xff] %vm263_vm0, %v2988_v52  ;;  %944 = vst.msk [vmem:[#allocation2 + $0x1a0] sm:$0xff] %vm263_vm0, %v2989_v53  ;;  %v2998_v52 = vld [vmem:[%s3775_s20 + $0xd9] sm:$0xff]  ;;  %v2999_v53 = vld [vmem:[%s3775_s20 + $0xe1] sm:$0xff] }
  0xa4   : > { %878 = vst.msk [vmem:[#allocation2 + $0x108] sm:$0xff] %vm296_vm1, %v3735_v6  ;;  %591 = vst.msk [vmem:[#allocation2 + $0x180] sm:$0xff] %vm296_vm1, %v3735_v6  ;;  %3320 = vmatpush1.bf16.xpose.msra.mxu0 %v3319_v54  ;;  %v1249_v54 = vld [vmem:[#allocation2 + $0x30] sm:$0xff]  ;;  %v1108_v17 = vld [vmem:[%s5755_s2 + $0x48] sm:$0xff] }
  0xa5   : > { %975 = vst.msk [vmem:[#allocation2 + $0x158] sm:$0xff] %vm296_vm1, %v3735_v6  ;;  %976 = vst.msk [vmem:[#allocation2 + $0x1a0] sm:$0xff] %vm296_vm1, %v3735_v6  ;;  %3322 = vmatprep.subr.bf16.mxu0 %v3321_v59  ;;  %v3007_v59 = vld [vmem:[%s3775_s20 + $0x141] sm:$0xff]  ;;  %v3008_v20 = vld [vmem:[%s3775_s20 + $0x151] sm:$0xff] }
  0xa6   : > { %461 = vst.msk [vmem:[#allocation2 + $0x130] sm:$0xff] %vm263_vm0, %v429_v56  ;;  %462 = vst.msk [vmem:[#allocation2 + $0x178] sm:$0xff] %vm263_vm0, %v430_v57  ;;  %v439_v56 = vld [vmem:[%s3775_s20 + $0xaa] sm:$0xff]  ;;  %v440_v57 = vld [vmem:[%s3775_s20 + $0xb2] sm:$0xff] }
  0xa7   : > { %847 = vst.msk [vmem:[#allocation2 + $0x150] sm:$0xff] %vm263_vm0, %v2956_v58  ;;  %560 = vst.msk [vmem:[#allocation2 + $0x1c8] sm:$0xff] %vm263_vm0, %v2956_v58  ;;  %v2966_v58 = vld [vmem:[%s3775_s20 + $0xd8] sm:$0xff]  ;;  %v1112_v18 = vld [vmem:[%s5755_s2 + $0x68] sm:$0xff] }
  0xa8   : > { %493 = vst.msk [vmem:[#allocation2 + $0x130] sm:$0xff] %vm296_vm1, %v3735_v6  ;;  %494 = vst.msk [vmem:[#allocation2 + $0x178] sm:$0xff] %vm296_vm1, %v3735_v6  ;;  %v3009_v21 = vld [vmem:[%s3775_s20 + $0x159] sm:$0xff]  ;;  %v449_v22 = vld [vmem:[%s3775_s20 + $0x122] sm:$0xff] }
  0xa9   : > { %848 = vst.msk [vmem:[#allocation2 + $0x198] sm:$0xff] %vm263_vm0, %v2957_v63  ;;  %561 = vst.msk [vmem:[#allocation2 + $0x210] sm:$0xff] %vm263_vm0, %v2957_v63  ;;  %v441_v63 = vld [vmem:[%s3775_s20 + $0xc2] sm:$0xff]  ;;  %v1122_v23 = vld [vmem:[%s5755_s2 + $0xb8] sm:$0xff] }
  0xaa   : > { %879 = vst.msk [vmem:[#allocation2 + $0x150] sm:$0xff] %vm296_vm1, %v3735_v6  ;;  %592 = vst.msk [vmem:[#allocation2 + $0x1c8] sm:$0xff] %vm296_vm1, %v3735_v6 }
  0xab   : > { %945 = vst.msk [vmem:[#allocation2 + $0x1e8] sm:$0xff] %vm263_vm0, %v2990_v0  ;;  %946 = vst.msk [vmem:[#allocation2 + $0x230] sm:$0xff] %vm263_vm0, %v2991_v1  ;;  %v442_v0 = vld [vmem:[%s3775_s20 + $0xca] sm:$0xff]  ;;  %v4804_v16 = vld [vmem:[#allocation2 + $0x180] sm:$0xff] }
  0xac   : > { %880 = vst.msk [vmem:[#allocation2 + $0x198] sm:$0xff] %vm296_vm1, %v3735_v6  ;;  %593 = vst.msk [vmem:[#allocation2 + $0x210] sm:$0xff] %vm296_vm1, %v3735_v6  ;;  %v2968_v1 = vld [vmem:[%s3775_s20 + $0xf0] sm:$0xff] }
  0xad   : > { %977 = vst.msk [vmem:[#allocation2 + $0x1e8] sm:$0xff] %vm296_vm1, %v3735_v6  ;;  %978 = vst.msk [vmem:[#allocation2 + $0x230] sm:$0xff] %vm296_vm1, %v3735_v6 }
  0xae   : > { %463 = vst.msk [vmem:[#allocation2 + $0x1c0] sm:$0xff] %vm263_vm0, %v431_v4  ;;  %464 = vst.msk [vmem:[#allocation2 + $0x208] sm:$0xff] %vm263_vm0, %v432_v5  ;;  %v1486_v4 = vld [vmem:[#allocation2 + $0x798] sm:$0xff]  ;;  %v1481_v5 = vld [vmem:[#allocation2 + $0x770] sm:$0xff] }
  0xaf   : > { %849 = vst.msk [vmem:[#allocation2 + $0x1e0] sm:$0xff] %vm263_vm0, %v2958_v7  ;;  %562 = vst.msk [vmem:[#allocation2 + $0x258] sm:$0xff] %vm263_vm0, %v2958_v7  ;;  %v1490_v7 = vld [vmem:[#allocation2 + $0x7b8] sm:$0xff] }
  0xb0   : > { %495 = vst.msk [vmem:[#allocation2 + $0x1c0] sm:$0xff] %vm296_vm1, %v3735_v6  ;;  %496 = vst.msk [vmem:[#allocation2 + $0x208] sm:$0xff] %vm296_vm1, %v3735_v6 }
  0xb1   : > { %850 = vst.msk [vmem:[#allocation2 + $0x228] sm:$0xff] %vm263_vm0, %v2959_v8  ;;  %563 = vst.msk [vmem:[#allocation2 + $0x2a0] sm:$0xff] %vm263_vm0, %v2959_v8  ;;  %v1496_v8 = vld [vmem:[#allocation2 + $0x7e8] sm:$0xff] }
  0xb2   : > { %881 = vst.msk [vmem:[#allocation2 + $0x1e0] sm:$0xff] %vm296_vm1, %v3735_v6  ;;  %594 = vst.msk [vmem:[#allocation2 + $0x258] sm:$0xff] %vm296_vm1, %v3735_v6 }
  0xb3   : > { %947 = vst.msk [vmem:[#allocation2 + $0x278] sm:$0xff] %vm263_vm0, %v2992_v9  ;;  %948 = vst.msk [vmem:[#allocation2 + $0x2c0] sm:$0xff] %vm263_vm0, %v2993_v10  ;;  %v1505_v9 = vld [vmem:[#allocation2 + $0x830] sm:$0xff]  ;;  %v1500_v10 = vld [vmem:[#allocation2 + $0x808] sm:$0xff] }
  0xb4   : > { %882 = vst.msk [vmem:[#allocation2 + $0x228] sm:$0xff] %vm296_vm1, %v3735_v6  ;;  %595 = vst.msk [vmem:[#allocation2 + $0x2a0] sm:$0xff] %vm296_vm1, %v3735_v6  ;;  %v3197_v14 = vpack.c.bf16 %v1505_v9, %v1496_v8  ;;  %v2975_v8 = vld [vmem:[%s3775_s20 + $0x140] sm:$0xff] }
  0xb5   : > { %979 = vst.msk [vmem:[#allocation2 + $0x278] sm:$0xff] %vm296_vm1, %v3735_v6  ;;  %980 = vst.msk [vmem:[#allocation2 + $0x2c0] sm:$0xff] %vm296_vm1, %v3735_v6  ;;  %v4786_v9 = vld [vmem:[#allocation2 + $0xa0] sm:$0xff] }
  0xb6   : > { %465 = vst.msk [vmem:[#allocation2 + $0x250] sm:$0xff] %vm263_vm0, %v433_v11  ;;  %466 = vst.msk [vmem:[#allocation2 + $0x298] sm:$0xff] %vm263_vm0, %v434_v12  ;;  %v1509_v11 = vld [vmem:[#allocation2 + $0x850] sm:$0xff]  ;;  %v3195_v12 = vpack.c.bf16 %v1486_v4, %v1477_v3  ;;  %v1103_v3 = vld [vmem:[%s5755_s2 + $0x20] sm:$0xff] }
  0xb7   : > { %851 = vst.msk [vmem:[#allocation2 + $0x270] sm:$0xff] %vm263_vm0, %v2960_v13  ;;  %564 = vst.msk [vmem:[#allocation2 + $0x2e8] sm:$0xff] %vm263_vm0, %v2960_v13  ;;  %v3323_v13 = vpack.c.bf16 %v1490_v7, %v1481_v5 }
  0xb8   : > { %497 = vst.msk [vmem:[#allocation2 + $0x250] sm:$0xff] %vm296_vm1, %v3735_v6  ;;  %498 = vst.msk [vmem:[#allocation2 + $0x298] sm:$0xff] %vm296_vm1, %v3735_v6  ;;  %3196 = vmatpush1.bf16.xpose.msra.mxu1 %v3195_v12  ;;  %v1113_v12 = vld [vmem:[%s5755_s2 + $0x70] sm:$0xff] }
  0xb9   : > { %852 = vst.msk [vmem:[#allocation2 + $0x2b8] sm:$0xff] %vm263_vm0, %v2961_v15  ;;  %565 = vst.msk [vmem:[#allocation2 + $0x330] sm:$0xff] %vm263_vm0, %v2961_v15  ;;  %v3325_v15 = vpack.c.bf16 %v1509_v11, %v1500_v10  ;;  %3324 = vmatpush1.bf16.xpose.msra.mxu0 %v3323_v13  ;;  %3198 = vmatprep.subr.bf16.mxu1 %v3197_v14  ;;  %v4788_v10 = vld [vmem:[#allocation2 + $0xe8] sm:$0xff]  ;;  %v1109_v11 = vld [vmem:[%s5755_s2 + $0x50] sm:$0xff] }
  0xba   : > { %883 = vst.msk [vmem:[#allocation2 + $0x270] sm:$0xff] %vm296_vm1, %v3735_v6  ;;  %596 = vst.msk [vmem:[#allocation2 + $0x2e8] sm:$0xff] %vm296_vm1, %v3735_v6  ;;  %v4798_v13 = vld [vmem:[#allocation2 + $0xc0] sm:$0xff]  ;;  %v4800_v14 = vld [vmem:[#allocation2 + $0x108] sm:$0xff] }
  0xbb   : > { %884 = vst.msk [vmem:[#allocation2 + $0x2b8] sm:$0xff] %vm296_vm1, %v3735_v6  ;;  %597 = vst.msk [vmem:[#allocation2 + $0x330] sm:$0xff] %vm296_vm1, %v3735_v6  ;;  %3326 = vmatprep.subr.bf16.mxu0 %v3325_v15  ;;  %v4802_v15 = vld [vmem:[#allocation2 + $0x138] sm:$0xff] }
  0xbc   : > { %949 = vst.msk [vmem:[#allocation2 + $0x308] sm:$0xff] %vm263_vm0, %v2994_v37  ;;  %950 = vst.msk [vmem:[#allocation2 + $0x350] sm:$0xff] %vm263_vm0, %v2995_v38  ;;  %v1526_v37 = vld [vmem:[#allocation2 + $0x8d8] sm:$0xff] }
  0xbd   : > { %981 = vst.msk [vmem:[#allocation2 + $0x308] sm:$0xff] %vm296_vm1, %v3735_v6  ;;  %982 = vst.msk [vmem:[#allocation2 + $0x350] sm:$0xff] %vm296_vm1, %v3735_v6  ;;  %v1246_v38 = vld [vmem:[#allocation2 + $0x18] sm:$0xff] }
  0xbe   : > { %467 = vst.msk [vmem:[#allocation2 + $0x2e0] sm:$0xff] %vm263_vm0, %v435_v41  ;;  %468 = vst.msk [vmem:[#allocation2 + $0x328] sm:$0xff] %vm263_vm0, %v436_v42  ;;  %v1259_v41 = vld [vmem:[#allocation2 + $0x80] sm:$0xff]  ;;  %v3205_v50 = vpack.c.bf16 %v1255_v39, %v1246_v38  ;;  %v1126_v39 = vld [vmem:[%s5755_s2 + $0xd8] sm:$0xff] }
  0xbf   : > { %853 = vst.msk [vmem:[#allocation2 + $0x300] sm:$0xff] %vm263_vm0, %v2962_v43  ;;  %566 = vst.msk [vmem:[#allocation2 + $0x378] sm:$0xff] %vm263_vm0, %v2962_v43  ;;  %v3004_v42 = vld [vmem:[%s3775_s20 + $0x121] sm:$0xff]  ;;  %v3005_v43 = vld [vmem:[%s3775_s20 + $0x129] sm:$0xff] }
  0xc0   : > { %499 = vst.msk [vmem:[#allocation2 + $0x2e0] sm:$0xff] %vm296_vm1, %v3735_v6  ;;  %500 = vst.msk [vmem:[#allocation2 + $0x328] sm:$0xff] %vm296_vm1, %v3735_v6  ;;  %3200 = vmatpush1.bf16.xpose.msra.mxu1 %v3199_v24  ;;  %v450_v24 = vld [vmem:[%s3775_s20 + $0x12a] sm:$0xff]  ;;  %v1131_v38 = vld [vmem:[%s5755_s2 + $0x100] sm:$0xff] }
  0xc1   : > { %854 = vst.msk [vmem:[#allocation2 + $0x348] sm:$0xff] %vm263_vm0, %v2963_v44  ;;  %567 = vst.msk [vmem:[#allocation2 + $0x3c0] sm:$0xff] %vm263_vm0, %v2963_v44  ;;  %3328 = vmatpush1.bf16.xpose.msra.mxu0 %v3327_v25  ;;  %3202 = vmatprep.subr.bf16.mxu1 %v3201_v26  ;;  %v445_v44 = vld [vmem:[%s3775_s20 + $0xf2] sm:$0xff] }
  0xc2   : > { %885 = vst.msk [vmem:[#allocation2 + $0x300] sm:$0xff] %vm296_vm1, %v3735_v6  ;;  %598 = vst.msk [vmem:[#allocation2 + $0x378] sm:$0xff] %vm296_vm1, %v3735_v6  ;;  %3330 = vmatprep.subr.bf16.mxu0 %v3329_v28  ;;  %v2976_v25 = vld [vmem:[%s3775_s20 + $0x150] sm:$0xff]  ;;  %v1286_v26 = vld [vmem:[#allocation2 + $0x158] sm:$0xff]  ;;  %v3211_v28 = vpack.c.bf16 %v4788_v10, %v4786_v9 }
  0xc3   : > { %951 = vst.msk [vmem:[#allocation2 + $0x398] sm:$0xff] %vm263_vm0, %v2996_v45  ;;  %952 = vst.msk [vmem:[#allocation2 + $0x3e0] sm:$0xff] %vm263_vm0, %v2997_v46  ;;  %v446_v45 = vld [vmem:[%s3775_s20 + $0xfa] sm:$0xff]  ;;  %v1148_v9 = vld [vmem:[%s5755_s2 + $0x188] sm:$0xff] }
  0xc4   : > { %886 = vst.msk [vmem:[#allocation2 + $0x348] sm:$0xff] %vm296_vm1, %v3735_v6  ;;  %599 = vst.msk [vmem:[#allocation2 + $0x3c0] sm:$0xff] %vm296_vm1, %v3735_v6  ;;  %v2972_v46 = vld [vmem:[%s3775_s20 + $0x120] sm:$0xff]  ;;  %v1154_v10 = vld [vmem:[%s5755_s2 + $0x1b8] sm:$0xff] }
  0xc5   : > { %983 = vst.msk [vmem:[#allocation2 + $0x398] sm:$0xff] %vm296_vm1, %v3735_v6  ;;  %984 = vst.msk [vmem:[#allocation2 + $0x3e0] sm:$0xff] %vm296_vm1, %v3735_v6 }
  0xc6   : > { %469 = vst.msk [vmem:[#allocation2 + $0x370] sm:$0xff] %vm263_vm0, %v437_v47  ;;  %470 = vst.msk [vmem:[#allocation2 + $0x3b8] sm:$0xff] %vm263_vm0, %v438_v48  ;;  %v3203_v47 = vpack.c.bf16 %v1522_v35, %v1513_v32  ;;  %v2973_v48 = vld [vmem:[%s3775_s20 + $0x128] sm:$0xff]  ;;  %v3213_v32 = vpack.c.bf16 %v4804_v16, %v4802_v15  ;;  %v1127_v35 = vld [vmem:[%s5755_s2 + $0xe0] sm:$0xff] }
  0xc7   : > { %855 = vst.msk [vmem:[#allocation2 + $0x390] sm:$0xff] %vm263_vm0, %v2964_v49  ;;  %568 = vst.msk [vmem:[#allocation2 + $0x408] sm:$0xff] %vm263_vm0, %v2964_v49  ;;  %v3331_v49 = vpack.c.bf16 %v1526_v37, %v1517_v36  ;;  %v4873_v36 = vld [vmem:[#allocation2 + $0x130] sm:$0xff]  ;;  %v4875_v37 = vld [vmem:[#allocation2 + $0x178] sm:$0xff] }
  0xc8   : > { %501 = vst.msk [vmem:[#allocation2 + $0x370] sm:$0xff] %vm296_vm1, %v3735_v6  ;;  %502 = vst.msk [vmem:[#allocation2 + $0x3b8] sm:$0xff] %vm296_vm1, %v3735_v6  ;;  %3204 = vmatpush1.bf16.xpose.msra.mxu1 %v3203_v47  ;;  %v452_v47 = vld [vmem:[%s3775_s20 + $0x142] sm:$0xff]  ;;  %v1322_v15 = vld [vmem:[#allocation2 + $0x278] sm:$0xff] }
  0xc9   : > { %856 = vst.msk [vmem:[#allocation2 + $0x3d8] sm:$0xff] %vm263_vm0, %v2965_v51  ;;  %569 = vst.msk [vmem:[#allocation2 + $0x450] sm:$0xff] %vm263_vm0, %v2965_v51  ;;  %v3333_v51 = vpack.c.bf16 %v1259_v41, %v1250_v40  ;;  %3332 = vmatpush1.bf16.xpose.msra.mxu0 %v3331_v49  ;;  %3206 = vmatprep.subr.bf16.mxu1 %v3205_v50  ;;  %v1130_v40 = vld [vmem:[%s5755_s2 + $0xf8] sm:$0xff]  ;;  %v4886_v41 = vld [vmem:[#allocation2 + $0x150] sm:$0xff] }
  0xca   : > { %887 = vst.msk [vmem:[#allocation2 + $0x390] sm:$0xff] %vm296_vm1, %v3735_v6  ;;  %600 = vst.msk [vmem:[#allocation2 + $0x408] sm:$0xff] %vm296_vm1, %v3735_v6  ;;  %v1300_v49 = vld [vmem:[#allocation2 + $0x1c8] sm:$0xff]  ;;  %v1309_v50 = vld [vmem:[#allocation2 + $0x210] sm:$0xff] }
  0xcb   : > { %953 = vst.msk [vmem:[#allocation2 + $0x428] sm:$0xff] %vm263_vm0, %v2998_v52  ;;  %954 = vst.msk [vmem:[#allocation2 + $0x470] sm:$0xff] %vm263_vm0, %v2999_v53  ;;  %v1245_v52 = vld [vmem:[#allocation2 + $0x10] sm:$0xff]  ;;  %v1254_v53 = vld [vmem:[#allocation2 + $0x58] sm:$0xff]  ;;  %3334 = vmatprep.subr.bf16.mxu0 %v3333_v51 }
  0xcc   : > { %888 = vst.msk [vmem:[#allocation2 + $0x3d8] sm:$0xff] %vm296_vm1, %v3735_v6  ;;  %601 = vst.msk [vmem:[#allocation2 + $0x450] sm:$0xff] %vm296_vm1, %v3735_v6  ;;  %v1140_v51 = vld [vmem:[%s5755_s2 + $0x148] sm:$0xff]  ;;  %v1331_v16 = vld [vmem:[#allocation2 + $0x2c0] sm:$0xff] }
  0xcd   : > { %985 = vst.msk [vmem:[#allocation2 + $0x428] sm:$0xff] %vm296_vm1, %v3735_v6  ;;  %986 = vst.msk [vmem:[#allocation2 + $0x470] sm:$0xff] %vm296_vm1, %v3735_v6 }
  0xce   : > { %471 = vst.msk [vmem:[#allocation2 + $0x400] sm:$0xff] %vm263_vm0, %v439_v56  ;;  %472 = vst.msk [vmem:[#allocation2 + $0x448] sm:$0xff] %vm263_vm0, %v440_v57  ;;  %v1258_v56 = vld [vmem:[#allocation2 + $0x78] sm:$0xff]  ;;  %v1273_v57 = vld [vmem:[#allocation2 + $0xf0] sm:$0xff] }
  0xcf   : > { %857 = vst.msk [vmem:[#allocation2 + $0x420] sm:$0xff] %vm263_vm0, %v2966_v58  ;;  %570 = vst.msk [vmem:[#allocation2 + $0x498] sm:$0xff] %vm263_vm0, %v2966_v58  ;;  %v3006_v58 = vld [vmem:[%s3775_s20 + $0x139] sm:$0xff]  ;;  %v3335_v4 = vpack.c.bf16 %v1258_v56, %v1249_v54  ;;  %v3209_v5 = vpack.c.bf16 %v1273_v57, %v1264_v55  ;;  %v3215_v54 = vpack.c.bf16 %v4875_v37, %v4873_v36  ;;  %v2979_v56 = vld [vmem:[%s3775_s20 + $0x170] sm:$0xff] }
  0xd0   : > { %503 = vst.msk [vmem:[#allocation2 + $0x400] sm:$0xff] %vm296_vm1, %v3735_v6  ;;  %504 = vst.msk [vmem:[#allocation2 + $0x448] sm:$0xff] %vm296_vm1, %v3735_v6  ;;  %1918 = vmatmul.mubr.f32.vlgmr.msra.gmra.mrb[0].mxu0 %v1103_v3  ;;  %v1135_v55 = vld [vmem:[%s5755_s2 + $0x120] sm:$0xff]  ;;  %v1336_v36 = vld [vmem:[#allocation2 + $0x2e8] sm:$0xff] }
  0xd1   : > { %858 = vst.msk [vmem:[#allocation2 + $0x468] sm:$0xff] %vm263_vm0, %v2967_v60  ;;  %571 = vst.msk [vmem:[#allocation2 + $0x4e0] sm:$0xff] %vm263_vm0, %v2967_v60  ;;  %v447_v60 = vld [vmem:[%s3775_s20 + $0x10a] sm:$0xff]  ;;  %3336 = vmatpush1.bf16.xpose.msra.mxu0 %v3335_v4  ;;  %1923 = vmatprep.mubr.f32.mxu0 %v1113_v12  ;;  %v4956_v3 = vld [vmem:[#allocation2 + $0x1e0] sm:$0xff] }
  0xd2   : > { %889 = vst.msk [vmem:[#allocation2 + $0x420] sm:$0xff] %vm296_vm1, %v3735_v6  ;;  %602 = vst.msk [vmem:[#allocation2 + $0x498] sm:$0xff] %vm296_vm1, %v3735_v6  ;;  %v4958_v4 = vld [vmem:[#allocation2 + $0x228] sm:$0xff]  ;;  %v1318_v12 = vld [vmem:[#allocation2 + $0x258] sm:$0xff] }
  0xd3   : > { %955 = vst.msk [vmem:[#allocation2 + $0x4b8] sm:$0xff] %vm263_vm0, %v3000_v61  ;;  %956 = vst.msk [vmem:[#allocation2 + $0x500] sm:$0xff] %vm263_vm0, %v3001_v62  ;;  %v448_v61 = vld [vmem:[%s3775_s20 + $0x112] sm:$0xff]  ;;  %v1268_v62 = vld [vmem:[#allocation2 + $0xc8] sm:$0xff] }
  0xd4   : > { %890 = vst.msk [vmem:[#allocation2 + $0x468] sm:$0xff] %vm296_vm1, %v3735_v6  ;;  %603 = vst.msk [vmem:[#allocation2 + $0x4e0] sm:$0xff] %vm296_vm1, %v3735_v6  ;;  %1924 = vmatmul.mubr.f32.gmra.mrb[2].mxu0 %v1112_v18  ;;  %v1166_v37 = vld [vmem:[%s5755_s2 + $0x218] sm:$0xff] }
  0xd5   : > { %987 = vst.msk [vmem:[#allocation2 + $0x4b8] sm:$0xff] %vm296_vm1, %v3735_v6  ;;  %988 = vst.msk [vmem:[#allocation2 + $0x500] sm:$0xff] %vm296_vm1, %v3735_v6  ;;  %1929 = vmatprep.mubr.f32.mxu0 %v1122_v23  ;;  %v3349_v23 = vpack.c.bf16 %v1331_v16, %v1322_v15  ;;  %v1366_v15 = vld [vmem:[#allocation2 + $0x3d8] sm:$0xff]  ;;  %v1372_v16 = vld [vmem:[#allocation2 + $0x408] sm:$0xff] }
  0xd6   : > { %473 = vst.msk [vmem:[#allocation2 + $0x490] sm:$0xff] %vm263_vm0, %v441_v63  ;;  %474 = vst.msk [vmem:[#allocation2 + $0x4d8] sm:$0xff] %vm263_vm0, %v442_v0  ;;  %v1277_v63 = vld [vmem:[#allocation2 + $0x110] sm:$0xff]  ;;  %v2974_v0 = vld [vmem:[%s3775_s20 + $0x138] sm:$0xff] }
  0xd7   : > { %859 = vst.msk [vmem:[#allocation2 + $0x4b0] sm:$0xff] %vm263_vm0, %v2968_v1  ;;  %572 = vst.msk [vmem:[#allocation2 + $0x528] sm:$0xff] %vm263_vm0, %v2968_v1  ;;  %v1099_v1 = vld [vmem:[%s5755_s2] sm:$0xff]  ;;  %v3337_v7 = vpack.c.bf16 %v1277_v63, %v1268_v62  ;;  %v4947_v63 = vld [vmem:[#allocation2 + $0x208] sm:$0xff] }
  0xd8   : > { %505 = vst.msk [vmem:[#allocation2 + $0x490] sm:$0xff] %vm296_vm1, %v3735_v6  ;;  %506 = vst.msk [vmem:[#allocation2 + $0x4d8] sm:$0xff] %vm296_vm1, %v3735_v6  ;;  %1596 = vmatmul.mubr.f32.vlgmr.msra.gmra.mrb[0].mxu1 %v1099_v1  ;;  %v4945_v62 = vld [vmem:[#allocation2 + $0x1c0] sm:$0xff]  ;;  %v1144_v1 = vld [vmem:[%s5755_s2 + $0x168] sm:$0xff] }
  0xd9   : > { %860 = vst.msk [vmem:[#allocation2 + $0x4f8] sm:$0xff] %vm263_vm0, %v2969_v2  ;;  %573 = vst.msk [vmem:[#allocation2 + $0x570] sm:$0xff] %vm263_vm0, %v2969_v2  ;;  %v3207_v2 = vpack.c.bf16 %v1254_v53, %v1245_v52  ;;  %3338 = vmatprep.subr.bf16.mxu0 %v3337_v7  ;;  %1601 = vmatprep.mubr.f32.mxu1 %v1109_v11  ;;  %v1304_v52 = vld [vmem:[#allocation2 + $0x1e8] sm:$0xff]  ;;  %v1313_v53 = vld [vmem:[#allocation2 + $0x230] sm:$0xff]  ;;  %v3219_v18 = vpack.c.bf16 %v4947_v63, %v4945_v62 }
  0xda   : > { %891 = vst.msk [vmem:[#allocation2 + $0x4b0] sm:$0xff] %vm296_vm1, %v3735_v6  ;;  %604 = vst.msk [vmem:[#allocation2 + $0x528] sm:$0xff] %vm296_vm1, %v3735_v6  ;;  %v453_v7 = vld [vmem:[%s3775_s20 + $0x152] sm:$0xff]  ;;  %v2980_v11 = vld [vmem:[%s3775_s20 + $0x180] sm:$0xff] }
  0xdb   : > { %892 = vst.msk [vmem:[#allocation2 + $0x4f8] sm:$0xff] %vm296_vm1, %v3735_v6  ;;  %605 = vst.msk [vmem:[#allocation2 + $0x570] sm:$0xff] %vm296_vm1, %v3735_v6  ;;  %3208 = vmatpush1.bf16.xpose.msra.mxu1 %v3207_v2  ;;  %v3012_v2 = vld [vmem:[%s3775_s20 + $0x181] sm:$0xff]  ;;  %v1194_v63 = vld [vmem:[%s5755_s2 + $0x2f8] sm:$0xff] }
  0xdc   : > { %957 = vst.msk [vmem:[#allocation2 + $0x548] sm:$0xff] %vm263_vm0, %v3002_v27  ;;  %958 = vst.msk [vmem:[#allocation2 + $0x590] sm:$0xff] %vm263_vm0, %v3003_v29  ;;  %3210 = vmatprep.subr.bf16.mxu1 %v3209_v5  ;;  %v1295_v27 = vld [vmem:[#allocation2 + $0x1a0] sm:$0xff]  ;;  %1602 = vmatmul.mubr.f32.gmra.mrb[2].mxu1 %v1108_v17  ;;  %v1117_v29 = vld [vmem:[%s5755_s2 + $0x90] sm:$0xff] }
  0xdd   : > { %989 = vst.msk [vmem:[#allocation2 + $0x548] sm:$0xff] %vm296_vm1, %v3735_v6  ;;  %990 = vst.msk [vmem:[#allocation2 + $0x590] sm:$0xff] %vm296_vm1, %v3735_v6  ;;  %1607 = vmatprep.mubr.f32.mxu1 %v1118_v19  ;;  %v3013_v5 = vld [vmem:[%s3775_s20 + $0x189] sm:$0xff]  ;;  %v1363_v62 = vld [vmem:[#allocation2 + $0x3c0] sm:$0xff] }
  0xde   : > { %475 = vst.msk [vmem:[#allocation2 + $0x520] sm:$0xff] %vm263_vm0, %v443_v30  ;;  %476 = vst.msk [vmem:[#allocation2 + $0x568] sm:$0xff] %vm263_vm0, %v444_v31  ;;  %v2977_v30 = vld [vmem:[%s3775_s20 + $0x158] sm:$0xff]  ;;  %v3339_v31 = vpack.c.bf16 %v4800_v14, %v4798_v13  ;;  %v1327_v13 = vld [vmem:[#allocation2 + $0x2a0] sm:$0xff] }
  0xdf   : > { %507 = vst.msk [vmem:[#allocation2 + $0x520] sm:$0xff] %vm296_vm1, %v3735_v6  ;;  %508 = vst.msk [vmem:[#allocation2 + $0x568] sm:$0xff] %vm296_vm1, %v3735_v6  ;;  %v1158_v14 = vld [vmem:[%s5755_s2 + $0x1d8] sm:$0xff]  ;;  %v2981_v17 = vld [vmem:[%s3775_s20 + $0x188] sm:$0xff] }
  0xe0   : > { %861 = vst.msk [vmem:[#allocation2 + $0x540] sm:$0xff] %vm263_vm0, %v2970_v33  ;;  %862 = vst.msk [vmem:[#allocation2 + $0x588] sm:$0xff] %vm263_vm0, %v2971_v34  ;;  %1608 = vmatmul.mubr.f32.gmra.mrb[4].mxu1 %v1117_v29  ;;  %3340 = vmatpush1.bf16.xpose.msra.mxu0 %v3339_v31  ;;  %v1153_v19 = vld [vmem:[%s5755_s2 + $0x1b0] sm:$0xff]  ;;  %v3015_v29 = vld [vmem:[%s3775_s20 + $0x1a1] sm:$0xff] }
  0xe1   : > { %574 = vst.msk [vmem:[#allocation2 + $0x5b8] sm:$0xff] %vm263_vm0, %v2970_v33  ;;  %575 = vst.msk [vmem:[#allocation2 + $0x600] sm:$0xff] %vm263_vm0, %v2971_v34  ;;  %v1121_v33 = vld [vmem:[%s5755_s2 + $0xb0] sm:$0xff]  ;;  %v3341_v34 = vpack.c.bf16 %v1295_v27, %v1286_v26  ;;  %1613 = vmatprep.mubr.f32.mxu1 %v1127_v35  ;;  %v1326_v27 = vld [vmem:[#allocation2 + $0x298] sm:$0xff] }
  0xe2   : > { %893 = vst.msk [vmem:[#allocation2 + $0x540] sm:$0xff] %vm296_vm1, %v3735_v6  ;;  %894 = vst.msk [vmem:[#allocation2 + $0x588] sm:$0xff] %vm296_vm1, %v3735_v6  ;;  %1930 = vmatmul.mubr.f32.gmra.mrb[4].mxu0 %v1121_v33  ;;  %v1317_v26 = vld [vmem:[#allocation2 + $0x250] sm:$0xff]  ;;  %v1162_v33 = vld [vmem:[%s5755_s2 + $0x1f8] sm:$0xff] }
  0xe3   : > { %606 = vst.msk [vmem:[#allocation2 + $0x5b8] sm:$0xff] %vm296_vm1, %v3735_v6  ;;  %607 = vst.msk [vmem:[#allocation2 + $0x600] sm:$0xff] %vm296_vm1, %v3735_v6  ;;  %3212 = vmatpush1.bf16.xpose.msra.mxu1 %v3211_v28  ;;  %3342 = vmatprep.subr.bf16.mxu0 %v3341_v34  ;;  %v3014_v28 = vld [vmem:[%s3775_s20 + $0x199] sm:$0xff]  ;;  %v1321_v31 = vld [vmem:[#allocation2 + $0x270] sm:$0xff] }
  0xe4   : > { %959 = vst.msk [vmem:[#allocation2 + $0x5d8] sm:$0xff] %vm263_vm0, %v3004_v42  ;;  %960 = vst.msk [vmem:[#allocation2 + $0x620] sm:$0xff] %vm263_vm0, %v3005_v43  ;;  %v4888_v42 = vld [vmem:[#allocation2 + $0x198] sm:$0xff]  ;;  %v1136_v43 = vld [vmem:[%s5755_s2 + $0x128] sm:$0xff]  ;;  %3214 = vmatprep.subr.bf16.mxu1 %v3213_v32  ;;  %1935 = vmatprep.mubr.f32.mxu0 %v1131_v38 }
  0xe5   : > { %991 = vst.msk [vmem:[#allocation2 + $0x5d8] sm:$0xff] %vm296_vm1, %v3735_v6  ;;  %992 = vst.msk [vmem:[#allocation2 + $0x620] sm:$0xff] %vm296_vm1, %v3735_v6  ;;  %1614 = vmatmul.mubr.f32.gmra.mrb[6].mxu1 %v1126_v39  ;;  %v3343_v57 = vpack.c.bf16 %v4888_v42, %v4886_v41  ;;  %v1330_v32 = vld [vmem:[#allocation2 + $0x2b8] sm:$0xff]  ;;  %v1172_v38 = vld [vmem:[%s5755_s2 + $0x248] sm:$0xff] }
  0xe6   : > { %477 = vst.msk [vmem:[#allocation2 + $0x5b0] sm:$0xff] %vm263_vm0, %v445_v44  ;;  %478 = vst.msk [vmem:[#allocation2 + $0x5f8] sm:$0xff] %vm263_vm0, %v446_v45  ;;  %1936 = vmatmul.mubr.f32.gmra.mrb[6].mxu0 %v1130_v40  ;;  %1619 = vmatprep.mubr.f32.mxu1 %v1136_v43  ;;  %v456_v34 = vld [vmem:[%s3775_s20 + $0x172] sm:$0xff]  ;;  %v1176_v40 = vld [vmem:[%s5755_s2 + $0x268] sm:$0xff] }
  0xe7   : > { %863 = vst.msk [vmem:[#allocation2 + $0x5d0] sm:$0xff] %vm263_vm0, %v2972_v46  ;;  %576 = vst.msk [vmem:[#allocation2 + $0x648] sm:$0xff] %vm263_vm0, %v2972_v46  ;;  %v451_v46 = vld [vmem:[%s3775_s20 + $0x13a] sm:$0xff]  ;;  %1941 = vmatprep.mubr.f32.mxu0 %v1140_v51  ;;  %v1345_v39 = vld [vmem:[#allocation2 + $0x330] sm:$0xff] }
  0xe8   : > { %1051 = vst.msk [vmem:[#allocation2 + $0x4c0] sm:$0xff] %vm263_vm0, %v445_v44  ;;  %1052 = vst.msk [vmem:[#allocation2 + $0x508] sm:$0xff] %vm263_vm0, %v446_v45  ;;  %v3010_v44 = vld [vmem:[%s3775_s20 + $0x169] sm:$0xff]  ;;  %v3011_v45 = vld [vmem:[%s3775_s20 + $0x171] sm:$0xff]  ;;  %3344 = vmatpush1.bf16.xpose.msra.mxu0 %v3343_v57 }
  0xe9   : > { %509 = vst.msk [vmem:[#allocation2 + $0x5b0] sm:$0xff] %vm296_vm1, %v3735_v6  ;;  %510 = vst.msk [vmem:[#allocation2 + $0x5f8] sm:$0xff] %vm296_vm1, %v3735_v6  ;;  %1620 = vmatmul.mubr.f32.gmra.mrb[8].mxu1 %v1135_v55  ;;  %v2982_v35 = vld [vmem:[%s3775_s20 + $0x198] sm:$0xff]  ;;  %v2983_v41 = vld [vmem:[%s3775_s20 + $0x1a0] sm:$0xff] }
  0xea   : > { %864 = vst.msk [vmem:[#allocation2 + $0x618] sm:$0xff] %vm263_vm0, %v2973_v48  ;;  %577 = vst.msk [vmem:[#allocation2 + $0x690] sm:$0xff] %vm263_vm0, %v2973_v48  ;;  %v2978_v48 = vld [vmem:[%s3775_s20 + $0x168] sm:$0xff]  ;;  %v1349_v43 = vld [vmem:[#allocation2 + $0x350] sm:$0xff] }
  0xeb   : > { %895 = vst.msk [vmem:[#allocation2 + $0x5d0] sm:$0xff] %vm296_vm1, %v3735_v6  ;;  %608 = vst.msk [vmem:[#allocation2 + $0x648] sm:$0xff] %vm296_vm1, %v3735_v6  ;;  %3216 = vmatpush1.bf16.xpose.msra.mxu1 %v3215_v54  ;;  %v1340_v42 = vld [vmem:[#allocation2 + $0x308] sm:$0xff]  ;;  %v3017_v54 = vld [vmem:[%s3775_s20 + $0x3a] sm:$0xff] }
  0xec   : > { %1083 = vst.msk [vmem:[#allocation2 + $0x4c0] sm:$0xff] %vm296_vm1, %v3735_v6  ;;  %1084 = vst.msk [vmem:[#allocation2 + $0x508] sm:$0xff] %vm296_vm1, %v3735_v6  ;;  %v1344_v51 = vld [vmem:[#allocation2 + $0x328] sm:$0xff]  ;;  %v1339_v55 = vld [vmem:[#allocation2 + $0x300] sm:$0xff] }
  0xed   : > { %896 = vst.msk [vmem:[#allocation2 + $0x618] sm:$0xff] %vm296_vm1, %v3735_v6  ;;  %609 = vst.msk [vmem:[#allocation2 + $0x690] sm:$0xff] %vm296_vm1, %v3735_v6  ;;  %v1180_v57 = vld [vmem:[%s5755_s2 + $0x288] sm:$0xff] }
  0xee   : > { %961 = vst.msk [vmem:[#allocation2 + $0x668] sm:$0xff] %vm263_vm0, %v3006_v58  ;;  %962 = vst.msk [vmem:[#allocation2 + $0x6b0] sm:$0xff] %vm263_vm0, %v3007_v59  ;;  %v3217_v58 = vpack.c.bf16 %v1309_v50, %v1300_v49  ;;  %v1139_v59 = vld [vmem:[%s5755_s2 + $0x140] sm:$0xff]  ;;  %v3353_v49 = vpack.c.bf16 %v1349_v43, %v1340_v42  ;;  %v1390_v42 = vld [vmem:[#allocation2 + $0x498] sm:$0xff] }
  0xef   : > { %993 = vst.msk [vmem:[#allocation2 + $0x668] sm:$0xff] %vm296_vm1, %v3735_v6  ;;  %994 = vst.msk [vmem:[#allocation2 + $0x6b0] sm:$0xff] %vm296_vm1, %v3735_v6  ;;  %1942 = vmatmul.mubr.f32.gmra.mrb[8].mxu0 %v1139_v59  ;;  %v1335_v50 = vld [vmem:[#allocation2 + $0x2e0] sm:$0xff]  ;;  %v1184_v59 = vld [vmem:[%s5755_s2 + $0x2a8] sm:$0xff] }
  0xf0   : > { %479 = vst.msk [vmem:[#allocation2 + $0x640] sm:$0xff] %vm263_vm0, %v447_v60  ;;  %480 = vst.msk [vmem:[#allocation2 + $0x688] sm:$0xff] %vm263_vm0, %v448_v61  ;;  %3218 = vmatprep.subr.bf16.mxu1 %v3217_v58  ;;  %v1348_v58 = vld [vmem:[#allocation2 + $0x348] sm:$0xff] }
  0xf1   : > { %1053 = vst.msk [vmem:[#allocation2 + $0x550] sm:$0xff] %vm263_vm0, %v447_v60  ;;  %1054 = vst.msk [vmem:[#allocation2 + $0x598] sm:$0xff] %vm263_vm0, %v448_v61  ;;  %v3345_v60 = vpack.c.bf16 %v1313_v53, %v1304_v52  ;;  %v1145_v61 = vld [vmem:[%s5755_s2 + $0x170] sm:$0xff]  ;;  %v1220_v43 = vld [vmem:[%s5755_s2 + $0x3c8] sm:$0xff] }
  0xf2   : > { %511 = vst.msk [vmem:[#allocation2 + $0x640] sm:$0xff] %vm296_vm1, %v3735_v6  ;;  %512 = vst.msk [vmem:[#allocation2 + $0x688] sm:$0xff] %vm296_vm1, %v3735_v6  ;;  %1625 = vmatprep.mubr.f32.mxu1 %v1145_v61  ;;  %v1181_v52 = vld [vmem:[%s5755_s2 + $0x290] sm:$0xff]  ;;  %v1354_v61 = vld [vmem:[#allocation2 + $0x378] sm:$0xff] }
  0xf3   : > { %865 = vst.msk [vmem:[#allocation2 + $0x660] sm:$0xff] %vm263_vm0, %v2974_v0  ;;  %578 = vst.msk [vmem:[#allocation2 + $0x6d8] sm:$0xff] %vm263_vm0, %v2974_v0  ;;  %v1149_v0 = vld [vmem:[%s5755_s2 + $0x190] sm:$0xff]  ;;  %3346 = vmatprep.subr.bf16.mxu0 %v3345_v60  ;;  %1626 = vmatmul.mubr.f32.gmra.mrb[10].mxu1 %v1144_v1  ;;  %v1190_v60 = vld [vmem:[%s5755_s2 + $0x2d8] sm:$0xff] }
  0xf4   : > { %1085 = vst.msk [vmem:[#allocation2 + $0x550] sm:$0xff] %vm296_vm1, %v3735_v6  ;;  %1086 = vst.msk [vmem:[#allocation2 + $0x598] sm:$0xff] %vm296_vm1, %v3735_v6  ;;  %1947 = vmatprep.mubr.f32.mxu0 %v1149_v0  ;;  %1631 = vmatprep.mubr.f32.mxu1 %v1154_v10  ;;  %v3016_v53 = vld [vmem:[%s3775_s20 + $0x32] sm:$0xff]  ;;  %v1367_v1 = vld [vmem:[#allocation2 + $0x3e0] sm:$0xff] }
  0xf5   : > { %897 = vst.msk [vmem:[#allocation2 + $0x660] sm:$0xff] %vm296_vm1, %v3735_v6  ;;  %610 = vst.msk [vmem:[#allocation2 + $0x6d8] sm:$0xff] %vm296_vm1, %v3735_v6  ;;  %1948 = vmatmul.mubr.f32.gmra.mrb[10].mxu0 %v1148_v9  ;;  %3220 = vmatpush1.bf16.xpose.msra.mxu1 %v3219_v18  ;;  %v1358_v0 = vld [vmem:[#allocation2 + $0x398] sm:$0xff] }
  0xf6   : > { %866 = vst.msk [vmem:[#allocation2 + $0x6a8] sm:$0xff] %vm263_vm0, %v2975_v8  ;;  %579 = vst.msk [vmem:[#allocation2 + $0x720] sm:$0xff] %vm263_vm0, %v2975_v8  ;;  %v454_v8 = vld [vmem:[%s3775_s20 + $0x15a] sm:$0xff]  ;;  %1953 = vmatprep.mubr.f32.mxu0 %v1158_v14  ;;  %v3019_v9 = vld [vmem:[%s3775_s20 + $0x52] sm:$0xff]  ;;  %v3357_v10 = vpack.c.bf16 %v1367_v1, %v1358_v0 }
  0xf7   : > { %898 = vst.msk [vmem:[#allocation2 + $0x6a8] sm:$0xff] %vm296_vm1, %v3735_v6  ;;  %611 = vst.msk [vmem:[#allocation2 + $0x720] sm:$0xff] %vm296_vm1, %v3735_v6  ;;  %1632 = vmatmul.mubr.f32.gmra.mrb[12].mxu1 %v1153_v19  ;;  %v1357_v14 = vld [vmem:[#allocation2 + $0x390] sm:$0xff]  ;;  %v1198_v18 = vld [vmem:[%s5755_s2 + $0x318] sm:$0xff] }
  0xf8   : > { %963 = vst.msk [vmem:[#allocation2 + $0x6f8] sm:$0xff] %vm263_vm0, %v3008_v20  ;;  %964 = vst.msk [vmem:[#allocation2 + $0x740] sm:$0xff] %vm263_vm0, %v3009_v21  ;;  %v3347_v20 = vpack.c.bf16 %v4958_v4, %v4956_v3  ;;  %v3221_v21 = vpack.c.bf16 %v1327_v13, %v1318_v12  ;;  %v1189_v3 = vld [vmem:[%s5755_s2 + $0x2d0] sm:$0xff]  ;;  %v3355_v4 = vpack.c.bf16 %v1348_v58, %v1339_v55  ;;  %v1362_v12 = vld [vmem:[#allocation2 + $0x3b8] sm:$0xff] }
  0xf9   : > { %481 = vst.msk [vmem:[#allocation2 + $0x6d0] sm:$0xff] %vm263_vm0, %v449_v22  ;;  %1055 = vst.msk [vmem:[#allocation2 + $0x5e0] sm:$0xff] %vm263_vm0, %v449_v22  ;;  %v1157_v22 = vld [vmem:[%s5755_s2 + $0x1d0] sm:$0xff]  ;;  %v1199_v13 = vld [vmem:[%s5755_s2 + $0x320] sm:$0xff] }
  0xfa   : > { %995 = vst.msk [vmem:[#allocation2 + $0x6f8] sm:$0xff] %vm296_vm1, %v3735_v6  ;;  %996 = vst.msk [vmem:[#allocation2 + $0x740] sm:$0xff] %vm296_vm1, %v3735_v6  ;;  %1954 = vmatmul.mubr.f32.gmra.mrb[12].mxu0 %v1157_v22  ;;  %3222 = vmatprep.subr.bf16.mxu1 %v3221_v21  ;;  %v1202_v19 = vld [vmem:[%s5755_s2 + $0x338] sm:$0xff]  ;;  %v3020_v21 = vld [vmem:[%s3775_s20 + $0x62] sm:$0xff] }
  0xfb   : > { %482 = vst.msk [vmem:[#allocation2 + $0x718] sm:$0xff] %vm263_vm0, %v450_v24  ;;  %867 = vst.msk [vmem:[#allocation2 + $0x6f0] sm:$0xff] %vm263_vm0, %v2976_v25  ;;  %3348 = vmatpush1.bf16.xpose.msra.mxu0 %v3347_v20  ;;  %v1208_v20 = vld [vmem:[%s5755_s2 + $0x368] sm:$0xff]  ;;  %v1381_v22 = vld [vmem:[#allocation2 + $0x450] sm:$0xff] }
  0xfc   : > { %513 = vst.msk [vmem:[#allocation2 + $0x6d0] sm:$0xff] %vm296_vm1, %v3735_v6  ;;  %1087 = vst.msk [vmem:[#allocation2 + $0x5e0] sm:$0xff] %vm296_vm1, %v3735_v6  ;;  %3350 = vmatprep.subr.bf16.mxu0 %v3349_v23  ;;  %v1212_v23 = vld [vmem:[%s5755_s2 + $0x388] sm:$0xff]  ;;  %v1229_v55 = vld [vmem:[%s5755_s2 + $0x410] sm:$0xff] }
  0xfd   : > { %580 = vst.msk [vmem:[#allocation2 + $0x768] sm:$0xff] %vm263_vm0, %v2976_v25  ;;  %1056 = vst.msk [vmem:[#allocation2 + $0x628] sm:$0xff] %vm263_vm0, %v450_v24  ;;  %v1163_v24 = vld [vmem:[%s5755_s2 + $0x200] sm:$0xff]  ;;  %v1398_v58 = vld [vmem:[#allocation2 + $0x4d8] sm:$0xff] }
  0xfe   : > { %514 = vst.msk [vmem:[#allocation2 + $0x718] sm:$0xff] %vm296_vm1, %v3735_v6  ;;  %899 = vst.msk [vmem:[#allocation2 + $0x6f0] sm:$0xff] %vm296_vm1, %v3735_v6  ;;  %v1167_v25 = vld [vmem:[%s5755_s2 + $0x220] sm:$0xff]  ;;  %1637 = vmatprep.mubr.f32.mxu1 %v1163_v24  ;;  %v3021_v24 = vld [vmem:[%s3775_s20 + $0x6a] sm:$0xff] }
  0xff   : > { %612 = vst.msk [vmem:[#allocation2 + $0x768] sm:$0xff] %vm296_vm1, %v3735_v6  ;;  %1088 = vst.msk [vmem:[#allocation2 + $0x628] sm:$0xff] %vm296_vm1, %v3735_v6  ;;  %1959 = vmatprep.mubr.f32.mxu0 %v1167_v25  ;;  %1638 = vmatmul.mubr.f32.gmra.mrb[14].mxu1 %v1162_v33  ;;  %v1376_v25 = vld [vmem:[#allocation2 + $0x428] sm:$0xff]  ;;  %v1234_v0 = vld [vmem:[%s5755_s2 + $0x438] sm:$0xff] }
 0x100   : > { %868 = vst.msk [vmem:[#allocation2 + $0x738] sm:$0xff] %vm263_vm0, %v2977_v30  ;;  %581 = vst.msk [vmem:[#allocation2 + $0x7b0] sm:$0xff] %vm263_vm0, %v2977_v30  ;;  %v455_v30 = vld [vmem:[%s3775_s20 + $0x16a] sm:$0xff]  ;;  %1960 = vmatmul.mubr.f32.gmra.mrb[14].mxu0 %v1166_v37  ;;  %1643 = vmatprep.mubr.f32.mxu1 %v1172_v38  ;;  %v1375_v38 = vld [vmem:[#allocation2 + $0x420] sm:$0xff] }
 0x101   : > { %900 = vst.msk [vmem:[#allocation2 + $0x738] sm:$0xff] %vm296_vm1, %v3735_v6  ;;  %613 = vst.msk [vmem:[#allocation2 + $0x7b0] sm:$0xff] %vm296_vm1, %v3735_v6  ;;  %1965 = vmatprep.mubr.f32.mxu0 %v1176_v40  ;;  %v1217_v37 = vld [vmem:[%s5755_s2 + $0x3b0] sm:$0xff] }
 0x102   : > { %965 = vst.msk [vmem:[#allocation2 + $0x788] sm:$0xff] %vm263_vm0, %v3010_v44  ;;  %966 = vst.msk [vmem:[#allocation2 + $0x7d0] sm:$0xff] %vm263_vm0, %v3011_v45  ;;  %v3223_v44 = vpack.c.bf16 %v1326_v27, %v1317_v26  ;;  %v1171_v45 = vld [vmem:[%s5755_s2 + $0x240] sm:$0xff]  ;;  %v1385_v26 = vld [vmem:[#allocation2 + $0x470] sm:$0xff] }
 0x103   : > { %997 = vst.msk [vmem:[#allocation2 + $0x788] sm:$0xff] %vm296_vm1, %v3735_v6  ;;  %998 = vst.msk [vmem:[#allocation2 + $0x7d0] sm:$0xff] %vm296_vm1, %v3735_v6  ;;  %1644 = vmatmul.mubr.f32.gmra.mrb[16].mxu1 %v1171_v45  ;;  %v3361_v33 = vpack.c.bf16 %v1385_v26, %v1376_v25  ;;  %v1221_v40 = vld [vmem:[%s5755_s2 + $0x3d0] sm:$0xff]  ;;  %v1399_v45 = vld [vmem:[#allocation2 + $0x4e0] sm:$0xff] }
 0x104   : > { %483 = vst.msk [vmem:[#allocation2 + $0x760] sm:$0xff] %vm263_vm0, %v451_v46  ;;  %484 = vst.msk [vmem:[#allocation2 + $0x7a8] sm:$0xff] %vm263_vm0, %v452_v47  ;;  %3224 = vmatpush1.bf16.xpose.msra.mxu1 %v3223_v44  ;;  %1649 = vmatprep.mubr.f32.mxu1 %v1181_v52  ;;  %v1226_v44 = vld [vmem:[%s5755_s2 + $0x3f8] sm:$0xff]  ;;  %v1225_v52 = vld [vmem:[%s5755_s2 + $0x3f0] sm:$0xff] }
 0x105   : > { %869 = vst.msk [vmem:[#allocation2 + $0x780] sm:$0xff] %vm263_vm0, %v2978_v48  ;;  %582 = vst.msk [vmem:[#allocation2 + $0x7f8] sm:$0xff] %vm263_vm0, %v2978_v48  ;;  %v1175_v48 = vld [vmem:[%s5755_s2 + $0x260] sm:$0xff]  ;;  %v3027_v1 = vld [vmem:[%s3775_s20 + $0xb2] sm:$0xff] }
 0x106   : > { %1057 = vst.msk [vmem:[#allocation2 + $0x670] sm:$0xff] %vm263_vm0, %v451_v46  ;;  %1058 = vst.msk [vmem:[#allocation2 + $0x6b8] sm:$0xff] %vm263_vm0, %v452_v47  ;;  %v3351_v46 = vpack.c.bf16 %v1330_v32, %v1321_v31  ;;  %v3225_v47 = vpack.c.bf16 %v1345_v39, %v1336_v36  ;;  %1966 = vmatmul.mubr.f32.gmra.mrb[16].mxu0 %v1175_v48  ;;  %v1211_v31 = vld [vmem:[%s5755_s2 + $0x380] sm:$0xff]  ;;  %v1380_v36 = vld [vmem:[#allocation2 + $0x448] sm:$0xff] }
 0x107   : > { %515 = vst.msk [vmem:[#allocation2 + $0x760] sm:$0xff] %vm296_vm1, %v3735_v6  ;;  %516 = vst.msk [vmem:[#allocation2 + $0x7a8] sm:$0xff] %vm296_vm1, %v3735_v6  ;;  %1650 = vmatmul.mubr.f32.gmra.mrb[18].mxu1 %v1180_v57  ;;  %v3022_v32 = vld [vmem:[%s3775_s20 + $0x7a] sm:$0xff]  ;;  %v1384_v39 = vld [vmem:[#allocation2 + $0x468] sm:$0xff] }
 0x108   : > { %901 = vst.msk [vmem:[#allocation2 + $0x780] sm:$0xff] %vm296_vm1, %v3735_v6  ;;  %614 = vst.msk [vmem:[#allocation2 + $0x7f8] sm:$0xff] %vm296_vm1, %v3735_v6  ;;  %3352 = vmatpush1.bf16.xpose.msra.mxu0 %v3351_v46  ;;  %3226 = vmatprep.subr.bf16.mxu1 %v3225_v47  ;;  %v1230_v46 = vld [vmem:[%s5755_s2 + $0x418] sm:$0xff]  ;;  %v1389_v57 = vld [vmem:[#allocation2 + $0x490] sm:$0xff] }
 0x109   : > { %1089 = vst.msk [vmem:[#allocation2 + $0x670] sm:$0xff] %vm296_vm1, %v3735_v6  ;;  %1090 = vst.msk [vmem:[#allocation2 + $0x6b8] sm:$0xff] %vm296_vm1, %v3735_v6  ;;  %3354 = vmatprep.subr.bf16.mxu0 %v3353_v49  ;;  %1655 = vmatprep.mubr.f32.mxu1 %v1190_v60  ;;  %v3024_v47 = vld [vmem:[%s3775_s20 + $0x92] sm:$0xff]  ;;  %v1403_v49 = vld [vmem:[#allocation2 + $0x500] sm:$0xff] }
 0x10a   : > { %870 = vst.msk [vmem:[#allocation2 + $0x7c8] sm:$0xff] %vm263_vm0, %v2979_v56  ;;  %583 = vst.msk [vmem:[#allocation2 + $0x840] sm:$0xff] %vm263_vm0, %v2979_v56  ;;  %v1185_v56 = vld [vmem:[%s5755_s2 + $0x2b0] sm:$0xff]  ;;  %v1394_v48 = vld [vmem:[#allocation2 + $0x4b8] sm:$0xff] }
 0x10b   : > { %902 = vst.msk [vmem:[#allocation2 + $0x7c8] sm:$0xff] %vm296_vm1, %v3735_v6  ;;  %615 = vst.msk [vmem:[#allocation2 + $0x840] sm:$0xff] %vm296_vm1, %v3735_v6  ;;  %1971 = vmatprep.mubr.f32.mxu0 %v1185_v56  ;;  %1656 = vmatmul.mubr.f32.gmra.mrb[20].mxu1 %v1189_v3  ;;  %v3365_v56 = vpack.c.bf16 %v1403_v49, %v1394_v48  ;;  %v3026_v60 = vld [vmem:[%s3775_s20 + $0xaa] sm:$0xff]  ;;  %v1238_v3 = vld [vmem:[%s5755_s2 + $0x458] sm:$0xff] }
 0x10c   : > { %967 = vst.msk [vmem:[#allocation2 + $0x818] sm:$0xff] %vm263_vm0, %v3012_v2  ;;  %968 = vst.msk [vmem:[#allocation2 + $0x860] sm:$0xff] %vm263_vm0, %v3013_v5  ;;  %v3227_v2 = vpack.c.bf16 %v1344_v51, %v1335_v50  ;;  %1972 = vmatmul.mubr.f32.gmra.mrb[18].mxu0 %v1184_v59  ;;  %v3229_v5 = vpack.c.bf16 %v1363_v62, %v1354_v61  ;;  %1661 = vmatprep.mubr.f32.mxu1 %v1199_v13  ;;  %v3025_v50 = vld [vmem:[%s3775_s20 + $0x9a] sm:$0xff]  ;;  %v1393_v61 = vld [vmem:[#allocation2 + $0x4b0] sm:$0xff] }
 0x10d   : > { %999 = vst.msk [vmem:[#allocation2 + $0x818] sm:$0xff] %vm296_vm1, %v3735_v6  ;;  %1000 = vst.msk [vmem:[#allocation2 + $0x860] sm:$0xff] %vm296_vm1, %v3735_v6  ;;  %1977 = vmatprep.mubr.f32.mxu0 %v1194_v63  ;;  %v1235_v59 = vld [vmem:[%s5755_s2 + $0x440] sm:$0xff]  ;;  %v1402_v62 = vld [vmem:[#allocation2 + $0x4f8] sm:$0xff] }
 0x10e   : > { %485 = vst.msk [vmem:[#allocation2 + $0x7f0] sm:$0xff] %vm263_vm0, %v453_v7  ;;  %486 = vst.msk [vmem:[#allocation2 + $0x838] sm:$0xff] %vm263_vm0, %v454_v8  ;;  %3228 = vmatpush1.bf16.xpose.msra.mxu1 %v3227_v2  ;;  %v1239_v63 = vld [vmem:[%s5755_s2 + $0x460] sm:$0xff]  ;;  %v1408_v2 = vld [vmem:[#allocation2 + $0x528] sm:$0xff] }
 0x10f   : > { %1059 = vst.msk [vmem:[#allocation2 + $0x700] sm:$0xff] %vm263_vm0, %v453_v7  ;;  %1060 = vst.msk [vmem:[#allocation2 + $0x748] sm:$0xff] %vm263_vm0, %v454_v8  ;;  %v1193_v7 = vld [vmem:[%s5755_s2 + $0x2f0] sm:$0xff]  ;;  %3230 = vmatprep.subr.bf16.mxu1 %v3229_v5  ;;  %1662 = vmatmul.mubr.f32.gmra.mrb[22].mxu1 %v1198_v18  ;;  %v3028_v13 = vld [vmem:[%s3775_s20 + $0xc2] sm:$0xff] }
 0x110   : > { %517 = vst.msk [vmem:[#allocation2 + $0x7f0] sm:$0xff] %vm296_vm1, %v3735_v6  ;;  %518 = vst.msk [vmem:[#allocation2 + $0x838] sm:$0xff] %vm296_vm1, %v3735_v6  ;;  %v3018_v8 = vld [vmem:[%s3775_s20 + $0x4a] sm:$0xff]  ;;  %1978 = vmatmul.mubr.f32.gmra.mrb[20].mxu0 %v1193_v7  ;;  %1667 = vmatprep.mubr.f32.mxu1 %v1208_v20  ;;  %v3046_v18 = vld [vmem:[%s3775_s20 + $0x19a] sm:$0xff] }
 0x111   : > { %871 = vst.msk [vmem:[#allocation2 + $0x810] sm:$0xff] %vm263_vm0, %v2980_v11  ;;  %584 = vst.msk [vmem:[#allocation2 + $0x888] sm:$0xff] %vm263_vm0, %v2980_v11  ;;  %v1353_v11 = vld [vmem:[#allocation2 + $0x370] sm:$0xff]  ;;  %3356 = vmatpush1.bf16.xpose.msra.mxu0 %v3355_v4  ;;  %v1102_v4 = vld [vmem:[%s5755_s2 + $0x18] sm:$0xff] }
 0x112   : > { %1091 = vst.msk [vmem:[#allocation2 + $0x700] sm:$0xff] %vm296_vm1, %v3735_v6  ;;  %1092 = vst.msk [vmem:[#allocation2 + $0x748] sm:$0xff] %vm296_vm1, %v3735_v6  ;;  %3358 = vmatprep.subr.bf16.mxu0 %v3357_v10  ;;  %v3231_v27 = vpack.c.bf16 %v1362_v12, %v1353_v11  ;;  %v1417_v5 = vld [vmem:[#allocation2 + $0x570] sm:$0xff]  ;;  %v1412_v7 = vld [vmem:[#allocation2 + $0x548] sm:$0xff]  ;;  %v3239_v12 = vpack.c.bf16 %v1398_v58, %v1389_v57 }
 0x113   : > { %903 = vst.msk [vmem:[#allocation2 + $0x810] sm:$0xff] %vm296_vm1, %v3735_v6  ;;  %616 = vst.msk [vmem:[#allocation2 + $0x888] sm:$0xff] %vm296_vm1, %v3735_v6  ;;  %v3044_v10 = vld [vmem:[%s3775_s20 + $0x182] sm:$0xff]  ;;  %v3045_v11 = vld [vmem:[%s3775_s20 + $0x18a] sm:$0xff] }
 0x114   : > { %872 = vst.msk [vmem:[#allocation2 + $0x858] sm:$0xff] %vm263_vm0, %v2981_v17  ;;  %585 = vst.msk [vmem:[#allocation2 + $0x8d0] sm:$0xff] %vm263_vm0, %v2981_v17  ;;  %v1203_v17 = vld [vmem:[%s5755_s2 + $0x340] sm:$0xff]  ;;  %v1420_v25 = vld [vmem:[#allocation2 + $0x588] sm:$0xff] }
 0x115   : > { %904 = vst.msk [vmem:[#allocation2 + $0x858] sm:$0xff] %vm296_vm1, %v3735_v6  ;;  %617 = vst.msk [vmem:[#allocation2 + $0x8d0] sm:$0xff] %vm296_vm1, %v3735_v6  ;;  %1983 = vmatprep.mubr.f32.mxu0 %v1203_v17  ;;  %v3047_v20 = vld [vmem:[%s3775_s20 + $0x1a2] sm:$0xff]  ;;  %v1426_v26 = vld [vmem:[#allocation2 + $0x5b8] sm:$0xff] }
 0x116   : > { %969 = vst.msk [vmem:[#allocation2 + $0x8a8] sm:$0xff] %vm263_vm0, %v3014_v28  ;;  %970 = vst.msk [vmem:[#allocation2 + $0x8f0] sm:$0xff] %vm263_vm0, %v3015_v29  ;;  %1984 = vmatmul.mubr.f32.gmra.mrb[22].mxu0 %v1202_v19  ;;  %v1207_v28 = vld [vmem:[%s5755_s2 + $0x360] sm:$0xff]  ;;  %v3359_v29 = vpack.c.bf16 %v1366_v15, %v1357_v14  ;;  %3232 = vmatpush1.bf16.xpose.msra.mxu1 %v3231_v27  ;;  %v3029_v14 = vld [vmem:[%s3775_s20 + $0xca] sm:$0xff]  ;;  %v3367_v15 = vpack.c.bf16 %v1402_v62, %v1393_v61 }
 0x117   : > { %487 = vst.msk [vmem:[#allocation2 + $0x880] sm:$0xff] %vm263_vm0, %v455_v30  ;;  %1061 = vst.msk [vmem:[#allocation2 + $0x790] sm:$0xff] %vm263_vm0, %v455_v30  ;;  %v3233_v30 = vpack.c.bf16 %v1381_v22, %v1372_v16  ;;  %1989 = vmatprep.mubr.f32.mxu0 %v1212_v23  ;;  %1668 = vmatmul.mubr.f32.gmra.mrb[24].mxu1 %v1207_v28  ;;  %v3241_v16 = vpack.c.bf16 %v1417_v5, %v1408_v2  ;;  %v1407_v19 = vld [vmem:[#allocation2 + $0x520] sm:$0xff]  ;;  %v1416_v22 = vld [vmem:[#allocation2 + $0x568] sm:$0xff] }
 0x118   : > { %1001 = vst.msk [vmem:[#allocation2 + $0x8a8] sm:$0xff] %vm296_vm1, %v3735_v6  ;;  %1002 = vst.msk [vmem:[#allocation2 + $0x8f0] sm:$0xff] %vm296_vm1, %v3735_v6  ;;  %1673 = vmatprep.mubr.f32.mxu1 %v1217_v37  ;;  %v1411_v23 = vld [vmem:[#allocation2 + $0x540] sm:$0xff]  ;;  %v1430_v28 = vld [vmem:[#allocation2 + $0x5d8] sm:$0xff] }
 0x119   : > { %488 = vst.msk [vmem:[#allocation2 + $0x8c8] sm:$0xff] %vm263_vm0, %v456_v34  ;;  %873 = vst.msk [vmem:[#allocation2 + $0x8a0] sm:$0xff] %vm263_vm0, %v2982_v35  ;;  %v1371_v35 = vld [vmem:[#allocation2 + $0x400] sm:$0xff]  ;;  %3360 = vmatpush1.bf16.xpose.msra.mxu0 %v3359_v29  ;;  %3234 = vmatprep.subr.bf16.mxu1 %v3233_v30  ;;  %v3243_v30 = vpack.c.bf16 %v1416_v22, %v1407_v19  ;;  %v1438_v37 = vld [vmem:[#allocation2 + $0x618] sm:$0xff] }
 0x11a   : > { %519 = vst.msk [vmem:[#allocation2 + $0x880] sm:$0xff] %vm296_vm1, %v3735_v6  ;;  %1093 = vst.msk [vmem:[#allocation2 + $0x790] sm:$0xff] %vm296_vm1, %v3735_v6  ;;  %1990 = vmatmul.mubr.f32.gmra.mrb[24].mxu0 %v1211_v31  ;;  %3362 = vmatprep.subr.bf16.mxu0 %v3361_v33  ;;  %v3235_v51 = vpack.c.bf16 %v1380_v36, %v1371_v35  ;;  %v1435_v27 = vld [vmem:[#allocation2 + $0x600] sm:$0xff]  ;;  %v3371_v31 = vpack.c.bf16 %v1420_v25, %v1411_v23  ;;  %v1434_v35 = vld [vmem:[#allocation2 + $0x5f8] sm:$0xff] }
 0x11b   : > { %1062 = vst.msk [vmem:[#allocation2 + $0x7d8] sm:$0xff] %vm263_vm0, %v456_v34  ;;  %874 = vst.msk [vmem:[#allocation2 + $0x8e8] sm:$0xff] %vm263_vm0, %v2983_v41  ;;  %v3023_v34 = vld [vmem:[%s3775_s20 + $0x82] sm:$0xff]  ;;  %1995 = vmatprep.mubr.f32.mxu0 %v1221_v40  ;;  %v1429_v36 = vld [vmem:[#allocation2 + $0x5d0] sm:$0xff] }
 0x11c   : > { %520 = vst.msk [vmem:[#allocation2 + $0x8c8] sm:$0xff] %vm296_vm1, %v3735_v6  ;;  %905 = vst.msk [vmem:[#allocation2 + $0x8a0] sm:$0xff] %vm296_vm1, %v3735_v6  ;;  %v1216_v41 = vld [vmem:[%s5755_s2 + $0x3a8] sm:$0xff]  ;;  %v1439_v29 = vld [vmem:[#allocation2 + $0x620] sm:$0xff] }
 0x11d   : > { %1094 = vst.msk [vmem:[#allocation2 + $0x7d8] sm:$0xff] %vm296_vm1, %v3735_v6  ;;  %906 = vst.msk [vmem:[#allocation2 + $0x8e8] sm:$0xff] %vm296_vm1, %v3735_v6  ;;  %1674 = vmatmul.mubr.f32.gmra.mrb[26].mxu1 %v1216_v41  ;;  %v3373_v33 = vpack.c.bf16 %v1439_v29, %v1430_v28  ;;  %v1448_v40 = vld [vmem:[#allocation2 + $0x668] sm:$0xff]  ;;  %v1457_v41 = vld [vmem:[#allocation2 + $0x6b0] sm:$0xff] }
 0x11e   : > { %1035 = vst.msk [vmem:[#allocation2 + $0x40] sm:$0xff] %vm263_vm0, %v3016_v53  ;;  %1036 = vst.msk [vmem:[#allocation2 + $0x88] sm:$0xff] %vm263_vm0, %v3017_v54  ;;  %1996 = vmatmul.mubr.f32.gmra.mrb[26].mxu0 %v1220_v43  ;;  %1679 = vmatprep.mubr.f32.mxu1 %v1226_v44  ;;  %v3363_v53 = vpack.c.bf16 %v1384_v39, %v1375_v38  ;;  %v3237_v54 = vpack.c.bf16 %v1399_v45, %v1390_v42  ;;  %v1444_v38 = vld [vmem:[#allocation2 + $0x648] sm:$0xff]  ;;  %v1453_v39 = vld [vmem:[#allocation2 + $0x690] sm:$0xff] }
 0x11f   : > { %1067 = vst.msk [vmem:[#allocation2 + $0x40] sm:$0xff] %vm296_vm1, %v3735_v6  ;;  %1068 = vst.msk [vmem:[#allocation2 + $0x88] sm:$0xff] %vm296_vm1, %v3735_v6  ;;  %2001 = vmatprep.mubr.f32.mxu0 %v1230_v46  ;;  %3236 = vmatpush1.bf16.xpose.msra.mxu1 %v3235_v51  ;;  %v3375_v43 = vpack.c.bf16 %v1438_v37, %v1429_v36  ;;  %v3249_v44 = vpack.c.bf16 %v1453_v39, %v1444_v38  ;;  %v1443_v45 = vld [vmem:[#allocation2 + $0x640] sm:$0xff]  ;;  %v1452_v46 = vld [vmem:[#allocation2 + $0x688] sm:$0xff] }
 0x120   : > { %1037 = vst.msk [vmem:[#allocation2 + $0xd0] sm:$0xff] %vm263_vm0, %v3018_v8  ;;  %1038 = vst.msk [vmem:[#allocation2 + $0x118] sm:$0xff] %vm263_vm0, %v3019_v9  ;;  %3238 = vmatprep.subr.bf16.mxu1 %v3237_v54  ;;  %v1106_v8 = vld [vmem:[%s5755_s2 + $0x38] sm:$0xff]  ;;  %v1421_v9 = vld [vmem:[#allocation2 + $0x590] sm:$0xff] }
 0x121   : > { %1069 = vst.msk [vmem:[#allocation2 + $0xd0] sm:$0xff] %vm296_vm1, %v3735_v6  ;;  %1070 = vst.msk [vmem:[#allocation2 + $0x118] sm:$0xff] %vm296_vm1, %v3735_v6  ;;  %1680 = vmatmul.mubr.f32.gmra.mrb[28].mxu1 %v1225_v52  ;;  %3364 = vmatpush1.bf16.xpose.msra.mxu0 %v3363_v53  ;;  %v3369_v17 = vpack.c.bf16 %v1421_v9, %v1412_v7  ;;  %v1456_v48 = vld [vmem:[#allocation2 + $0x6a8] sm:$0xff]  ;;  %v1462_v49 = vld [vmem:[#allocation2 + $0x6d8] sm:$0xff]  ;;  %v3251_v53 = vpack.c.bf16 %v1452_v46, %v1443_v45 }
 0x122   : > { %1039 = vst.msk [vmem:[#allocation2 + $0x160] sm:$0xff] %vm263_vm0, %v3020_v21  ;;  %1040 = vst.msk [vmem:[#allocation2 + $0x1a8] sm:$0xff] %vm263_vm0, %v3021_v24  ;;  %2002 = vmatmul.mubr.f32.gmra.mrb[28].mxu0 %v1229_v55  ;;  %3366 = vmatprep.subr.bf16.mxu0 %v3365_v56  ;;  %v3030_v21 = vld [vmem:[%s3775_s20 + $0xda] sm:$0xff]  ;;  %v3031_v24 = vld [vmem:[%s3775_s20 + $0xe2] sm:$0xff] }
 0x123   : > { %1071 = vst.msk [vmem:[#allocation2 + $0x160] sm:$0xff] %vm296_vm1, %v3735_v6  ;;  %1072 = vst.msk [vmem:[#allocation2 + $0x1a8] sm:$0xff] %vm296_vm1, %v3735_v6  ;;  %1685 = vmatprep.mubr.f32.mxu1 %v1235_v59  ;;  %2007 = vmatprep.mubr.f32.mxu0 %v1239_v63  ;;  %v1466_v51 = vld [vmem:[#allocation2 + $0x6f8] sm:$0xff]  ;;  %v1475_v52 = vld [vmem:[#allocation2 + $0x740] sm:$0xff] }
 0x124   : > { %1041 = vst.msk [vmem:[#allocation2 + $0x1f0] sm:$0xff] %vm263_vm0, %v3022_v32  ;;  %1042 = vst.msk [vmem:[#allocation2 + $0x238] sm:$0xff] %vm263_vm0, %v3023_v34  ;;  %v3245_v32 = vpack.c.bf16 %v1435_v27, %v1426_v26  ;;  %v1425_v34 = vld [vmem:[#allocation2 + $0x5b0] sm:$0xff]  ;;  %v3381_v56 = vpack.c.bf16 %v1475_v52, %v1466_v51  ;;  %v1470_v58 = vld [vmem:[#allocation2 + $0x718] sm:$0xff] }
 0x125   : > { %1073 = vst.msk [vmem:[#allocation2 + $0x1f0] sm:$0xff] %vm296_vm1, %v3735_v6  ;;  %1074 = vst.msk [vmem:[#allocation2 + $0x238] sm:$0xff] %vm296_vm1, %v3735_v6  ;;  %1686 = vmatmul.mubr.f32.gmra.mrb[30].mxu1 %v1234_v0  ;;  %v3247_v42 = vpack.c.bf16 %v1434_v35, %v1425_v34  ;;  %v1461_v57 = vld [vmem:[#allocation2 + $0x6d0] sm:$0xff]  ;;  %v1480_v61 = vld [vmem:[#allocation2 + $0x768] sm:$0xff] }
 0x126   : > { %1043 = vst.msk [vmem:[#allocation2 + $0x280] sm:$0xff] %vm263_vm0, %v3024_v47  ;;  %1044 = vst.msk [vmem:[#allocation2 + $0x2c8] sm:$0xff] %vm263_vm0, %v3025_v50  ;;  %2008 = vmatmul.mubr.f32.gmra.mrb[30].mxu0 %v1238_v3  ;;  %1756 = vmatprep.mubr.f32.mxu1 %v1102_v4  ;;  %v1447_v47 = vld [vmem:[#allocation2 + $0x660] sm:$0xff]  ;;  %v1465_v59 = vld [vmem:[#allocation2 + $0x6f0] sm:$0xff] }
 0x127   : > { %1075 = vst.msk [vmem:[#allocation2 + $0x280] sm:$0xff] %vm296_vm1, %v3735_v6  ;;  %1076 = vst.msk [vmem:[#allocation2 + $0x2c8] sm:$0xff] %vm296_vm1, %v3735_v6  ;;  %2078 = vmatprep.mubr.f32.mxu0 %v1106_v8  ;;  %3240 = vmatpush1.bf16.xpose.msra.mxu1 %v3239_v12  ;;  %v1471_v50 = vld [vmem:[#allocation2 + $0x720] sm:$0xff]  ;;  %v3379_v54 = vpack.c.bf16 %v1456_v48, %v1447_v47  ;;  %v1489_v62 = vld [vmem:[#allocation2 + $0x7b0] sm:$0xff] }
 0x128   : > { %1045 = vst.msk [vmem:[#allocation2 + $0x310] sm:$0xff] %vm263_vm0, %v3026_v60  ;;  %1046 = vst.msk [vmem:[#allocation2 + $0x358] sm:$0xff] %vm263_vm0, %v3027_v1  ;;  %3242 = vmatprep.subr.bf16.mxu1 %v3241_v16  ;;  %v3253_v55 = vpack.c.bf16 %v1471_v50, %v1462_v49  ;;  %v1474_v60 = vld [vmem:[#allocation2 + $0x738] sm:$0xff]  ;;  %v1484_v63 = vld [vmem:[#allocation2 + $0x788] sm:$0xff]  ;;  %v3255_v1 = vpack.c.bf16 %v1470_v58, %v1461_v57  ;;  %v3257_v3 = vpack.c.bf16 %v1489_v62, %v1480_v61 }
 0x129   : > { %1077 = vst.msk [vmem:[#allocation2 + $0x310] sm:$0xff] %vm296_vm1, %v3735_v6  ;;  %1078 = vst.msk [vmem:[#allocation2 + $0x358] sm:$0xff] %vm296_vm1, %v3735_v6  ;;  %3368 = vmatpush1.bf16.xpose.msra.mxu0 %v3367_v15  ;;  %v1493_v0 = vld [vmem:[#allocation2 + $0x7d0] sm:$0xff]  ;;  %v3383_v2 = vpack.c.bf16 %v1474_v60, %v1465_v59  ;;  %v1479_v5 = vld [vmem:[#allocation2 + $0x760] sm:$0xff] }
 0x12a   : > { %1063 = vst.msk [vmem:[#allocation2 + $0x820] sm:$0xff] %vm263_vm0, %v3044_v10  ;;  %1064 = vst.msk [vmem:[#allocation2 + $0x868] sm:$0xff] %vm263_vm0, %v3045_v11  ;;  %3370 = vmatprep.subr.bf16.mxu0 %v3369_v17  ;;  %v3385_v4 = vpack.c.bf16 %v1493_v0, %v1484_v63  ;;  %v1488_v7 = vld [vmem:[#allocation2 + $0x7a8] sm:$0xff]  ;;  %v1483_v8 = vld [vmem:[#allocation2 + $0x780] sm:$0xff] }
 0x12b   : > { %1095 = vst.msk [vmem:[#allocation2 + $0x820] sm:$0xff] %vm296_vm1, %v3735_v6  ;;  %1096 = vst.msk [vmem:[#allocation2 + $0x868] sm:$0xff] %vm296_vm1, %v3735_v6  ;;  %v1492_v9 = vld [vmem:[#allocation2 + $0x7c8] sm:$0xff]  ;;  %v1498_v10 = vld [vmem:[#allocation2 + $0x7f8] sm:$0xff] }
 0x12c   : > { %1047 = vst.msk [vmem:[#allocation2 + $0x3a0] sm:$0xff] %vm263_vm0, %v3028_v13  ;;  %1048 = vst.msk [vmem:[#allocation2 + $0x3e8] sm:$0xff] %vm263_vm0, %v3029_v14  ;;  %v1507_v11 = vld [vmem:[#allocation2 + $0x840] sm:$0xff]  ;;  %v1502_v12 = vld [vmem:[#allocation2 + $0x818] sm:$0xff]  ;;  %v3259_v14 = vpack.c.bf16 %v1488_v7, %v1479_v5  ;;  %v3387_v15 = vpack.c.bf16 %v1492_v9, %v1483_v8 }
 0x12d   : > { %1079 = vst.msk [vmem:[#allocation2 + $0x3a0] sm:$0xff] %vm296_vm1, %v3735_v6  ;;  %1080 = vst.msk [vmem:[#allocation2 + $0x3e8] sm:$0xff] %vm296_vm1, %v3735_v6  ;;  %v1511_v13 = vld [vmem:[#allocation2 + $0x860] sm:$0xff]  ;;  %v3261_v16 = vpack.c.bf16 %v1507_v11, %v1498_v10  ;;  %v1506_v19 = vld [vmem:[#allocation2 + $0x838] sm:$0xff] }
 0x12e   : > { %1065 = vst.msk [vmem:[#allocation2 + $0x8b0] sm:$0xff] %vm263_vm0, %v3046_v18  ;;  %1066 = vst.msk [vmem:[#allocation2 + $0x8f8] sm:$0xff] %vm263_vm0, %v3047_v20  ;;  %v3389_v17 = vpack.c.bf16 %v1511_v13, %v1502_v12  ;;  %v1497_v18 = vld [vmem:[#allocation2 + $0x7f0] sm:$0xff]  ;;  %v1516_v22 = vld [vmem:[#allocation2 + $0x888] sm:$0xff] }
 0x12f   : > { %1097 = vst.msk [vmem:[#allocation2 + $0x8b0] sm:$0xff] %vm296_vm1, %v3735_v6  ;;  %1098 = vst.msk [vmem:[#allocation2 + $0x8f8] sm:$0xff] %vm296_vm1, %v3735_v6  ;;  %3244 = vmatpush1.bf16.xpose.msra.mxu1 %v3243_v30  ;;  %v1501_v20 = vld [vmem:[#allocation2 + $0x810] sm:$0xff]  ;;  %v3263_v26 = vpack.c.bf16 %v1506_v19, %v1497_v18  ;;  %v1515_v30 = vld [vmem:[#allocation2 + $0x880] sm:$0xff] }
 0x130   : > { %1049 = vst.msk [vmem:[#allocation2 + $0x430] sm:$0xff] %vm263_vm0, %v3030_v21  ;;  %1050 = vst.msk [vmem:[#allocation2 + $0x478] sm:$0xff] %vm263_vm0, %v3031_v24  ;;  %3246 = vmatprep.subr.bf16.mxu1 %v3245_v32  ;;  %v1510_v21 = vld [vmem:[#allocation2 + $0x858] sm:$0xff]  ;;  %v1525_v23 = vld [vmem:[#allocation2 + $0x8d0] sm:$0xff] }
 0x131   : > { %1081 = vst.msk [vmem:[#allocation2 + $0x430] sm:$0xff] %vm296_vm1, %v3735_v6  ;;  %1082 = vst.msk [vmem:[#allocation2 + $0x478] sm:$0xff] %vm296_vm1, %v3735_v6  ;;  %3372 = vmatpush1.bf16.xpose.msra.mxu0 %v3371_v31  ;;  %v3377_v6 = vpack.c.bf16 %v1457_v41, %v1448_v40  ;;  %v1520_v24 = vld [vmem:[#allocation2 + $0x8a8] sm:$0xff]  ;;  %v1529_v25 = vld [vmem:[#allocation2 + $0x8f0] sm:$0xff]  ;;  %v3391_v27 = vpack.c.bf16 %v1510_v21, %v1501_v20  ;;  %v3265_v28 = vpack.c.bf16 %v1525_v23, %v1516_v22 }
 0x132   : > { %3374 = vmatprep.subr.bf16.mxu0 %v3373_v33  ;;  %v3393_v29 = vpack.c.bf16 %v1529_v25, %v1520_v24  ;;  %v1524_v31 = vld [vmem:[#allocation2 + $0x8c8] sm:$0xff]  ;;  %v1395_v32 = vld [vmem:[#allocation2 + $0x4c0] sm:$0xff]  ;;  %v1413_v41 = vld [vmem:[#allocation2 + $0x550] sm:$0xff] }
 0x133   : > { %v1519_v33 = vld [vmem:[#allocation2 + $0x8a0] sm:$0xff]  ;;  %v1528_v34 = vld [vmem:[#allocation2 + $0x8e8] sm:$0xff]  ;;  %v3267_v36 = vpack.c.bf16 %v1524_v31, %v1515_v30  ;;  %v1110_v48 = vld [vmem:[%s5755_s2 + $0x58] sm:$0xff] }
 0x134   : > { %v1404_v35 = vld [vmem:[#allocation2 + $0x508] sm:$0xff]  ;;  %v3395_v37 = vpack.c.bf16 %v1528_v34, %v1519_v33  ;;  %v1251_v39 = vld [vmem:[#allocation2 + $0x40] sm:$0xff]  ;;  %v1114_v49 = vld [vmem:[%s5755_s2 + $0x78] sm:$0xff] }
 0x135   : > { %v3397_v38 = vpack.c.bf16 %v1404_v35, %v1395_v32  ;;  %v1260_v40 = vld [vmem:[#allocation2 + $0x88] sm:$0xff]  ;;  %v1111_v45 = vld [vmem:[%s5755_s2 + $0x60] sm:$0xff]  ;;  %v1269_v51 = vld [vmem:[#allocation2 + $0xd0] sm:$0xff] }
 0x136   : > { %v1115_v47 = vld [vmem:[%s5755_s2 + $0x80] sm:$0xff]  ;;  %v1120_v50 = vld [vmem:[%s5755_s2 + $0xa8] sm:$0xff]  ;;  %v1278_v52 = vld [vmem:[#allocation2 + $0x118] sm:$0xff] }
 0x137   : > { %3248 = vmatpush1.bf16.xpose.msra.mxu1 %v3247_v42  ;;  %v1422_v42 = vld [vmem:[#allocation2 + $0x598] sm:$0xff]  ;;  %v3403_v57 = vpack.c.bf16 %v1278_v52, %v1269_v51  ;;  %v1123_v58 = vld [vmem:[%s5755_s2 + $0xc0] sm:$0xff]  ;;  %v1129_v59 = vld [vmem:[%s5755_s2 + $0xf0] sm:$0xff] }
 0x138   : > { %3250 = vmatprep.subr.bf16.mxu1 %v3249_v44  ;;  %v3399_v44 = vpack.c.bf16 %v1260_v40, %v1251_v39  ;;  %v3401_v46 = vpack.c.bf16 %v1422_v42, %v1413_v41  ;;  %v1133_v61 = vld [vmem:[%s5755_s2 + $0x110] sm:$0xff]  ;;  %v1128_v62 = vld [vmem:[%s5755_s2 + $0xe8] sm:$0xff]  ;;  %v1138_v0 = vld [vmem:[%s5755_s2 + $0x138] sm:$0xff] }
 0x139   : > { %3376 = vmatpush1.bf16.xpose.msra.mxu0 %v3375_v43  ;;  %v1101_v43 = vld [vmem:[%s5755_s2 + $0x10] sm:$0xff]  ;;  %v1132_v63 = vld [vmem:[%s5755_s2 + $0x108] sm:$0xff]  ;;  %v1458_v5 = vld [vmem:[#allocation2 + $0x6b8] sm:$0xff] }
 0x13a   : > { %3378 = vmatprep.subr.bf16.mxu0 %v3377_v6  ;;  %v1105_v6 = vld [vmem:[%s5755_s2 + $0x30] sm:$0xff]  ;;  %v1147_v10 = vld [vmem:[%s5755_s2 + $0x180] sm:$0xff]  ;;  %v1146_v13 = vld [vmem:[%s5755_s2 + $0x178] sm:$0xff] }
 0x13b   : > { %v1137_v7 = vld [vmem:[%s5755_s2 + $0x130] sm:$0xff]  ;;  %v1151_v12 = vld [vmem:[%s5755_s2 + $0x1a0] sm:$0xff]  ;;  %v1160_v18 = vld [vmem:[%s5755_s2 + $0x1e8] sm:$0xff] }
 0x13c   : > { %v1141_v9 = vld [vmem:[%s5755_s2 + $0x150] sm:$0xff]  ;;  %v1467_v19 = vld [vmem:[#allocation2 + $0x700] sm:$0xff]  ;;  %v1476_v20 = vld [vmem:[#allocation2 + $0x748] sm:$0xff] }
 0x13d   : > { %v1155_v21 = vld [vmem:[%s5755_s2 + $0x1c0] sm:$0xff]  ;;  %v1165_v24 = vld [vmem:[%s5755_s2 + $0x210] sm:$0xff]  ;;  %v3413_v25 = vpack.c.bf16 %v1476_v20, %v1467_v19  ;;  %v1332_v31 = vld [vmem:[#allocation2 + $0x2c8] sm:$0xff] }
 0x13e   : > { %v1159_v23 = vld [vmem:[%s5755_s2 + $0x1e0] sm:$0xff]  ;;  %v1178_v32 = vld [vmem:[%s5755_s2 + $0x278] sm:$0xff]  ;;  %v1485_v33 = vld [vmem:[#allocation2 + $0x790] sm:$0xff] }
 0x13f   : > { %3252 = vmatpush1.bf16.xpose.msra.mxu1 %v3251_v53  ;;  %v1124_v53 = vld [vmem:[%s5755_s2 + $0xc8] sm:$0xff]  ;;  %v1323_v30 = vld [vmem:[#allocation2 + $0x280] sm:$0xff]  ;;  %v1494_v34 = vld [vmem:[#allocation2 + $0x7d8] sm:$0xff] }
 0x140   : > { %3254 = vmatprep.subr.bf16.mxu1 %v3253_v55  ;;  %v1440_v55 = vld [vmem:[#allocation2 + $0x628] sm:$0xff]  ;;  %v1173_v35 = vld [vmem:[%s5755_s2 + $0x250] sm:$0xff]  ;;  %v3417_v39 = vpack.c.bf16 %v1494_v34, %v1485_v33  ;;  %v1187_v40 = vld [vmem:[%s5755_s2 + $0x2c0] sm:$0xff] }
 0x141   : > { %3380 = vmatpush1.bf16.xpose.msra.mxu0 %v3379_v54  ;;  %v1431_v54 = vld [vmem:[#allocation2 + $0x5e0] sm:$0xff]  ;;  %v1182_v41 = vld [vmem:[%s5755_s2 + $0x298] sm:$0xff]  ;;  %v1201_v51 = vld [vmem:[%s5755_s2 + $0x330] sm:$0xff] }
 0x142   : > { %3382 = vmatprep.subr.bf16.mxu0 %v3381_v56  ;;  %v1119_v56 = vld [vmem:[%s5755_s2 + $0xa0] sm:$0xff]  ;;  %v3405_v60 = vpack.c.bf16 %v1440_v55, %v1431_v54  ;;  %v1186_v42 = vld [vmem:[%s5755_s2 + $0x2b8] sm:$0xff]  ;;  %v1200_v54 = vld [vmem:[%s5755_s2 + $0x328] sm:$0xff] }
 0x143   : > { %v1204_v55 = vld [vmem:[%s5755_s2 + $0x348] sm:$0xff]  ;;  %v1107_v19 = vld [vmem:[%s5755_s2 + $0x40] sm:$0xff]  ;;  %v1170_v33 = vld [vmem:[%s5755_s2 + $0x238] sm:$0xff] }
 0x144   : > { %v1188_v20 = vld [vmem:[%s5755_s2 + $0x2c8] sm:$0xff] }
 0x147   : > { %3256 = vmatpush1.bf16.xpose.msra.mxu1 %v3255_v1  ;;  %v1287_v1 = vld [vmem:[#allocation2 + $0x160] sm:$0xff] }
 0x148   : > { %3258 = vmatprep.subr.bf16.mxu1 %v3257_v3  ;;  %v1142_v3 = vld [vmem:[%s5755_s2 + $0x158] sm:$0xff] }
 0x149   : > { %3384 = vmatpush1.bf16.xpose.msra.mxu0 %v3383_v2  ;;  %v1296_v2 = vld [vmem:[#allocation2 + $0x1a8] sm:$0xff] }
 0x14a   : > { %3386 = vmatprep.subr.bf16.mxu0 %v3385_v4  ;;  %v1449_v4 = vld [vmem:[#allocation2 + $0x670] sm:$0xff]  ;;  %v3407_v8 = vpack.c.bf16 %v1296_v2, %v1287_v1  ;;  %v1219_v1 = vld [vmem:[%s5755_s2 + $0x3c0] sm:$0xff] }
 0x14b   : > { %v3409_v11 = vpack.c.bf16 %v1458_v5, %v1449_v4  ;;  %v1218_v4 = vld [vmem:[%s5755_s2 + $0x3b8] sm:$0xff] }
 0x14c   : > { %v1222_v5 = vld [vmem:[%s5755_s2 + $0x3d8] sm:$0xff] }
 0x14f   : > { %3260 = vmatpush1.bf16.xpose.msra.mxu1 %v3259_v14  ;;  %v1150_v14 = vld [vmem:[%s5755_s2 + $0x198] sm:$0xff] }
 0x150   : > { %3262 = vmatprep.subr.bf16.mxu1 %v3261_v16  ;;  %v1305_v16 = vld [vmem:[#allocation2 + $0x1f0] sm:$0xff] }
 0x151   : > { %3388 = vmatpush1.bf16.xpose.msra.mxu0 %v3387_v15  ;;  %v1156_v15 = vld [vmem:[%s5755_s2 + $0x1c8] sm:$0xff] }
 0x152   : > { %3390 = vmatprep.subr.bf16.mxu0 %v3389_v17  ;;  %v1314_v17 = vld [vmem:[#allocation2 + $0x238] sm:$0xff] }
 0x153   : > { %v3411_v22 = vpack.c.bf16 %v1314_v17, %v1305_v16  ;;  %v1236_v16 = vld [vmem:[%s5755_s2 + $0x448] sm:$0xff] }
 0x154   : > { %v1240_v17 = vld [vmem:[%s5755_s2 + $0x468] sm:$0xff] }
 0x157   : > { %3264 = vmatpush1.bf16.xpose.msra.mxu1 %v3263_v26  ;;  %v1169_v26 = vld [vmem:[%s5755_s2 + $0x230] sm:$0xff] }
 0x158   : > { %3266 = vmatprep.subr.bf16.mxu1 %v3265_v28  ;;  %v1168_v28 = vld [vmem:[%s5755_s2 + $0x228] sm:$0xff] }
 0x159   : > { %3392 = vmatpush1.bf16.xpose.msra.mxu0 %v3391_v27  ;;  %v1164_v27 = vld [vmem:[%s5755_s2 + $0x208] sm:$0xff] }
 0x15a   : > { %3394 = vmatprep.subr.bf16.mxu0 %v3393_v29  ;;  %v1174_v29 = vld [vmem:[%s5755_s2 + $0x258] sm:$0xff] }
 0x15f   : > { %3268 = vmatpush1.bf16.xpose.msra.mxu1 %v3267_v36  ;;  %v3415_v36 = vpack.c.bf16 %v1332_v31, %v1323_v30  ;;  %v1233_v30 = vld [vmem:[%s5755_s2 + $0x430] sm:$0xff] }
 0x160   : > { %3429 = vmatprep.subr.bf16.mxu1 %v3397_v38  ;;  %v1161_v31 = vld [vmem:[%s5755_s2 + $0x1f0] sm:$0xff] }
 0x161   : > { %3396 = vmatpush1.bf16.xpose.msra.mxu0 %v3395_v37  ;;  %v1177_v37 = vld [vmem:[%s5755_s2 + $0x270] sm:$0xff] }
 0x162   : > { %3398 = vmatprep.subr.bf16.mxu0 %v3397_v38  ;;  %v1183_v38 = vld [vmem:[%s5755_s2 + $0x2a0] sm:$0xff] }
 0x166   : > { %1757 = vmatmul.mubr.f32.vlgmr.msra.gmra.mrb[0].mxu1 %v1101_v43  ;;  %v1192_v43 = vld [vmem:[%s5755_s2 + $0x2e8] sm:$0xff] }
 0x167   : > { %3437 = vmatpush3.bf16.xpose.msra.mxu1 %v3399_v44  ;;  %1762 = vmatprep.mubr.f32.mxu1 %v1111_v45  ;;  %v1196_v45 = vld [vmem:[%s5755_s2 + $0x308] sm:$0xff] }
 0x168   : > { %2079 = vmatmul.mubr.f32.vlgmr.msra.gmra.mrb[0].mxu0 %v1105_v6  ;;  %3430 = vmatprep.subr.bf16.mxu1 %v3401_v46  ;;  %v1350_v6 = vld [vmem:[#allocation2 + $0x358] sm:$0xff] }
 0x169   : > { %3400 = vmatpush3.bf16.xpose.msra.mxu0 %v3399_v44  ;;  %2084 = vmatprep.mubr.f32.mxu0 %v1115_v47  ;;  %v1341_v44 = vld [vmem:[#allocation2 + $0x310] sm:$0xff]  ;;  %v1512_v47 = vld [vmem:[#allocation2 + $0x868] sm:$0xff] }
 0x16a   : > { %3402 = vmatprep.subr.bf16.mxu0 %v3401_v46  ;;  %1763 = vmatmul.mubr.f32.gmra.mrb[2].mxu1 %v1110_v48  ;;  %v1503_v46 = vld [vmem:[#allocation2 + $0x820] sm:$0xff] }
 0x16b   : > { %1768 = vmatprep.mubr.f32.mxu1 %v1120_v50  ;;  %v1191_v48 = vld [vmem:[%s5755_s2 + $0x2e0] sm:$0xff]  ;;  %v3421_v52 = vpack.c.bf16 %v1512_v47, %v1503_v46 }
 0x16c   : > { %2085 = vmatmul.mubr.f32.gmra.mrb[2].mxu0 %v1114_v49  ;;  %v3419_v49 = vpack.c.bf16 %v1350_v6, %v1341_v44  ;;  %v1195_v50 = vld [vmem:[%s5755_s2 + $0x300] sm:$0xff] }
 0x16d   : > { %2090 = vmatprep.mubr.f32.mxu0 %v1124_v53  ;;  %v1205_v53 = vld [vmem:[%s5755_s2 + $0x350] sm:$0xff] }
 0x16e   : > { %1769 = vmatmul.mubr.f32.gmra.mrb[4].mxu1 %v1119_v56  ;;  %v1210_v56 = vld [vmem:[%s5755_s2 + $0x378] sm:$0xff] }
 0x16f   : > { %3438 = vmatpush3.bf16.xpose.msra.mxu1 %v3403_v57  ;;  %1774 = vmatprep.mubr.f32.mxu1 %v1129_v59  ;;  %v1214_v59 = vld [vmem:[%s5755_s2 + $0x398] sm:$0xff] }
 0x170   : > { %2091 = vmatmul.mubr.f32.gmra.mrb[4].mxu0 %v1123_v58  ;;  %3431 = vmatprep.subr.bf16.mxu1 %v3405_v60  ;;  %v1368_v58 = vld [vmem:[#allocation2 + $0x3e8] sm:$0xff] }
 0x171   : > { %3404 = vmatpush3.bf16.xpose.msra.mxu0 %v3403_v57  ;;  %2096 = vmatprep.mubr.f32.mxu0 %v1133_v61  ;;  %v1359_v57 = vld [vmem:[#allocation2 + $0x3a0] sm:$0xff]  ;;  %v1530_v61 = vld [vmem:[#allocation2 + $0x8f8] sm:$0xff] }
 0x172   : > { %3406 = vmatprep.subr.bf16.mxu0 %v3405_v60  ;;  %1775 = vmatmul.mubr.f32.gmra.mrb[6].mxu1 %v1128_v62  ;;  %v1521_v60 = vld [vmem:[#allocation2 + $0x8b0] sm:$0xff] }
 0x173   : > { %1780 = vmatprep.mubr.f32.mxu1 %v1138_v0  ;;  %v1209_v62 = vld [vmem:[%s5755_s2 + $0x370] sm:$0xff]  ;;  %v3425_v2 = vpack.c.bf16 %v1530_v61, %v1521_v60 }
 0x174   : > { %2097 = vmatmul.mubr.f32.gmra.mrb[6].mxu0 %v1132_v63  ;;  %v3423_v63 = vpack.c.bf16 %v1368_v58, %v1359_v57  ;;  %v1213_v0 = vld [vmem:[%s5755_s2 + $0x390] sm:$0xff] }
 0x175   : > { %2102 = vmatprep.mubr.f32.mxu0 %v1142_v3  ;;  %v1223_v3 = vld [vmem:[%s5755_s2 + $0x3e0] sm:$0xff] }
 0x176   : > { %1781 = vmatmul.mubr.f32.gmra.mrb[8].mxu1 %v1137_v7  ;;  %v1228_v7 = vld [vmem:[%s5755_s2 + $0x408] sm:$0xff] }
 0x177   : > { %3439 = vmatpush3.bf16.xpose.msra.mxu1 %v3407_v8  ;;  %1786 = vmatprep.mubr.f32.mxu1 %v1147_v10  ;;  %v1232_v10 = vld [vmem:[%s5755_s2 + $0x428] sm:$0xff] }
 0x178   : > { %2103 = vmatmul.mubr.f32.gmra.mrb[8].mxu0 %v1141_v9  ;;  %3432 = vmatprep.subr.bf16.mxu1 %v3409_v11  ;;  %v1386_v9 = vld [vmem:[#allocation2 + $0x478] sm:$0xff] }
 0x179   : > { %3408 = vmatpush3.bf16.xpose.msra.mxu0 %v3407_v8  ;;  %2108 = vmatprep.mubr.f32.mxu0 %v1151_v12  ;;  %v1377_v8 = vld [vmem:[#allocation2 + $0x430] sm:$0xff] }
 0x17a   : > { %3410 = vmatprep.subr.bf16.mxu0 %v3409_v11  ;;  %1787 = vmatmul.mubr.f32.gmra.mrb[10].mxu1 %v1146_v13  ;;  %v1227_v11 = vld [vmem:[%s5755_s2 + $0x400] sm:$0xff]  ;;  %v3427_v12 = vpack.c.bf16 %v1386_v9, %v1377_v8 }
 0x17b   : > { %1792 = vmatprep.mubr.f32.mxu1 %v1156_v15  ;;  %v1231_v13 = vld [vmem:[%s5755_s2 + $0x420] sm:$0xff]  ;;  %v1241_v15 = vld [vmem:[%s5755_s2 + $0x470] sm:$0xff] }
 0x17c   : > { %2109 = vmatmul.mubr.f32.gmra.mrb[10].mxu0 %v1150_v14  ;;  %v1237_v14 = vld [vmem:[%s5755_s2 + $0x450] sm:$0xff] }
 0x17d   : > { %2114 = vmatprep.mubr.f32.mxu0 %v1160_v18  ;;  %v1179_v18 = vld [vmem:[%s5755_s2 + $0x280] sm:$0xff] }
 0x17e   : > { %1793 = vmatmul.mubr.f32.gmra.mrb[12].mxu1 %v1155_v21  ;;  %v1116_v21 = vld [vmem:[%s5755_s2 + $0x88] sm:$0xff] }
 0x17f   : > { %3440 = vmatpush3.bf16.xpose.msra.mxu1 %v3411_v22  ;;  %1798 = vmatprep.mubr.f32.mxu1 %v1165_v24  ;;  %v1206_v24 = vld [vmem:[%s5755_s2 + $0x358] sm:$0xff] }
 0x180   : > { %2115 = vmatmul.mubr.f32.gmra.mrb[12].mxu0 %v1159_v23  ;;  %3433 = vmatprep.subr.bf16.mxu1 %v3413_v25  ;;  %v1125_v23 = vld [vmem:[%s5755_s2 + $0xd0] sm:$0xff] }
 0x181   : > { %3412 = vmatpush3.bf16.xpose.msra.mxu0 %v3411_v22  ;;  %2120 = vmatprep.mubr.f32.mxu0 %v1169_v26  ;;  %v1197_v22 = vld [vmem:[%s5755_s2 + $0x310] sm:$0xff]  ;;  %v1215_v26 = vld [vmem:[%s5755_s2 + $0x3a0] sm:$0xff] }
 0x182   : > { %3414 = vmatprep.subr.bf16.mxu0 %v3413_v25  ;;  %1799 = vmatmul.mubr.f32.gmra.mrb[14].mxu1 %v1164_v27  ;;  %v1134_v25 = vld [vmem:[%s5755_s2 + $0x118] sm:$0xff]  ;;  %v1143_v27 = vld [vmem:[%s5755_s2 + $0x160] sm:$0xff] }
 0x183   : > { %1804 = vmatprep.mubr.f32.mxu1 %v1174_v29  ;;  %v1152_v29 = vld [vmem:[%s5755_s2 + $0x1a8] sm:$0xff] }
 0x184   : > { %2121 = vmatmul.mubr.f32.gmra.mrb[14].mxu0 %v1168_v28  ;;  %v1224_v28 = vld [vmem:[%s5755_s2 + $0x3e8] sm:$0xff] }
 0x185   : > { %2126 = vmatprep.mubr.f32.mxu0 %v1178_v32  ;;  %v1242_v32 = vld [vmem:[%s5755_s2 + $0x478] sm:$0xff] }
 0x186   : > { %1805 = vmatmul.mubr.f32.gmra.mrb[16].mxu1 %v1173_v35 }
 0x187   : > { %3441 = vmatpush3.bf16.xpose.msra.mxu1 %v3415_v36  ;;  %1810 = vmatprep.mubr.f32.mxu1 %v1183_v38 }
 0x188   : > { %2127 = vmatmul.mubr.f32.gmra.mrb[16].mxu0 %v1177_v37  ;;  %3434 = vmatprep.subr.bf16.mxu1 %v3417_v39 }
 0x189   : > { %3416 = vmatpush3.bf16.xpose.msra.mxu0 %v3415_v36  ;;  %2132 = vmatprep.mubr.f32.mxu0 %v1187_v40 }
 0x18a   : > { %3418 = vmatprep.subr.bf16.mxu0 %v3417_v39  ;;  %1811 = vmatmul.mubr.f32.gmra.mrb[18].mxu1 %v1182_v41 }
 0x18b   : > { %1816 = vmatprep.mubr.f32.mxu1 %v1192_v43 }
 0x18c   : > { %2133 = vmatmul.mubr.f32.gmra.mrb[18].mxu0 %v1186_v42 }
 0x18d   : > { %2138 = vmatprep.mubr.f32.mxu0 %v1196_v45 }
 0x18e   : > { %1817 = vmatmul.mubr.f32.gmra.mrb[20].mxu1 %v1191_v48 }
 0x18f   : > { %3442 = vmatpush3.bf16.xpose.msra.mxu1 %v3419_v49  ;;  %1822 = vmatprep.mubr.f32.mxu1 %v1201_v51 }
 0x190   : > { %2139 = vmatmul.mubr.f32.gmra.mrb[20].mxu0 %v1195_v50  ;;  %3435 = vmatprep.subr.bf16.mxu1 %v3421_v52 }
 0x191   : > { %3420 = vmatpush3.bf16.xpose.msra.mxu0 %v3419_v49  ;;  %2144 = vmatprep.mubr.f32.mxu0 %v1205_v53 }
 0x192   : > { %3422 = vmatprep.subr.bf16.mxu0 %v3421_v52  ;;  %1823 = vmatmul.mubr.f32.gmra.mrb[22].mxu1 %v1200_v54 }
 0x193   : > { %1828 = vmatprep.mubr.f32.mxu1 %v1210_v56 }
 0x194   : > { %2145 = vmatmul.mubr.f32.gmra.mrb[22].mxu0 %v1204_v55 }
 0x195   : > { %2150 = vmatprep.mubr.f32.mxu0 %v1214_v59 }
 0x196   : > { %1829 = vmatmul.mubr.f32.gmra.mrb[24].mxu1 %v1209_v62 }
 0x197   : > { %3443 = vmatpush3.bf16.xpose.msra.mxu1 %v3423_v63  ;;  %1834 = vmatprep.mubr.f32.mxu1 %v1219_v1 }
 0x198   : > { %2151 = vmatmul.mubr.f32.gmra.mrb[24].mxu0 %v1213_v0  ;;  %3436 = vmatprep.subr.bf16.mxu1 %v3425_v2 }
 0x199   : > { %3424 = vmatpush3.bf16.xpose.msra.mxu0 %v3423_v63  ;;  %2156 = vmatprep.mubr.f32.mxu0 %v1223_v3 }
 0x19a   : > { %3426 = vmatprep.subr.bf16.mxu0 %v3425_v2  ;;  %1835 = vmatmul.mubr.f32.gmra.mrb[26].mxu1 %v1218_v4 }
 0x19b   : > { %1840 = vmatprep.mubr.f32.mxu1 %v1228_v7 }
 0x19c   : > { %2157 = vmatmul.mubr.f32.gmra.mrb[26].mxu0 %v1222_v5 }
 0x19d   : > { %2162 = vmatprep.mubr.f32.mxu0 %v1232_v10 }
 0x19e   : > { %1841 = vmatmul.mubr.f32.gmra.mrb[28].mxu1 %v1227_v11 }
 0x19f   : > { %3444 = vmatpush3.bf16.xpose.msra.mxu1 %v3427_v12  ;;  %1846 = vmatprep.mubr.f32.mxu1 %v1237_v14 }
 0x1a0   : > { %2163 = vmatmul.mubr.f32.gmra.mrb[28].mxu0 %v1231_v13 }
 0x1a1   : > { %3428 = vmatpush3.bf16.xpose.msra.mxu0 %v3427_v12  ;;  %2168 = vmatprep.mubr.f32.mxu0 %v1241_v15 }
 0x1a2   : > { %1847 = vmatmul.mubr.f32.gmra.mrb[30].mxu1 %v1236_v16 }
 0x1a3   : > { %3125 = vmatprep.mubr.f32.mxu1 %v1179_v18 }
 0x1a4   : > { %2169 = vmatmul.mubr.f32.gmra.mrb[30].mxu0 %v1240_v17 }
 0x1a5   : > { %3109 = vmatprep.mubr.f32.mxu0 %v1107_v19 }
 0x1a6   : > { %3126 = vmatmul.mubr.f32.vlgmr.msra.gmra.mrb[32].mxu1 %v1179_v18 }
 0x1a7   : > { %3127 = vmatprep.mubr.f32.mxu1 %v1188_v20 }
 0x1a8   : > { %3110 = vmatmul.mubr.f32.vlgmr.msra.gmra.mrb[0].mxu0 %v1107_v19 }
 0x1a9   : > { %3111 = vmatprep.mubr.f32.mxu0 %v1116_v21 }
 0x1aa   : > { %3128 = vmatmul.mubr.f32.gmra.mrb[34].mxu1 %v1188_v20 }
 0x1ab   : > { %3129 = vmatprep.mubr.f32.mxu1 %v1197_v22 }
 0x1ac   : > { %3112 = vmatmul.mubr.f32.gmra.mrb[2].mxu0 %v1116_v21 }
 0x1ad   : > { %3113 = vmatprep.mubr.f32.mxu0 %v1125_v23 }
 0x1ae   : > { %3130 = vmatmul.mubr.f32.gmra.mrb[36].mxu1 %v1197_v22 }
 0x1af   : > { %3131 = vmatprep.mubr.f32.mxu1 %v1206_v24 }
 0x1b0   : > { %3114 = vmatmul.mubr.f32.gmra.mrb[4].mxu0 %v1125_v23 }
 0x1b1   : > { %3115 = vmatprep.mubr.f32.mxu0 %v1134_v25 }
 0x1b2   : > { %3132 = vmatmul.mubr.f32.gmra.mrb[38].mxu1 %v1206_v24 }
 0x1b3   : > { %3133 = vmatprep.mubr.f32.mxu1 %v1215_v26 }
 0x1b4   : > { %3116 = vmatmul.mubr.f32.gmra.mrb[6].mxu0 %v1134_v25 }
 0x1b5   : > { %3117 = vmatprep.mubr.f32.mxu0 %v1143_v27 }
 0x1b6   : > { %3134 = vmatmul.mubr.f32.gmra.mrb[40].mxu1 %v1215_v26 }
 0x1b7   : > { %3135 = vmatprep.mubr.f32.mxu1 %v1224_v28 }
 0x1b8   : > { %3118 = vmatmul.mubr.f32.gmra.mrb[8].mxu0 %v1143_v27 }
 0x1b9   : > { %3119 = vmatprep.mubr.f32.mxu0 %v1152_v29 }
 0x1ba   : > { %3136 = vmatmul.mubr.f32.gmra.mrb[42].mxu1 %v1224_v28 }
 0x1bb   : > { %3137 = vmatprep.mubr.f32.mxu1 %v1233_v30 }
 0x1bc   : > { %3120 = vmatmul.mubr.f32.gmra.mrb[10].mxu0 %v1152_v29 }
 0x1bd   : > { %3121 = vmatprep.mubr.f32.mxu0 %v1161_v31 }
 0x1be   : > { %3138 = vmatmul.mubr.f32.gmra.mrb[44].mxu1 %v1233_v30 }
 0x1bf   : > { %3139 = vmatprep.mubr.f32.mxu1 %v1242_v32 }
 0x1c0   : > { %3122 = vmatmul.mubr.f32.gmra.mrb[12].mxu0 %v1161_v31 }
 0x1c1   : > { %3123 = vmatprep.mubr.f32.mxu0 %v1170_v33 }
 0x1c2   : > { %3140 = vmatmul.mubr.f32.gmra.mrb[46].mxu1 %v1242_v32 }
 0x1c4   : > { %3124 = vmatmul.mubr.f32.gmra.mrb[14].mxu0 %v1170_v33 }
 0x239   : > { %v5472_v34 = vpop.f32.mrb[0].mxu1 }
 0x23a   : > { %v5474_v35 = vpop.f32.mrb[1].mxu1 }
 0x23d   : > { %v5476_v36 = vpop.f32.mrb[2].mxu1 }
 0x23e   : > { %v5478_v37 = vpop.f32.mrb[3].mxu1 }
 0x241   : > { %v5480_v38 = vpop.f32.mrb[4].mxu1 }
 0x242   : > { %v5482_v39 = vpop.f32.mrb[5].mxu1 }
 0x245   : > { %v5484_v40 = vpop.f32.mrb[6].mxu1 }
 0x246   : > { %v5486_v41 = vpop.f32.mrb[7].mxu1 }
 0x249   : > { %v5488_v42 = vpop.f32.mrb[8].mxu1 }
 0x24a   : > { %v5490_v43 = vpop.f32.mrb[9].mxu1 }
 0x24d   : > { %v5492_v44 = vpop.f32.mrb[10].mxu1 }
 0x24e   : > { %v5494_v6 = vpop.f32.mrb[11].mxu1 }
 0x251   : > { %v5496_v45 = vpop.f32.mrb[12].mxu1 }
 0x252   : > { %v5498_v46 = vpop.f32.mrb[13].mxu1 }
 0x255   : > { %v5500_v47 = vpop.f32.mrb[14].mxu1 }
 0x256   : > { %v5502_v48 = vpop.f32.mrb[15].mxu1 }
 0x259   : > { %v1806_v49 = vpop.f32.mrb[16].mxu1 }
 0x25a   : > { %v1808_v51 = vpop.f32.mrb[17].mxu1 }
 0x25b   : > { %v2128_v50 = vpop.f32.mrb[16].mxu0 }
 0x25c   : > { %v3461_v52 = vadd.f32 %v2128_v50, %v1806_v49  ;;  %v2130_v53 = vpop.f32.mrb[17].mxu0 }
 0x25d   : > { %v3463_v54 = vadd.f32 %v2130_v53, %v1808_v51  ;;  %v1812_v55 = vpop.f32.mrb[18].mxu1 }
 0x25e   : > { %v1814_v57 = vpop.f32.mrb[19].mxu1 }
 0x25f   : > { %v2134_v56 = vpop.f32.mrb[18].mxu0 }
 0x260   : > { %v3465_v58 = vadd.f32 %v2134_v56, %v1812_v55  ;;  %v2136_v59 = vpop.f32.mrb[19].mxu0 }
 0x261   : > { %v3467_v60 = vadd.f32 %v2136_v59, %v1814_v57  ;;  %v1818_v61 = vpop.f32.mrb[20].mxu1 }
 0x262   : > { %v1820_v63 = vpop.f32.mrb[21].mxu1 }
 0x263   : > { %v2140_v62 = vpop.f32.mrb[20].mxu0 }
 0x264   : > { %v3469_v0 = vadd.f32 %v2140_v62, %v1818_v61  ;;  %v2142_v1 = vpop.f32.mrb[21].mxu0 }
 0x265   : > { %v3471_v2 = vadd.f32 %v2142_v1, %v1820_v63  ;;  %v1824_v3 = vpop.f32.mrb[22].mxu1 }
 0x266   : > { %v1826_v5 = vpop.f32.mrb[23].mxu1 }
 0x267   : > { %v2146_v4 = vpop.f32.mrb[22].mxu0 }
 0x268   : > { %v3473_v7 = vadd.f32 %v2146_v4, %v1824_v3  ;;  %v2148_v8 = vpop.f32.mrb[23].mxu0 }
 0x269   : > { %v3475_v9 = vadd.f32 %v2148_v8, %v1826_v5  ;;  %v1830_v10 = vpop.f32.mrb[24].mxu1 }
 0x26a   : > { %v1832_v12 = vpop.f32.mrb[25].mxu1 }
 0x26b   : > { %v2152_v11 = vpop.f32.mrb[24].mxu0 }
 0x26c   : > { %v3477_v13 = vadd.f32 %v2152_v11, %v1830_v10  ;;  %v2154_v14 = vpop.f32.mrb[25].mxu0 }
 0x26d   : > { %v3479_v15 = vadd.f32 %v2154_v14, %v1832_v12  ;;  %v1836_v16 = vpop.f32.mrb[26].mxu1 }
 0x26e   : > { %v1838_v18 = vpop.f32.mrb[27].mxu1 }
 0x26f   : > { %v2158_v17 = vpop.f32.mrb[26].mxu0 }
 0x270   : > { %v3481_v19 = vadd.f32 %v2158_v17, %v1836_v16  ;;  %v2160_v20 = vpop.f32.mrb[27].mxu0 }
 0x271   : > { %v3483_v21 = vadd.f32 %v2160_v20, %v1838_v18  ;;  %v1842_v22 = vpop.f32.mrb[28].mxu1 }
 0x272   : > { %v1844_v24 = vpop.f32.mrb[29].mxu1 }
 0x273   : > { %v2164_v23 = vpop.f32.mrb[28].mxu0 }
 0x274   : > { %v3485_v25 = vadd.f32 %v2164_v23, %v1842_v22  ;;  %v2166_v26 = vpop.f32.mrb[29].mxu0 }
 0x275   : > { %v5504_v27 = vadd.f32 %v2166_v26, %v1844_v24  ;;  %v1848_v28 = vpop.f32.mrb[30].mxu1 }
 0x276   : > { %v1850_v30 = vpop.f32.mrb[31].mxu1 }
 0x277   : > { %v2170_v29 = vpop.f32.mrb[30].mxu0 }
 0x278   : > { %v5506_v31 = vadd.f32 %v2170_v29, %v1848_v28  ;;  %v2172_v32 = vpop.f32.mrb[31].mxu0 }
 0x279   : > { %v5508_v33 = vadd.f32 %v2172_v32, %v1850_v30  ;;  %v2289_v49 = vpop.f32.mrb[32].mxu1 }
 0x27a   : > { %v5510_v51 = vadd.f32 %v3461_v52, %v2289_v49  ;;  %v2291_v53 = vpop.f32.mrb[33].mxu1 }
 0x27b   : > { %v2241_v50 = vpop.f32.mrb[0].mxu0  ;;  %v5515_v57 = vadd.f32 %v3463_v54, %v2291_v53 }
 0x27c   : > { %v5513_v55 = vadd.f32 %v2241_v50, %v5472_v34  ;;  %v2243_v56 = vpop.f32.mrb[1].mxu0 }
 0x27d   : > { %v5518_v59 = vadd.f32 %v2243_v56, %v5474_v35  ;;  %v2295_v61 = vpop.f32.mrb[34].mxu1 }
 0x27e   : > { %v5520_v63 = vadd.f32 %v3465_v58, %v2295_v61  ;;  %v2297_v1 = vpop.f32.mrb[35].mxu1 }
 0x27f   : > { %v2247_v62 = vpop.f32.mrb[2].mxu0  ;;  %v5525_v4 = vadd.f32 %v3467_v60, %v2297_v1 }
 0x280   : > { %v5523_v3 = vadd.f32 %v2247_v62, %v5476_v36  ;;  %v2249_v52 = vpop.f32.mrb[3].mxu0 }
 0x281   : > { %v5528_v34 = vadd.f32 %v2249_v52, %v5478_v37  ;;  %v2301_v5 = vpop.f32.mrb[36].mxu1 }
 0x282   : > { %v5530_v8 = vadd.f32 %v3469_v0, %v2301_v5  ;;  %v2303_v35 = vpop.f32.mrb[37].mxu1 }
 0x283   : > { %v2253_v54 = vpop.f32.mrb[4].mxu0  ;;  %v5535_v11 = vadd.f32 %v3471_v2, %v2303_v35 }
 0x284   : > { %v5533_v10 = vadd.f32 %v2253_v54, %v5480_v38  ;;  %v2255_v58 = vpop.f32.mrb[5].mxu0 }
 0x285   : > { %v5538_v36 = vadd.f32 %v2255_v58, %v5482_v39  ;;  %v2307_v12 = vpop.f32.mrb[38].mxu1 }
 0x286   : > { %v5540_v14 = vadd.f32 %v3473_v7, %v2307_v12  ;;  %v2309_v37 = vpop.f32.mrb[39].mxu1 }
 0x287   : > { %v2259_v60 = vpop.f32.mrb[6].mxu0  ;;  %v5545_v17 = vadd.f32 %v3475_v9, %v2309_v37 }
 0x288   : > { %v5543_v16 = vadd.f32 %v2259_v60, %v5484_v40  ;;  %v2261_v0 = vpop.f32.mrb[7].mxu0 }
 0x289   : > { %v5548_v38 = vadd.f32 %v2261_v0, %v5486_v41  ;;  %v2313_v18 = vpop.f32.mrb[40].mxu1 }
 0x28a   : > { %v3478_v20 = vadd.f32 %v3477_v13, %v2313_v18  ;;  %v2315_v22 = vpop.f32.mrb[41].mxu1 }
 0x28b   : > { %v2265_v2 = vpop.f32.mrb[8].mxu0  ;;  %v3480_v7 = vadd.f32 %v3479_v15, %v2315_v22 }
 0x28c   : > { %v5551_v39 = vadd.f32 %v2265_v2, %v5488_v42  ;;  %v2267_v23 = vpop.f32.mrb[9].mxu0 }
 0x28d   : > { %v5554_v24 = vadd.f32 %v2267_v23, %v5490_v43  ;;  %v2319_v40 = vpop.f32.mrb[42].mxu1  ;;  %v2412_v26 = vadd.f32 %v3480_v7, %v3478_v20 }
 0x28e   : > { %v3482_v9 = vadd.f32 %v3481_v19, %v2319_v40  ;;  %v2321_v29 = vpop.f32.mrb[43].mxu1 }
 0x28f   : > { %v2271_v28 = vpop.f32.mrb[10].mxu0  ;;  %v3484_v32 = vadd.f32 %v3483_v21, %v2321_v29  ;;  %2413 = vadd.xlane.f32.xlu0 %v2412_v26 }
 0x290   : > { %v5557_v41 = vadd.f32 %v2271_v28, %v5492_v44  ;;  %v2273_v30 = vpop.f32.mrb[11].mxu0 }
 0x291   : > { %v5560_v13 = vadd.f32 %v2273_v30, %v5494_v6  ;;  %v2325_v42 = vpop.f32.mrb[44].mxu1  ;;  %v2506_v49 = vadd.f32 %v3484_v32, %v3482_v9 }
 0x292   : > { %v3486_v50 = vadd.f32 %v3485_v25, %v2325_v42  ;;  %v2327_v43 = vpop.f32.mrb[45].mxu1 }
 0x293   : > { %v2277_v15 = vpop.f32.mrb[12].mxu0  ;;  %v3488_v19 = vadd.f32 %v5504_v27, %v2327_v43  ;;  %2507 = vadd.xlane.f32.xlu0 %v2506_v49  ;;  %v3049_v43 = vmul.f32 -1.442695, %v5518_v59 }
 0x294   : > { %v5563_v53 = vadd.f32 %v2277_v15, %v5496_v45  ;;  %v2279_v56 = vpop.f32.mrb[13].mxu0 }
 0x295   : > { %v5567_v44 = vadd.f32 %v2279_v56, %v5498_v46  ;;  %v2331_v21 = vpop.f32.mrb[46].mxu1  ;;  %v2600_v61 = vadd.f32 %v3488_v19, %v3486_v50  ;;  %v3054_v56 = vmul.f32 -1.442695, %v5523_v3 }
 0x296   : > { %v3490_v6 = vadd.f32 %v5506_v31, %v2331_v21  ;;  %v2333_v1 = vpop.f32.mrb[47].mxu1  ;;  %v3060_v21 = vmul.f32 -1.442695, %v5533_v10 }
 0x297   : > { %v2283_v62 = vpop.f32.mrb[14].mxu0  ;;  %v3492_v45 = vadd.f32 %v5508_v33, %v2333_v1  ;;  %2601 = vadd.xlane.f32.xlu1 %v2600_v61  ;;  %v3061_v61 = vmul.f32 -1.442695, %v5538_v36 }
 0x298   : > { %v5571_v52 = vadd.f32 %v2283_v62, %v5500_v47  ;;  %v2285_v25 = vpop.f32.mrb[15].mxu0 }
 0x299   : > { %v5575_v5 = vadd.f32 %v2285_v25, %v5502_v48  ;;  %v2694_v27 = vadd.f32 %v3492_v45, %v3490_v6 }
 0x29b   : > { %2695 = vadd.xlane.f32.xlu1 %v2694_v27  ;;  %v3051_v27 = vmul.f32 -1.442695, %v5554_v24  ;;  %v3062_v24 = vmul.f32 -1.442695, %v5563_v53 }
 0x31c   : > { %v2414_v46 = vpop.xlane.xlu0 %2413 }
 0x31d   : > { %v2415_v54 = vmul.f32 0.00390625, %v2414_v46 }
 0x31f   : > { %v5577_v35 = vsub.f32 %v3478_v20, %v2415_v54  ;;  %v5579_v58 = vsub.f32 %v3480_v7, %v2415_v54 }
 0x320   : > { %v2508_v31 = vpop.xlane.xlu0 %2507 }
 0x321   : > { %v2509_v12 = vmul.f32 0.00390625, %v2508_v31  ;;  %v2418_v47 = vmul.f32 %v5577_v35, %v5577_v35  ;;  %v2419_v33 = vmul.f32 %v5579_v58, %v5579_v58 }
 0x323   : > { %v5585_v60 = vsub.f32 %v3482_v9, %v2509_v12  ;;  %v5587_v48 = vsub.f32 %v3484_v32, %v2509_v12  ;;  %v2420_v37 = vadd.f32 %v2419_v33, %v2418_v47 }
 0x324   : > { %v2602_v0 = vpop.xlane.xlu1 %2601 }
 0x325   : > { %v2603_v18 = vmul.f32 0.00390625, %v2602_v0  ;;  %2421 = vadd.xlane.f32.xlu0 %v2420_v37  ;;  %v2512_v2 = vmul.f32 %v5585_v60, %v5585_v60  ;;  %v2513_v20 = vmul.f32 %v5587_v48, %v5587_v48  ;;  %v3063_v0 = vmul.f32 -1.442695, %v5567_v44 }
 0x327   : > { %v5593_v22 = vsub.f32 %v3486_v50, %v2603_v18  ;;  %v5595_v23 = vsub.f32 %v3488_v19, %v2603_v18  ;;  %v2514_v7 = vadd.f32 %v2513_v20, %v2512_v2  ;;  %v3048_v50 = vmul.f32 -1.442695, %v5513_v55 }
 0x328   : > { %v2696_v40 = vpop.xlane.xlu1 %2695  ;;  %v3055_v19 = vmul.f32 -1.442695, %v5528_v34  ;;  %v3066_v55 = vmul.f32 -1.442695, %v5543_v16  ;;  %v3050_v34 = vmul.f32 -1.442695, %v5551_v39 }
 0x329   : > { %v2697_v26 = vmul.f32 0.00390625, %v2696_v40  ;;  %2515 = vadd.xlane.f32.xlu1 %v2514_v7  ;;  %v2606_v28 = vmul.f32 %v5593_v22, %v5593_v22  ;;  %v2607_v9 = vmul.f32 %v5595_v23, %v5595_v23  ;;  %3583 = vpow2.f32 %v3048_v50 }
 0x32a   : > { %3585 = vpow2.f32 %v3049_v43  ;;  %v3056_v16 = vmul.f32 -1.442695, %v5557_v41  ;;  %v3069_v40 = vmul.f32 -1.442695, %v5575_v5 }
 0x32b   : > { %v5601_v29 = vsub.f32 %v3490_v6, %v2697_v26  ;;  %v5603_v30 = vsub.f32 %v3492_v45, %v2697_v26  ;;  %v2608_v32 = vadd.f32 %v2607_v9, %v2606_v28  ;;  %3587 = vpow2.f32 %v3054_v56 }
 0x32c   : > { %3589 = vpow2.f32 %v3055_v19  ;;  %v3067_v45 = vmul.f32 -1.442695, %v5548_v38  ;;  %v3057_v38 = vmul.f32 -1.442695, %v5560_v13  ;;  %v3068_v13 = vmul.f32 -1.442695, %v5571_v52 }
 0x32d   : > { %2609 = vadd.xlane.f32.xlu0 %v2608_v32  ;;  %v2700_v42 = vmul.f32 %v5601_v29, %v5601_v29  ;;  %v2701_v49 = vmul.f32 %v5603_v30, %v5603_v30  ;;  %3591 = vpow2.f32 %v3060_v21 }
 0x32e   : > { %3593 = vpow2.f32 %v3061_v61 }
 0x32f   : > { %v2702_v15 = vadd.f32 %v2701_v49, %v2700_v42 }
 0x331   : > { %2703 = vadd.xlane.f32.xlu1 %v2702_v15 }
 0x333   : > { %v3584_v62 = vpop.eup %3583 }
 0x334   : > { %v3586_v6 = vpop.eup %3585  ;;  %v2376_v1 = vadd.f32 1.0, %v3584_v62 }
 0x335   : > { %v2377_v59 = vadd.f32 1.0, %v3586_v6  ;;  %v3588_v25 = vpop.eup %3587 }
 0x336   : > { %v3590_v3 = vpop.eup %3589  ;;  %3595 = vrcp.f32 %v2376_v1  ;;  %v2470_v36 = vadd.f32 1.0, %v3588_v25 }
 0x337   : > { %v3592_v10 = vpop.eup %3591  ;;  %3597 = vpow2.f32 %v3066_v55  ;;  %v2471_v46 = vadd.f32 1.0, %v3590_v3 }
 0x338   : > { %3599 = vrcp.f32 %v2377_v59  ;;  %v2564_v54 = vadd.f32 1.0, %v3592_v10  ;;  %v3594_v31 = vpop.eup %3593 }
 0x339   : > { %3601 = vpow2.f32 %v3067_v45  ;;  %v2565_v47 = vadd.f32 1.0, %v3594_v31 }
 0x33a   : > { %3603 = vpow2.f32 %v3050_v34 }
 0x33b   : > { %3605 = vpow2.f32 %v3051_v27 }
 0x33c   : > { %3607 = vrcp.f32 %v2470_v36 }
 0x33d   : > { %3609 = vrcp.f32 %v2471_v46 }
 0x33e   : > { %3611 = vrcp.f32 %v2564_v54 }
 0x33f   : > { %3613 = vpow2.f32 %v3056_v16 }
 0x340   : > { %v5622_v37 = vpop.eup %3595  ;;  %3615 = vpow2.f32 %v3057_v38 }
 0x341   : > { %v3598_v2 = vpop.eup %3597 }
 0x342   : > { %v5625_v20 = vpop.eup %3599  ;;  %v2658_v28 = vadd.f32 1.0, %v3598_v2 }
 0x343   : > { %v3602_v7 = vpop.eup %3601 }
 0x344   : > { %v3604_v26 = vpop.eup %3603  ;;  %v2659_v49 = vadd.f32 1.0, %v3602_v7 }
 0x345   : > { %v3606_v32 = vpop.eup %3605  ;;  %v2390_v50 = vadd.f32 1.0, %v3604_v26 }
 0x346   : > { %v5629_v42 = vpop.eup %3607  ;;  %v2391_v5 = vadd.f32 1.0, %v3606_v32 }
 0x347   : > { %v5631_v15 = vpop.eup %3609 }
 0x348   : > { %v5633_v43 = vpop.eup %3611 }
 0x349   : > { %v3614_v19 = vpop.eup %3613 }
 0x34a   : > { %v3616_v61 = vpop.eup %3615  ;;  %v2484_v55 = vadd.f32 1.0, %v3614_v19 }
 0x34b   : > { %v2485_v3 = vadd.f32 1.0, %v3616_v61 }
 0x3b2   : > { %v2422_v12 = vpop.xlane.xlu0 %2421 }
 0x3b3   : > { %v2423_v39 = vmul.f32 0.00390625, %v2422_v12 }
 0x3b5   : > { %v2424_v33 = vadd.f32 1e-05, %v2423_v39 }
 0x3b6   : > { %v2516_v18 = vpop.xlane.xlu1 %2515 }
 0x3b7   : > { %3617 = vrsqrt.f32 %v2424_v33  ;;  %v2517_v41 = vmul.f32 0.00390625, %v2516_v18  ;;  %v2430_v33 = vld [vmem:[%s5650_s29] sm:$0xff]  ;;  %v2431_v18 = vld [vmem:[%s5650_s29 + $0x8] sm:$0xff] }
 0x3b8   : > { %3619 = vrcp.f32 %v2565_v47 }
 0x3b9   : > { %3621 = vpow2.f32 %v3062_v24  ;;  %v2518_v53 = vadd.f32 1e-05, %v2517_v41 }
 0x3ba   : > { %3623 = vpow2.f32 %v3063_v0  ;;  %v2610_v9 = vpop.xlane.xlu0 %2609 }
 0x3bb   : > { %3625 = vrsqrt.f32 %v2518_v53  ;;  %v2611_v44 = vmul.f32 0.00390625, %v2610_v9 }
 0x3bc   : > { %3627 = vpow2.f32 %v3068_v13 }
 0x3bd   : > { %3629 = vpow2.f32 %v3069_v40  ;;  %v2612_v52 = vadd.f32 1e-05, %v2611_v44  ;;  %v2525_v44 = vld [vmem:[%s5650_s29 + $0x18] sm:$0xff] }
 0x3be   : > { %3631 = vrcp.f32 %v2658_v28  ;;  %v2704_v56 = vpop.xlane.xlu1 %2703  ;;  %v2524_v28 = vld [vmem:[%s5650_s29 + $0x10] sm:$0xff] }
 0x3bf   : > { %3633 = vrsqrt.f32 %v2612_v52  ;;  %v2705_v21 = vmul.f32 0.00390625, %v2704_v56 }
 0x3c0   : > { %3635 = vrcp.f32 %v2659_v49 }
 0x3c1   : > { %v3618_v62 = vpop.eup %3617  ;;  %3637 = vrcp.f32 %v2390_v50  ;;  %v2706_v6 = vadd.f32 1e-05, %v2705_v21  ;;  %v2618_v21 = vld [vmem:[%s5650_s29 + $0x20] sm:$0xff] }
 0x3c2   : > { %v5635_v1 = vpop.eup %3619  ;;  %3639 = vrcp.f32 %v2391_v5  ;;  %v2426_v59 = vmul.f32 %v3618_v62, %v5577_v35  ;;  %v2427_v25 = vmul.f32 %v3618_v62, %v5579_v58  ;;  %v2619_v62 = vld [vmem:[%s5650_s29 + $0x28] sm:$0xff] }
 0x3c3   : > { %v3622_v45 = vpop.eup %3621  ;;  %3641 = vrsqrt.f32 %v2706_v6 }
 0x3c4   : > { %v3624_v34 = vpop.eup %3623  ;;  %3643 = vtanh.f32 %v2426_v59  ;;  %v2578_v36 = vadd.f32 1.0, %v3622_v45 }
 0x3c5   : > { %v3626_v10 = vpop.eup %3625  ;;  %3645 = vtanh.f32 %v2427_v25  ;;  %v2579_v58 = vadd.f32 1.0, %v3624_v34 }
 0x3c6   : > { %v3628_v27 = vpop.eup %3627  ;;  %3647 = vrcp.f32 %v2484_v55  ;;  %v2520_v46 = vmul.f32 %v3626_v10, %v5585_v60  ;;  %v2521_v54 = vmul.f32 %v3626_v10, %v5587_v48 }
 0x3c7   : > { %v3630_v35 = vpop.eup %3629  ;;  %3649 = vrcp.f32 %v2485_v3  ;;  %v2672_v48 = vadd.f32 1.0, %v3628_v27  ;;  %v2712_v27 = vld [vmem:[%s5650_s29 + $0x30] sm:$0xff] }
 0x3c8   : > { %v5644_v31 = vpop.eup %3631  ;;  %3651 = vtanh.f32 %v2520_v46  ;;  %v2673_v47 = vadd.f32 1.0, %v3630_v35  ;;  %v2713_v46 = vld [vmem:[%s5650_s29 + $0x38] sm:$0xff] }
 0x3c9   : > { %v3634_v16 = vpop.eup %3633  ;;  %3653 = vtanh.f32 %v2521_v54 }
 0x3ca   : > { %v5652_v60 = vpop.eup %3635  ;;  %3655 = vrcp.f32 %v2578_v36  ;;  %v2614_v38 = vmul.f32 %v3634_v16, %v5593_v22  ;;  %v2615_v12 = vmul.f32 %v3634_v16, %v5595_v23 }
 0x3cb   : > { %v3638_v39 = vpop.eup %3637  ;;  %3657 = vrcp.f32 %v2579_v58 }
 0x3cc   : > { %v3640_v24 = vpop.eup %3639  ;;  %3659 = vtanh.f32 %v2614_v38  ;;  %v2432_v23 = vmul.f32 %v3638_v39, %v2430_v33 }
 0x3cd   : > { %v3642_v0 = vpop.eup %3641  ;;  %3661 = vtanh.f32 %v2615_v12  ;;  %v2433_v53 = vmul.f32 %v3640_v24, %v2431_v18 }
 0x3ce   : > { %v3644_v2 = vpop.eup %3643  ;;  %3663 = vrcp.f32 %v2672_v48  ;;  %v2708_v41 = vmul.f32 %v3642_v0, %v5601_v29  ;;  %v2709_v13 = vmul.f32 %v3642_v0, %v5603_v30 }
 0x3cf   : > { %v3646_v22 = vpop.eup %3645  ;;  %3665 = vrcp.f32 %v2673_v47  ;;  %v2434_v7 = vmul.f32 %v3644_v2, %v5622_v37 }
 0x3d0   : > { %v3648_v40 = vpop.eup %3647  ;;  %3667 = vtanh.f32 %v2708_v41  ;;  %v2435_v26 = vmul.f32 %v3646_v22, %v5625_v20 }
 0x3d1   : > { %v3650_v9 = vpop.eup %3649  ;;  %3669 = vtanh.f32 %v2709_v13  ;;  %v2436_v32 = vadd.f32 %v2434_v7, %v2432_v23  ;;  %v2526_v50 = vmul.f32 %v3648_v40, %v2524_v28 }
 0x3d2   : > { %v3652_v29 = vpop.eup %3651  ;;  %v2437_v49 = vadd.f32 %v2435_v26, %v2433_v53  ;;  %v2527_v56 = vmul.f32 %v3650_v9, %v2525_v44 }
 0x3d3   : > { %v3654_v30 = vpop.eup %3653  ;;  %v2528_v52 = vmul.f32 %v3652_v29, %v5629_v42 }
 0x3d4   : > { %v3656_v5 = vpop.eup %3655  ;;  %v2438_v37 = vadd.f32 %v2437_v49, %v2436_v32  ;;  %v2529_v19 = vmul.f32 %v3654_v30, %v5631_v15 }
 0x3d5   : > { %v3658_v20 = vpop.eup %3657  ;;  %v2530_v61 = vadd.f32 %v2528_v52, %v2526_v50  ;;  %v2620_v25 = vmul.f32 %v3656_v5, %v2618_v21  ;;  %v3052_v21 = vmul.f32 -1.442695, %v5510_v51 }
 0x3d6   : > { %v3660_v6 = vpop.eup %3659  ;;  %2439 = vadd.xlane.f32.xlu0 %v2438_v37  ;;  %v2531_v55 = vadd.f32 %v2529_v19, %v2527_v56  ;;  %v2621_v34 = vmul.f32 %v3658_v20, %v2619_v62  ;;  %v3053_v20 = vmul.f32 -1.442695, %v5515_v57  ;;  %v3059_v62 = vmul.f32 -1.442695, %v5525_v4 }
 0x3d7   : > { %v3662_v59 = vpop.eup %3661  ;;  %v2622_v45 = vmul.f32 %v3660_v6, %v5633_v43  ;;  %3671 = vpow2.f32 %v3052_v21  ;;  %v3070_v57 = vmul.f32 -1.442695, %v5540_v14 }
 0x3d8   : > { %v3664_v3 = vpop.eup %3663  ;;  %v2532_v42 = vadd.f32 %v2531_v55, %v2530_v61  ;;  %v2623_v10 = vmul.f32 %v3662_v59, %v5635_v1  ;;  %3673 = vpow2.f32 %v3053_v20  ;;  %v3064_v59 = vmul.f32 -1.442695, %v5530_v8 }
 0x3d9   : > { %v3666_v36 = vpop.eup %3665  ;;  %v2624_v15 = vadd.f32 %v2622_v45, %v2620_v25  ;;  %v2714_v16 = vmul.f32 %v3664_v3, %v2712_v27  ;;  %v3065_v45 = vmul.f32 -1.442695, %v5535_v11 }
 0x3da   : > { %v3668_v54 = vpop.eup %3667  ;;  %2533 = vadd.xlane.f32.xlu1 %v2532_v42  ;;  %v2625_v35 = vadd.f32 %v2623_v10, %v2621_v34  ;;  %v2715_v12 = vmul.f32 %v3666_v36, %v2713_v46 }
 0x3db   : > { %v3670_v58 = vpop.eup %3669  ;;  %v2716_v48 = vmul.f32 %v3668_v54, %v5644_v31 }
 0x3dc   : > { %v2626_v38 = vadd.f32 %v2625_v35, %v2624_v15  ;;  %v2717_v43 = vmul.f32 %v3670_v58, %v5652_v60 }
 0x3dd   : > { %v2718_v39 = vadd.f32 %v2716_v48, %v2714_v16 }
 0x3de   : > { %2627 = vadd.xlane.f32.xlu0 %v2626_v38  ;;  %v2719_v47 = vadd.f32 %v2717_v43, %v2715_v12 }
 0x3e0   : > { %v2720_v24 = vadd.f32 %v2719_v47, %v2718_v39 }
 0x3e1   : > { %v3672_v34 = vpop.eup %3671 }
 0x3e2   : > { %2721 = vadd.xlane.f32.xlu1 %v2720_v24  ;;  %v3674_v10 = vpop.eup %3673  ;;  %v2404_v27 = vadd.f32 1.0, %v3672_v34 }
 0x3e3   : > { %v2405_v11 = vadd.f32 1.0, %v3674_v10 }
 0x463   : > { %v2440_v1 = vpop.xlane.xlu0 %2439 }
 0x464   : > { %v2441_v33 = vmul.f32 0.00390625, %v2440_v1 }
 0x466   : > { %v5674_v0 = vsub.f32 %v2436_v32, %v2441_v33  ;;  %v5676_v18 = vsub.f32 %v2437_v49, %v2441_v33 }
 0x467   : > { %v2534_v2 = vpop.xlane.xlu1 %2533 }
 0x468   : > { %v2535_v41 = vmul.f32 0.00390625, %v2534_v2  ;;  %v2444_v31 = vmul.f32 %v5674_v0, %v5674_v0  ;;  %v2445_v13 = vmul.f32 %v5676_v18, %v5676_v18 }
 0x46a   : > { %v5682_v60 = vsub.f32 %v2530_v61, %v2535_v41  ;;  %v5684_v22 = vsub.f32 %v2531_v55, %v2535_v41  ;;  %v2446_v23 = vadd.f32 %v2445_v13, %v2444_v31  ;;  %v3058_v61 = vmul.f32 -1.442695, %v5520_v63 }
 0x46b   : > { %v2628_v7 = vpop.xlane.xlu0 %2627  ;;  %v3071_v63 = vmul.f32 -1.442695, %v5545_v17 }
 0x46c   : > { %v2629_v40 = vmul.f32 0.00390625, %v2628_v7  ;;  %2447 = vadd.xlane.f32.xlu0 %v2446_v23  ;;  %v2538_v53 = vmul.f32 %v5682_v60, %v5682_v60  ;;  %v2539_v26 = vmul.f32 %v5684_v22, %v5684_v22  ;;  %3675 = vpow2.f32 %v3058_v61 }
 0x46d   : > { %3677 = vpow2.f32 %v3059_v62 }
 0x46e   : > { %v5690_v28 = vsub.f32 %v2624_v15, %v2629_v40  ;;  %v5692_v9 = vsub.f32 %v2625_v35, %v2629_v40  ;;  %v2540_v32 = vadd.f32 %v2539_v26, %v2538_v53 }
 0x46f   : > { %v2722_v44 = vpop.xlane.xlu1 %2721 }
 0x470   : > { %v2723_v29 = vmul.f32 0.00390625, %v2722_v44  ;;  %2541 = vadd.xlane.f32.xlu1 %v2540_v32  ;;  %v2632_v49 = vmul.f32 %v5690_v28, %v5690_v28  ;;  %v2633_v30 = vmul.f32 %v5692_v9, %v5692_v9 }
 0x472   : > { %v5698_v50 = vsub.f32 %v2718_v39, %v2723_v29  ;;  %v5700_v52 = vsub.f32 %v2719_v47, %v2723_v29  ;;  %v2634_v5 = vadd.f32 %v2633_v30, %v2632_v49 }
 0x474   : > { %2635 = vadd.xlane.f32.xlu0 %v2634_v5  ;;  %v2726_v37 = vmul.f32 %v5698_v50, %v5698_v50  ;;  %v2727_v56 = vmul.f32 %v5700_v52, %v5700_v52 }
 0x476   : > { %v2728_v19 = vadd.f32 %v2727_v56, %v2726_v37  ;;  %v3676_v46 = vpop.eup %3675 }
 0x477   : > { %v3678_v14 = vpop.eup %3677  ;;  %v2498_v58 = vadd.f32 1.0, %v3676_v46 }
 0x478   : > { %2729 = vadd.xlane.f32.xlu1 %v2728_v19  ;;  %v2499_v12 = vadd.f32 1.0, %v3678_v14 }
 0x4f9   : > { %v2448_v6 = vpop.xlane.xlu0 %2447 }
 0x4fa   : > { %v2449_v55 = vmul.f32 0.00390625, %v2448_v6 }
 0x4fc   : > { %v2450_v25 = vadd.f32 1e-05, %v2449_v55 }
 0x4fd   : > { %v2542_v3 = vpop.xlane.xlu1 %2541 }
 0x4fe   : > { %3679 = vrsqrt.f32 %v2450_v25  ;;  %v2543_v51 = vmul.f32 0.00390625, %v2542_v3 }
 0x4ff   : > { %3681 = vpow2.f32 %v3064_v59 }
 0x500   : > { %v2544_v42 = vadd.f32 1e-05, %v2543_v51  ;;  %3683 = vpow2.f32 %v3065_v45 }
 0x501   : > { %v2636_v4 = vpop.xlane.xlu0 %2635 }
 0x502   : > { %3685 = vrsqrt.f32 %v2544_v42  ;;  %v2637_v8 = vmul.f32 0.00390625, %v2636_v4 }
 0x503   : > { %3687 = vpow2.f32 %v3070_v57 }
 0x504   : > { %v2638_v36 = vadd.f32 1e-05, %v2637_v8  ;;  %3689 = vpow2.f32 %v3071_v63 }
 0x505   : > { %v2730_v15 = vpop.xlane.xlu1 %2729 }
 0x506   : > { %3691 = vrsqrt.f32 %v2638_v36  ;;  %v2731_v54 = vmul.f32 0.00390625, %v2730_v15 }
 0x507   : > { %3693 = vrcp.f32 %v2404_v27 }
 0x508   : > { %v3680_v35 = vpop.eup %3679  ;;  %v2732_v17 = vadd.f32 1e-05, %v2731_v54  ;;  %3695 = vrcp.f32 %v2405_v11 }
 0x509   : > { %v2452_v16 = vmul.f32 %v3680_v35, %v5674_v0  ;;  %v2453_v48 = vmul.f32 %v3680_v35, %v5676_v18  ;;  %v3682_v38 = vpop.eup %3681 }
 0x50a   : > { %3697 = vrsqrt.f32 %v2732_v17  ;;  %v3684_v43 = vpop.eup %3683  ;;  %v2592_v47 = vadd.f32 1.0, %v3682_v38 }
 0x50b   : > { %3699 = vtanh.f32 %v2452_v16  ;;  %2460 = vst [vmem:[%s5718_s5] sm:$0xff] %v2452_v16  ;;  %2461 = vst [vmem:[%s5718_s5 + $0x8] sm:$0xff] %v2453_v48  ;;  %v2593_v0 = vadd.f32 1.0, %v3684_v43 }
 0x50c   : > { %v3686_v39 = vpop.eup %3685  ;;  %3701 = vtanh.f32 %v2453_v48 }
 0x50d   : > { %3703 = vrcp.f32 %v2498_v58  ;;  %v2546_v24 = vmul.f32 %v3686_v39, %v5682_v60  ;;  %v2547_v1 = vmul.f32 %v3686_v39, %v5684_v22  ;;  %v3688_v33 = vpop.eup %3687 }
 0x50e   : > { %3705 = vrcp.f32 %v2499_v12  ;;  %v3690_v18 = vpop.eup %3689  ;;  %v2686_v41 = vadd.f32 1.0, %v3688_v33 }
 0x50f   : > { %3707 = vtanh.f32 %v2546_v24  ;;  %2554 = vst [vmem:[%s5718_s5 + $0x10] sm:$0xff] %v2546_v24  ;;  %2555 = vst [vmem:[%s5718_s5 + $0x18] sm:$0xff] %v2547_v1  ;;  %v2687_v22 = vadd.f32 1.0, %v3690_v18 }
 0x510   : > { %v3692_v2 = vpop.eup %3691  ;;  %3709 = vtanh.f32 %v2547_v1 }
 0x511   : > { %3711 = vrcp.f32 %v2592_v47  ;;  %v2640_v31 = vmul.f32 %v3692_v2, %v5690_v28  ;;  %v2641_v13 = vmul.f32 %v3692_v2, %v5692_v9  ;;  %v3694_v60 = vpop.eup %3693 }
 0x512   : > { %3713 = vrcp.f32 %v2593_v0  ;;  %v3696_v23 = vpop.eup %3695 }
 0x513   : > { %3715 = vtanh.f32 %v2640_v31  ;;  %2648 = vst [vmem:[%s5718_s5 + $0x20] sm:$0xff] %v2640_v31  ;;  %2649 = vst [vmem:[%s5718_s5 + $0x28] sm:$0xff] %v2641_v13 }
 0x514   : > { %v3698_v7 = vpop.eup %3697  ;;  %3717 = vtanh.f32 %v2641_v13 }
 0x515   : > { %v3700_v40 = vpop.eup %3699  ;;  %3719 = vrcp.f32 %v2686_v41  ;;  %v2734_v53 = vmul.f32 %v3698_v7, %v5698_v50  ;;  %v2735_v26 = vmul.f32 %v3698_v7, %v5700_v52 }
 0x516   : > { %v3702_v28 = vpop.eup %3701  ;;  %3721 = vrcp.f32 %v2687_v22  ;;  %v2456_v9 = vmul.f32 %v3700_v40, %v3694_v60 }
 0x517   : > { %v3704_v32 = vpop.eup %3703  ;;  %v2457_v44 = vmul.f32 %v3702_v28, %v3696_v23  ;;  %3723 = vtanh.f32 %v2734_v53  ;;  %2742 = vst [vmem:[%s5718_s5 + $0x30] sm:$0xff] %v2734_v53  ;;  %2743 = vst [vmem:[%s5718_s5 + $0x38] sm:$0xff] %v2735_v26 }
 0x518   : > { %v3706_v29 = vpop.eup %3705  ;;  %2458 = vst [vmem:[%s5736_s8] sm:$0xff] %v2456_v9  ;;  %3725 = vtanh.f32 %v2735_v26 }
 0x519   : > { %v3708_v49 = vpop.eup %3707  ;;  %2459 = vst [vmem:[%s5736_s8 + $0x8] sm:$0xff] %v2457_v44 }
 0x51a   : > { %v3710_v30 = vpop.eup %3709  ;;  %v2550_v50 = vmul.f32 %v3708_v49, %v3704_v32 }
 0x51b   : > { %v3712_v52 = vpop.eup %3711  ;;  %v2551_v5 = vmul.f32 %v3710_v30, %v3706_v29 }
 0x51c   : > { %v3714_v37 = vpop.eup %3713  ;;  %2552 = vst [vmem:[%s5736_s8 + $0x10] sm:$0xff] %v2550_v50 }
 0x51d   : > { %v3716_v56 = vpop.eup %3715  ;;  %2553 = vst [vmem:[%s5736_s8 + $0x18] sm:$0xff] %v2551_v5 }
 0x51e   : > { %v3718_v19 = vpop.eup %3717  ;;  %v2644_v21 = vmul.f32 %v3716_v56, %v3712_v52 }
 0x51f   : > { %v3720_v20 = vpop.eup %3719  ;;  %v2645_v61 = vmul.f32 %v3718_v19, %v3714_v37 }
 0x520   : > { %v3722_v62 = vpop.eup %3721  ;;  %2646 = vst [vmem:[%s5736_s8 + $0x20] sm:$0xff] %v2644_v21 }
 0x521   : > { %v3724_v6 = vpop.eup %3723  ;;  %2647 = vst [vmem:[%s5736_s8 + $0x28] sm:$0xff] %v2645_v61 }
 0x522   : > { %v3726_v55 = vpop.eup %3725  ;;  %v2738_v59 = vmul.f32 %v3724_v6, %v3720_v20 }
 0x523   : > { %v2739_v25 = vmul.f32 %v3726_v55, %v3722_v62 }
 0x524   : > { %2740 = vst [vmem:[%s5736_s8 + $0x30] sm:$0xff] %v2738_v59 }
 0x525   : > { %2741 = vst [vmem:[%s5736_s8 + $0x38] sm:$0xff] %v2739_v25 }
 0x526 PF: > { %s15_s15 = sadd.s32 1, %s3733_s15  }
 0x527   : > { %p12_p4 = scmp.ge.s32.totalorder %s15_s15, 4  }
 0x529   :  { %14 = sbr.rel (!%p12_p4) target bundleno = 1 (0x1), region = 79 }

</bundles_post_ra>
